<compile_context>
chip_gen: v7x
topology: tpu7x:2x2x1
jax: 0.10.0
libtpu: 0.0.40
codegen_flags: <defaults>
</compile_context>

<pallas_src>
import functools
import math

import jax
import jax.numpy as jnp
from jax import lax
from jax.experimental import pallas as pl
from jax.experimental.pallas import tpu as pltpu

# ---------------- model hyperparameters (PyTorch defaults) ----------------
CONFIG_DIM = 5
D_MODEL = 128
NHEAD = 8
HEAD_DIM = D_MODEL // NHEAD
NUM_ENC = 3
NUM_DEC = 3
DFF = 512
MAX_SEQ = 600
LN_EPS = 1e-5

MXU_DTYPE = jnp.bfloat16   # MXU operand dtype; accumulation is always f32


# ============================ small helpers ===============================
def _round_up(x, m):
    return (x + m - 1) // m * m


def _pick_tq(s):
    """Largest multiple of 8 (<=256) dividing round_up(s, 8); returns (tq, s_padded)."""
    sp = _round_up(s, 8)
    tq = 8
    for t in range(8, min(sp, 256) + 1, 8):
        if sp % t == 0:
            tq = t
    return tq, sp


def _ln(h, g, b, eps):
    mu = jnp.mean(h, axis=-1, keepdims=True)
    var = jnp.mean(jnp.square(h - mu), axis=-1, keepdims=True)
    return (h - mu) * lax.rsqrt(var + eps) * g + b


# ===================== encoder path (single fused kernel) =================
def _encoder_kernel(cfg_ref, cw1, cb1, cw2, cb2,
                    ewv, ebv, ewo, ebo, ew1, eb1, ew2, eb2,
                    eg1, ebe1, eg2, ebe2,
                    ng, nb,
                    dwv, dbv, dwo, dbo,
                    out_ref, *, eps, n_enc, n_dec):
    # All memory rows of a batch are the identical config embedding, so encoder
    # self-attention reduces exactly to out_proj(V(x)) (uniform softmax over identical
    # keys/values), and the whole encoder acts on ONE token per batch.
    x = cfg_ref[...]                                                         # [Bp, CFG]
    h = jnp.maximum(jnp.dot(x, cw1[...], preferred_element_type=jnp.float32)
                    + cb1[...], 0.0)
    mem = jnp.dot(h, cw2[...], preferred_element_type=jnp.float32) + cb2[...]  # [Bp, D]
    for l in range(n_enc):
        v = jnp.dot(mem, ewv[l], preferred_element_type=jnp.float32) + ebv[l]
        a = jnp.dot(v, ewo[l], preferred_element_type=jnp.float32) + ebo[l]
        mem = _ln(mem + a, eg1[l], ebe1[l], eps)
        hh = jnp.maximum(jnp.dot(mem, ew1[l], preferred_element_type=jnp.float32)
                         + eb1[l], 0.0)
        ff = jnp.dot(hh, ew2[l], preferred_element_type=jnp.float32) + eb2[l]
        mem = _ln(mem + ff, eg2[l], ebe2[l], eps)
    mem = _ln(mem, ng[...], nb[...], eps)                                    # final encoder norm
    # Decoder cross-attention collapses to out_proj_ca(V_ca(mem)) per layer
    # (uniform softmax over S identical memory keys), independent of the queries.
    for l in range(n_dec):
        v = jnp.dot(mem, dwv[l], preferred_element_type=jnp.float32) + dbv[l]
        out_ref[l] = jnp.dot(v, dwo[l], preferred_element_type=jnp.float32) + dbo[l]


def pallas_encoder(config, ep):
    """config: [B, CONFIG_DIM] -> per-decoder-layer cross-attn terms [NUM_DEC, B, D]."""
    B = config.shape[0]
    Bp = _round_up(B, 8)
    cfg = config if Bp == B else jnp.pad(config, ((0, Bp - B), (0, 0)))
    out = pl.pallas_call(
        functools.partial(_encoder_kernel, eps=LN_EPS, n_enc=NUM_ENC, n_dec=NUM_DEC),
        out_shape=jax.ShapeDtypeStruct((NUM_DEC, Bp, D_MODEL), jnp.float32),
    )(cfg, ep["cw1"], ep["cb1"], ep["cw2"], ep["cb2"],
      ep["ewv"], ep["ebv"], ep["ewo"], ep["ebo"],
      ep["ew1"], ep["eb1"], ep["ew2"], ep["eb2"],
      ep["eg1"], ep["ebe1"], ep["eg2"], ep["ebe2"],
      ep["ng"], ep["nb"],
      ep["dwv"], ep["dbv"], ep["dwo"], ep["dbo"])
    return out[:, :B]


# =================== target embedding + positional encoding ===============
def _embed_pe_kernel(x_ref, w_ref, b_ref, pe_ref, o_ref):
    # Linear(1 -> D) + ReLU is a VPU broadcast: relu(x * w_row + b); PE add fused.
    y = jnp.maximum(x_ref[...].astype(jnp.float32) * w_ref[...] + b_ref[...], 0.0)
    o_ref[...] = (y + pe_ref[...]).astype(o_ref.dtype)


def pallas_embed_pe(input_seq, inp_p, pe):
    """input_seq: [B, S] -> relu(x*W + b) + PE : [B, S, D] (f32)."""
    B, S = input_seq.shape
    D = inp_p["w"].shape[1]
    return pl.pallas_call(
        _embed_pe_kernel,
        out_shape=jax.ShapeDtypeStruct((B, S, D), jnp.float32),
        grid=(B,),
        in_specs=[
            pl.BlockSpec((None, S, 1), lambda b: (b, 0, 0)),
            pl.BlockSpec((1, D), lambda b: (0, 0)),
            pl.BlockSpec((1, D), lambda b: (0, 0)),
            pl.BlockSpec((S, D), lambda b: (0, 0)),
        ],
        out_specs=pl.BlockSpec((None, S, D), lambda b: (b, 0, 0)),
        compiler_params=pltpu.CompilerParams(dimension_semantics=("parallel",)),
    )(input_seq.reshape(B, S, 1), inp_p["w"], inp_p["b"], pe[:S])


# ======================= fused decoder layer kernel =======================
def _decoder_layer_kernel(x_ref, ca_ref,
                          wq_ref, bq_ref, wkv_ref, bkv_ref, wo_ref, bo_ref,
                          g1_ref, be1_ref, g2_ref, be2_ref,
                          w1_ref, b1_ref, w2_ref, b2_ref, g3_ref, be3_ref,
                          o_ref, *, tq, s_real, nhead, eps):
    i = pl.program_id(1)
    r0 = pl.multiple_of(i * tq, 8)
    xt = x_ref[pl.ds(r0, tq), :]                    # [tq, D] f32 (query / residual tile)
    xk = x_ref[:s_real, :]                          # [s_real, D] f32 (keys exclude padding)

    # ---- self-attention projections (1/sqrt(dh) folded into Wq/bq) ----
    q = jnp.dot(xt.astype(MXU_DTYPE), wq_ref[...],
                preferred_element_type=jnp.float32) + bq_ref[...]            # [tq, D]
    kv = jnp.dot(xk.astype(MXU_DTYPE), wkv_ref[...],
                 preferred_element_type=jnp.float32) + bkv_ref[...]          # [s_real, 2D]
    k = kv[:, :D_MODEL]
    v = kv[:, D_MODEL:]
    kt = k.T                                        # one XLU transpose per program

    # ---- per-head attention; PV accumulated straight through Wo (no concat) ----
    wo = wo_ref[...]
    acc = jnp.zeros((tq, D_MODEL), jnp.float32)
    for h in range(nhead):
        sl = slice(h * HEAD_DIM, (h + 1) * HEAD_DIM)
        s = jnp.dot(q[:, sl].astype(MXU_DTYPE), kt[sl, :].astype(MXU_DTYPE),
                    preferred_element_type=jnp.float32)                      # [tq, s_real]
        m = jnp.max(s, axis=-1, keepdims=True)
        p = jnp.exp(s - m)
        p = p * pl.reciprocal(jnp.sum(p, axis=-1, keepdims=True), approx=True)
        pv = jnp.dot(p.astype(MXU_DTYPE), v[:, sl].astype(MXU_DTYPE),
                     preferred_element_type=jnp.float32)                     # [tq, dh]
        acc = acc + jnp.dot(pv.astype(MXU_DTYPE), wo[sl, :],
                            preferred_element_type=jnp.float32)              # [tq, D]

    x1 = _ln(xt + acc + bo_ref[...], g1_ref[...], be1_ref[...], eps)

    # ---- cross-attention, collapsed to a per-batch additive term ----
    x2 = _ln(x1 + ca_ref[...], g2_ref[...], be2_ref[...], eps)

    # ---- feed-forward (hidden [tq, DFF] never leaves VMEM) ----
    hh = jnp.maximum(jnp.dot(x2.astype(MXU_DTYPE), w1_ref[...],
                             preferred_element_type=jnp.float32) + b1_ref[...], 0.0)
    ff = jnp.dot(hh.astype(MXU_DTYPE), w2_ref[...],
                 preferred_element_type=jnp.float32) + b2_ref[...]
    x3 = _ln(x2 + ff, g3_ref[...], be3_ref[...], eps)
    o_ref[...] = x3.astype(o_ref.dtype)


def pallas_decoder_layer(x, ca_bias, p, *, s_real, tq):
    """x: [B, Sp, D] f32, ca_bias: [B, D] f32 -> [B, Sp, D] f32. One kernel per layer."""
    B, Sp, D = x.shape
    ca = ca_bias.reshape(B, 1, D)

    def full(shp):
        return pl.BlockSpec(shp, lambda b, i: (0, 0))

    return pl.pallas_call(
        functools.partial(_decoder_layer_kernel, tq=tq, s_real=s_real,
                          nhead=NHEAD, eps=LN_EPS),
        out_shape=jax.ShapeDtypeStruct((B, Sp, D), jnp.float32),
        grid=(B, Sp // tq),
        in_specs=[
            pl.BlockSpec((None, Sp, D), lambda b, i: (b, 0, 0)),   # full seq resident per batch
            pl.BlockSpec((None, 1, D), lambda b, i: (b, 0, 0)),
            full((D, D)), full((1, D)),
            full((D, 2 * D)), full((1, 2 * D)),
            full((D, D)), full((1, D)),
            full((1, D)), full((1, D)),
            full((1, D)), full((1, D)),
            full((D, DFF)), full((1, DFF)),
            full((DFF, D)), full((1, D)),
            full((1, D)), full((1, D)),
        ],
        out_specs=pl.BlockSpec((None, tq, D), lambda b, i: (b, i, 0)),
        compiler_params=pltpu.CompilerParams(
            dimension_semantics=("parallel", "parallel")),
    )(x, ca,
      p["wq"], p["bq"], p["wkv"], p["bkv"], p["wo"], p["bo"],
      p["g1"], p["be1"], p["g2"], p["be2"],
      p["w1"], p["b1"], p["w2"], p["b2"], p["g3"], p["be3"])


# ============== final decoder LayerNorm + D->1 output projection ==========
def _final_kernel(x_ref, g_ref, b_ref, w_ref, wb_ref, o_ref, *, eps):
    y = _ln(x_ref[...].astype(jnp.float32), g_ref[...], b_ref[...], eps)
    # D -> 1 projection as a lane reduction (avoids a width-1 matmul)
    o_ref[...] = (jnp.sum(y * w_ref[...], axis=-1, keepdims=True)
                  + wb_ref[...]).astype(o_ref.dtype)


def pallas_final(x, ln_p, out_p, *, tq):
    B, Sp, D = x.shape
    out = pl.pallas_call(
        functools.partial(_final_kernel, eps=LN_EPS),
        out_shape=jax.ShapeDtypeStruct((B, Sp, 1), jnp.float32),
        grid=(B, Sp // tq),
        in_specs=[
            pl.BlockSpec((None, tq, D), lambda b, i: (b, i, 0)),
            pl.BlockSpec((1, D), lambda b, i: (0, 0)),
            pl.BlockSpec((1, D), lambda b, i: (0, 0)),
            pl.BlockSpec((1, D), lambda b, i: (0, 0)),
            pl.BlockSpec((1, 1), lambda b, i: (0, 0)),
        ],
        out_specs=pl.BlockSpec((None, tq, 1), lambda b, i: (b, i, 0)),
        compiler_params=pltpu.CompilerParams(
            dimension_semantics=("parallel", "parallel")),
    )(x, ln_p["g"], ln_p["b"], out_p["w"], out_p["b"])
    return out.reshape(B, Sp)


# ======================= model composition (JAX glue) =====================
def forward(params, config, input_seq):
    """config: [B, CONFIG_DIM], input_seq: [B, S] -> [B, S]."""
    B, S = input_seq.shape
    tq, Sp = _pick_tq(S)

    # encoder path (+ all collapsed cross-attention terms): one kernel
    ca_bias = pallas_encoder(config, params["enc"])          # [NUM_DEC, B, D]

    # target embedding (Linear(1->D) + ReLU) fused with positional encoding
    x = pallas_embed_pe(input_seq, params["inp"], params["pe"])   # [B, S, D] f32
    if Sp != S:
        x = jnp.pad(x, ((0, 0), (0, Sp - S), (0, 0)))

    # decoder stack: one fused kernel per layer
    for l, lp in enumerate(params["dec"]):
        x = pallas_decoder_layer(x, ca_bias[l], lp, s_real=S, tq=tq)

    # final decoder norm + D->1 output projection
    out = pallas_final(x, params["dec_norm"], params["out"], tq=tq)   # [B, Sp]
    return out[:, :S]


# =========================== parameter init ===============================
def positional_encoding(max_len, d_model):
    position = jnp.arange(max_len, dtype=jnp.float32)[:, None]
    div_term = jnp.exp(jnp.arange(0, d_model, 2, dtype=jnp.float32)
                       * (-math.log(10000.0) / d_model))
    pe = jnp.zeros((max_len, d_model), jnp.float32)
    pe = pe.at[:, 0::2].set(jnp.sin(position * div_term))
    pe = pe.at[:, 1::2].set(jnp.cos(position * div_term))
    return pe


def init_params(key):
    """Reference (f32, unfused) parameters matching the PyTorch module layout."""
    keys = iter(jax.random.split(key, 256))

    def lin(n_in, n_out, scale=0.05):
        kw, kb = jax.random.split(next(keys))
        return {"w": jax.random.normal(kw, (n_in, n_out), jnp.float32) * scale,
                "b": jax.random.normal(kb, (n_out,), jnp.float32) * scale}

    def ln():
        return {"g": jnp.ones((D_MODEL,), jnp.float32),
                "b": jnp.zeros((D_MODEL,), jnp.float32)}

    def mha_p():
        return {"q": lin(D_MODEL, D_MODEL), "k": lin(D_MODEL, D_MODEL),
                "v": lin(D_MODEL, D_MODEL), "o": lin(D_MODEL, D_MODEL)}

    def enc_layer_p():
        return {"sa": mha_p(), "ff1": lin(D_MODEL, DFF), "ff2": lin(DFF, D_MODEL),
                "ln1": ln(), "ln2": ln()}

    def dec_layer_p():
        return {"sa": mha_p(), "ca": mha_p(),
                "ff1": lin(D_MODEL, DFF), "ff2": lin(DFF, D_MODEL),
                "ln1": ln(), "ln2": ln(), "ln3": ln()}

    return {
        "cfg_l1": lin(CONFIG_DIM, D_MODEL),
        "cfg_l2": lin(D_MODEL, D_MODEL),
        "inp": lin(1, D_MODEL),
        "enc": [enc_layer_p() for _ in range(NUM_ENC)],
        "dec": [dec_layer_p() for _ in range(NUM_DEC)],
        "enc_norm": ln(),
        "dec_norm": ln(),
        "out": lin(D_MODEL, 1),
        "pe": positional_encoding(MAX_SEQ, D_MODEL),
    }


def prepare_params(params, mxu_dtype=MXU_DTYPE):
    """Kernel-ready parameters: encoder + cross-attn weights stacked per layer (f32),
    decoder matmul weights in bf16 with 1/sqrt(dh) folded into Q, K/V fused.
    The unused encoder Q/K and cross-attention Q/K weights are dropped."""
    scale = 1.0 / math.sqrt(HEAD_DIM)
    D = D_MODEL

    enc = {
        "cw1": params["cfg_l1"]["w"], "cb1": params["cfg_l1"]["b"].reshape(1, D),
        "cw2": params["cfg_l2"]["w"], "cb2": params["cfg_l2"]["b"].reshape(1, D),
        "ewv": jnp.stack([p["sa"]["v"]["w"] for p in params["enc"]]),
        "ebv": jnp.stack([p["sa"]["v"]["b"].reshape(1, D) for p in params["enc"]]),
        "ewo": jnp.stack([p["sa"]["o"]["w"] for p in params["enc"]]),
        "ebo": jnp.stack([p["sa"]["o"]["b"].reshape(1, D) for p in params["enc"]]),
        "ew1": jnp.stack([p["ff1"]["w"] for p in params["enc"]]),
        "eb1": jnp.stack([p["ff1"]["b"].reshape(1, DFF) for p in params["enc"]]),
        "ew2": jnp.stack([p["ff2"]["w"] for p in params["enc"]]),
        "eb2": jnp.stack([p["ff2"]["b"].reshape(1, D) for p in params["enc"]]),
        "eg1": jnp.stack([p["ln1"]["g"].reshape(1, D) for p in params["enc"]]),
        "ebe1": jnp.stack([p["ln1"]["b"].reshape(1, D) for p in params["enc"]]),
        "eg2": jnp.stack([p["ln2"]["g"].reshape(1, D) for p in params["enc"]]),
        "ebe2": jnp.stack([p["ln2"]["b"].reshape(1, D) for p in params["enc"]]),
        "ng": params["enc_norm"]["g"].reshape(1, D),
        "nb": params["enc_norm"]["b"].reshape(1, D),
        "dwv": jnp.stack([p["ca"]["v"]["w"] for p in params["dec"]]),
        "dbv": jnp.stack([p["ca"]["v"]["b"].reshape(1, D) for p in params["dec"]]),
        "dwo": jnp.stack([p["ca"]["o"]["w"] for p in params["dec"]]),
        "dbo": jnp.stack([p["ca"]["o"]["b"].reshape(1, D) for p in params["dec"]]),
    }

    def dec_layer(p):
        sa = p["sa"]
        return {
            "wq": (sa["q"]["w"] * scale).astype(mxu_dtype),
            "bq": (sa["q"]["b"] * scale).reshape(1, D),
            "wkv": jnp.concatenate([sa["k"]["w"], sa["v"]["w"]], axis=1).astype(mxu_dtype),
            "bkv": jnp.concatenate([sa["k"]["b"], sa["v"]["b"]], axis=0).reshape(1, 2 * D),
            "wo": sa["o"]["w"].astype(mxu_dtype),
            "bo": sa["o"]["b"].reshape(1, D),
            "g1": p["ln1"]["g"].reshape(1, D), "be1": p["ln1"]["b"].reshape(1, D),
            "g2": p["ln2"]["g"].reshape(1, D), "be2": p["ln2"]["b"].reshape(1, D),
            "w1": p["ff1"]["w"].astype(mxu_dtype), "b1": p["ff1"]["b"].reshape(1, DFF),
            "w2": p["ff2"]["w"].astype(mxu_dtype), "b2": p["ff2"]["b"].reshape(1, D),
            "g3": p["ln3"]["g"].reshape(1, D), "be3": p["ln3"]["b"].reshape(1, D),
        }

    return {
        "enc": enc,
        "inp": {"w": params["inp"]["w"].reshape(1, D),
                "b": params["inp"]["b"].reshape(1, D)},
        "pe": params["pe"],
        "dec": [dec_layer(p) for p in params["dec"]],
        "dec_norm": {"g": params["dec_norm"]["g"].reshape(1, D),
                     "b": params["dec_norm"]["b"].reshape(1, D)},
        "out": {"w": params["out"]["w"].reshape(1, D),
                "b": params["out"]["b"].reshape(1, 1)},
    }


# ====================== pure-JAX reference (for checking) =================
def reference_forward(params, config, input_seq):
    """Straightforward f32 implementation of the PyTorch forward (no collapses)."""
    B, S = input_seq.shape
    D = D_MODEL

    def lin(x, p): return x @ p["w"] + p["b"]

    def ln(x, p):
        mu = x.mean(-1, keepdims=True)
        var = ((x - mu) ** 2).mean(-1, keepdims=True)
        return (x - mu) / jnp.sqrt(var + LN_EPS) * p["g"] + p["b"]

    def mha(q_in, kv_in, p):
        q = lin(q_in, p["q"]) * (1.0 / math.sqrt(HEAD_DIM))
        k = lin(kv_in, p["k"])
        v = lin(kv_in, p["v"])

        def split(t):
            return t.reshape(t.shape[0], t.shape[1], NHEAD, HEAD_DIM).transpose(0, 2, 1, 3)

        qh, kh, vh = split(q), split(k), split(v)
        s = jnp.einsum("bhqd,bhkd->bhqk", qh, kh)
        a = jax.nn.softmax(s, axis=-1)
        o = jnp.einsum("bhqk,bhkd->bhqd", a, vh).transpose(0, 2, 1, 3)
        o = o.reshape(q_in.shape[0], q_in.shape[1], D)
        return lin(o, p["o"])

    mem = lin(jax.nn.relu(lin(config, params["cfg_l1"])), params["cfg_l2"])
    src = jnp.broadcast_to(mem[:, None, :], (B, S, D))
    for p in params["enc"]:
        src = ln(src + mha(src, src, p["sa"]), p["ln1"])
        ff = lin(jax.nn.relu(lin(src, p["ff1"])), p["ff2"])
        src = ln(src + ff, p["ln2"])
    memory = ln(src, params["enc_norm"])

    x = jax.nn.relu(lin(input_seq[..., None], params["inp"])) + params["pe"][:S]
    for p in params["dec"]:
        x = ln(x + mha(x, x, p["sa"]), p["ln1"])
        x = ln(x + mha(x, memory, p["ca"]), p["ln2"])
        ff = lin(jax.nn.relu(lin(x, p["ff1"])), p["ff2"])
        x = ln(x + ff, p["ln3"])
    x = ln(x, params["dec_norm"])
    return lin(x, params["out"])[..., 0]


# ================================ main ====================================
if __name__ == "__main__":
    key = jax.random.PRNGKey(0)
    kp, kc, ks = jax.random.split(key, 3)
    raw_params = init_params(kp)
    params = prepare_params(raw_params)

    B, S = 2, 8
    config = jax.random.normal(kc, (B, CONFIG_DIM), jnp.float32)
    input_seq = jax.random.normal(ks, (B, S), jnp.float32)

    out = jax.jit(forward)(params, config, input_seq)
    out = jax.block_until_ready(out)

    assert out.shape == (B, S), out.shape
    assert bool(jnp.all(jnp.isfinite(out)))

    ref = reference_forward(raw_params, config, input_seq)
    max_err = float(jnp.max(jnp.abs(out - ref)))
    assert max_err < 0.1, f"max abs error vs f32 reference: {max_err}"
    print("KERNEL_OK")
</pallas_src>

<mosaic_0001>
module attributes {stable_mosaic.version = 11 : i64} {
  func.func @_encoder_kernel(%arg0: memref<8x5xf32, #tpu.memory_space<vmem>>, %arg1: memref<5x128xf32, #tpu.memory_space<vmem>>, %arg2: memref<1x128xf32, #tpu.memory_space<vmem>>, %arg3: memref<128x128xf32, #tpu.memory_space<vmem>>, %arg4: memref<1x128xf32, #tpu.memory_space<vmem>>, %arg5: memref<3x128x128xf32, #tpu.memory_space<vmem>>, %arg6: memref<3x1x128xf32, #tpu.memory_space<vmem>>, %arg7: memref<3x128x128xf32, #tpu.memory_space<vmem>>, %arg8: memref<3x1x128xf32, #tpu.memory_space<vmem>>, %arg9: memref<3x128x512xf32, #tpu.memory_space<vmem>>, %arg10: memref<3x1x512xf32, #tpu.memory_space<vmem>>, %arg11: memref<3x512x128xf32, #tpu.memory_space<vmem>>, %arg12: memref<3x1x128xf32, #tpu.memory_space<vmem>>, %arg13: memref<3x1x128xf32, #tpu.memory_space<vmem>>, %arg14: memref<3x1x128xf32, #tpu.memory_space<vmem>>, %arg15: memref<3x1x128xf32, #tpu.memory_space<vmem>>, %arg16: memref<3x1x128xf32, #tpu.memory_space<vmem>>, %arg17: memref<1x128xf32, #tpu.memory_space<vmem>>, %arg18: memref<1x128xf32, #tpu.memory_space<vmem>>, %arg19: memref<3x128x128xf32, #tpu.memory_space<vmem>>, %arg20: memref<3x1x128xf32, #tpu.memory_space<vmem>>, %arg21: memref<3x128x128xf32, #tpu.memory_space<vmem>>, %arg22: memref<3x1x128xf32, #tpu.memory_space<vmem>>, %arg23: memref<3x8x128xf32, #tpu.memory_space<vmem>>) attributes {dimension_semantics = [], scalar_prefetch = 0 : i64, scratch_operands = 0 : i64, tpu.core_type = #tpu.core_type<tc>} {
    %c0 = arith.constant 0 : index
    %c0_0 = arith.constant 0 : index
    %0 = vector.load %arg0[%c0, %c0_0] : memref<8x5xf32, #tpu.memory_space<vmem>>, vector<8x5xf32>
    %c0_1 = arith.constant 0 : index
    %c0_2 = arith.constant 0 : index
    %1 = vector.load %arg1[%c0_1, %c0_2] : memref<5x128xf32, #tpu.memory_space<vmem>>, vector<5x128xf32>
    %cst = arith.constant dense<0.000000e+00> : vector<8x128xf32>
    %2 = tpu.matmul %0, %1, %cst {dimension_numbers = #tpu.dot_dimension_numbers<[1], [0], [0], [1], [0, 0, 1, 1], [], []>} : vector<8x5xf32>, vector<5x128xf32>, vector<8x128xf32> -> vector<8x128xf32>
    %c0_3 = arith.constant 0 : index
    %c0_4 = arith.constant 0 : index
    %3 = vector.load %arg2[%c0_3, %c0_4] : memref<1x128xf32, #tpu.memory_space<vmem>>, vector<1x128xf32>
    %4 = vector.broadcast %3 : vector<1x128xf32> to vector<8x128xf32>
    %5 = arith.addf %2, %4 : vector<8x128xf32>
    %cst_5 = arith.constant 0.000000e+00 : f32
    %6 = vector.broadcast %cst_5 : f32 to vector<8x128xf32>
    %7 = arith.maximumf %5, %6 : vector<8x128xf32>
    %c0_6 = arith.constant 0 : index
    %c0_7 = arith.constant 0 : index
    %8 = vector.load %arg3[%c0_6, %c0_7] : memref<128x128xf32, #tpu.memory_space<vmem>>, vector<128x128xf32>
    %cst_8 = arith.constant dense<0.000000e+00> : vector<8x128xf32>
    %9 = tpu.matmul %7, %8, %cst_8 {dimension_numbers = #tpu.dot_dimension_numbers<[1], [0], [0], [1], [0, 0, 1, 1], [], []>} : vector<8x128xf32>, vector<128x128xf32>, vector<8x128xf32> -> vector<8x128xf32>
    %c0_9 = arith.constant 0 : index
    %c0_10 = arith.constant 0 : index
    %10 = vector.load %arg4[%c0_9, %c0_10] : memref<1x128xf32, #tpu.memory_space<vmem>>, vector<1x128xf32>
    %11 = vector.broadcast %10 : vector<1x128xf32> to vector<8x128xf32>
    %12 = arith.addf %9, %11 : vector<8x128xf32>
    %c0_11 = arith.constant 0 : index
    %c0_12 = arith.constant 0 : index
    %c0_13 = arith.constant 0 : index
    %13 = vector.load %arg5[%c0_11, %c0_12, %c0_13] : memref<3x128x128xf32, #tpu.memory_space<vmem>>, vector<1x128x128xf32>
    %14 = vector.shape_cast %13 : vector<1x128x128xf32> to vector<128x128xf32>
    %cst_14 = arith.constant dense<0.000000e+00> : vector<8x128xf32>
    %15 = tpu.matmul %12, %14, %cst_14 {dimension_numbers = #tpu.dot_dimension_numbers<[1], [0], [0], [1], [0, 0, 1, 1], [], []>} : vector<8x128xf32>, vector<128x128xf32>, vector<8x128xf32> -> vector<8x128xf32>
    %c0_15 = arith.constant 0 : index
    %c0_16 = arith.constant 0 : index
    %c0_17 = arith.constant 0 : index
    %16 = vector.load %arg6[%c0_15, %c0_16, %c0_17] : memref<3x1x128xf32, #tpu.memory_space<vmem>>, vector<1x1x128xf32>
    %17 = vector.shape_cast %16 : vector<1x1x128xf32> to vector<1x128xf32>
    %18 = vector.broadcast %17 : vector<1x128xf32> to vector<8x128xf32>
    %19 = arith.addf %15, %18 : vector<8x128xf32>
    %c0_18 = arith.constant 0 : index
    %c0_19 = arith.constant 0 : index
    %c0_20 = arith.constant 0 : index
    %20 = vector.load %arg7[%c0_18, %c0_19, %c0_20] : memref<3x128x128xf32, #tpu.memory_space<vmem>>, vector<1x128x128xf32>
    %21 = vector.shape_cast %20 : vector<1x128x128xf32> to vector<128x128xf32>
    %cst_21 = arith.constant dense<0.000000e+00> : vector<8x128xf32>
    %22 = tpu.matmul %19, %21, %cst_21 {dimension_numbers = #tpu.dot_dimension_numbers<[1], [0], [0], [1], [0, 0, 1, 1], [], []>} : vector<8x128xf32>, vector<128x128xf32>, vector<8x128xf32> -> vector<8x128xf32>
    %c0_22 = arith.constant 0 : index
    %c0_23 = arith.constant 0 : index
    %c0_24 = arith.constant 0 : index
    %23 = vector.load %arg8[%c0_22, %c0_23, %c0_24] : memref<3x1x128xf32, #tpu.memory_space<vmem>>, vector<1x1x128xf32>
    %24 = vector.shape_cast %23 : vector<1x1x128xf32> to vector<1x128xf32>
    %25 = vector.broadcast %24 : vector<1x128xf32> to vector<8x128xf32>
    %26 = arith.addf %22, %25 : vector<8x128xf32>
    %27 = arith.addf %12, %26 : vector<8x128xf32>
    %c0_25 = arith.constant 0 : index
    %c0_26 = arith.constant 0 : index
    %c0_27 = arith.constant 0 : index
    %28 = vector.load %arg13[%c0_25, %c0_26, %c0_27] : memref<3x1x128xf32, #tpu.memory_space<vmem>>, vector<1x1x128xf32>
    %29 = vector.shape_cast %28 : vector<1x1x128xf32> to vector<1x128xf32>
    %c0_28 = arith.constant 0 : index
    %c0_29 = arith.constant 0 : index
    %c0_30 = arith.constant 0 : index
    %30 = vector.load %arg14[%c0_28, %c0_29, %c0_30] : memref<3x1x128xf32, #tpu.memory_space<vmem>>, vector<1x1x128xf32>
    %31 = vector.shape_cast %30 : vector<1x1x128xf32> to vector<1x128xf32>
    %cst_31 = arith.constant dense<0.000000e+00> : vector<8xf32>
    %32 = vector.multi_reduction <add>, %27, %cst_31 [1] : vector<8x128xf32> to vector<8xf32>
    %33 = vector.shape_cast %32 : vector<8xf32> to vector<8x1xf32>
    %cst_32 = arith.constant 1.280000e+02 : f32
    %34 = vector.broadcast %cst_32 : f32 to vector<8x1xf32>
    %35 = arith.divf %33, %34 : vector<8x1xf32>
    %36 = vector.broadcast %35 : vector<8x1xf32> to vector<8x128xf32>
    %37 = arith.subf %27, %36 : vector<8x128xf32>
    %38 = arith.mulf %37, %37 : vector<8x128xf32>
    %cst_33 = arith.constant dense<0.000000e+00> : vector<8xf32>
    %39 = vector.multi_reduction <add>, %38, %cst_33 [1] : vector<8x128xf32> to vector<8xf32>
    %40 = vector.shape_cast %39 : vector<8xf32> to vector<8x1xf32>
    %cst_34 = arith.constant 1.280000e+02 : f32
    %41 = vector.broadcast %cst_34 : f32 to vector<8x1xf32>
    %42 = arith.divf %40, %41 : vector<8x1xf32>
    %43 = vector.broadcast %35 : vector<8x1xf32> to vector<8x128xf32>
    %44 = arith.subf %27, %43 : vector<8x128xf32>
    %cst_35 = arith.constant 9.99999974E-6 : f32
    %45 = vector.broadcast %cst_35 : f32 to vector<8x1xf32>
    %46 = arith.addf %42, %45 : vector<8x1xf32>
    %47 = math.rsqrt %46 : vector<8x1xf32>
    %48 = vector.broadcast %47 : vector<8x1xf32> to vector<8x128xf32>
    %49 = arith.mulf %44, %48 : vector<8x128xf32>
    %50 = vector.broadcast %29 : vector<1x128xf32> to vector<8x128xf32>
    %51 = arith.mulf %49, %50 : vector<8x128xf32>
    %52 = vector.broadcast %31 : vector<1x128xf32> to vector<8x128xf32>
    %53 = arith.addf %51, %52 : vector<8x128xf32>
    %c0_36 = arith.constant 0 : index
    %c0_37 = arith.constant 0 : index
    %c0_38 = arith.constant 0 : index
    %54 = vector.load %arg9[%c0_36, %c0_37, %c0_38] : memref<3x128x512xf32, #tpu.memory_space<vmem>>, vector<1x128x512xf32>
    %55 = vector.shape_cast %54 : vector<1x128x512xf32> to vector<128x512xf32>
    %cst_39 = arith.constant dense<0.000000e+00> : vector<8x512xf32>
    %56 = tpu.matmul %53, %55, %cst_39 {dimension_numbers = #tpu.dot_dimension_numbers<[1], [0], [0], [1], [0, 0, 1, 1], [], []>} : vector<8x128xf32>, vector<128x512xf32>, vector<8x512xf32> -> vector<8x512xf32>
    %c0_40 = arith.constant 0 : index
    %c0_41 = arith.constant 0 : index
    %c0_42 = arith.constant 0 : index
    %57 = vector.load %arg10[%c0_40, %c0_41, %c0_42] : memref<3x1x512xf32, #tpu.memory_space<vmem>>, vector<1x1x512xf32>
    %58 = vector.shape_cast %57 : vector<1x1x512xf32> to vector<1x512xf32>
    %59 = vector.broadcast %58 : vector<1x512xf32> to vector<8x512xf32>
    %60 = arith.addf %56, %59 : vector<8x512xf32>
    %cst_43 = arith.constant 0.000000e+00 : f32
    %61 = vector.broadcast %cst_43 : f32 to vector<8x512xf32>
    %62 = arith.maximumf %60, %61 : vector<8x512xf32>
    %c0_44 = arith.constant 0 : index
    %c0_45 = arith.constant 0 : index
    %c0_46 = arith.constant 0 : index
    %63 = vector.load %arg11[%c0_44, %c0_45, %c0_46] : memref<3x512x128xf32, #tpu.memory_space<vmem>>, vector<1x512x128xf32>
    %64 = vector.shape_cast %63 : vector<1x512x128xf32> to vector<512x128xf32>
    %cst_47 = arith.constant dense<0.000000e+00> : vector<8x128xf32>
    %65 = tpu.matmul %62, %64, %cst_47 {dimension_numbers = #tpu.dot_dimension_numbers<[1], [0], [0], [1], [0, 0, 1, 1], [], []>} : vector<8x512xf32>, vector<512x128xf32>, vector<8x128xf32> -> vector<8x128xf32>
    %c0_48 = arith.constant 0 : index
    %c0_49 = arith.constant 0 : index
    %c0_50 = arith.constant 0 : index
    %66 = vector.load %arg12[%c0_48, %c0_49, %c0_50] : memref<3x1x128xf32, #tpu.memory_space<vmem>>, vector<1x1x128xf32>
    %67 = vector.shape_cast %66 : vector<1x1x128xf32> to vector<1x128xf32>
    %68 = vector.broadcast %67 : vector<1x128xf32> to vector<8x128xf32>
    %69 = arith.addf %65, %68 : vector<8x128xf32>
    %70 = arith.addf %53, %69 : vector<8x128xf32>
    %c0_51 = arith.constant 0 : index
    %c0_52 = arith.constant 0 : index
    %c0_53 = arith.constant 0 : index
    %71 = vector.load %arg15[%c0_51, %c0_52, %c0_53] : memref<3x1x128xf32, #tpu.memory_space<vmem>>, vector<1x1x128xf32>
    %72 = vector.shape_cast %71 : vector<1x1x128xf32> to vector<1x128xf32>
    %c0_54 = arith.constant 0 : index
    %c0_55 = arith.constant 0 : index
    %c0_56 = arith.constant 0 : index
    %73 = vector.load %arg16[%c0_54, %c0_55, %c0_56] : memref<3x1x128xf32, #tpu.memory_space<vmem>>, vector<1x1x128xf32>
    %74 = vector.shape_cast %73 : vector<1x1x128xf32> to vector<1x128xf32>
    %cst_57 = arith.constant dense<0.000000e+00> : vector<8xf32>
    %75 = vector.multi_reduction <add>, %70, %cst_57 [1] : vector<8x128xf32> to vector<8xf32>
    %76 = vector.shape_cast %75 : vector<8xf32> to vector<8x1xf32>
    %cst_58 = arith.constant 1.280000e+02 : f32
    %77 = vector.broadcast %cst_58 : f32 to vector<8x1xf32>
    %78 = arith.divf %76, %77 : vector<8x1xf32>
    %79 = vector.broadcast %78 : vector<8x1xf32> to vector<8x128xf32>
    %80 = arith.subf %70, %79 : vector<8x128xf32>
    %81 = arith.mulf %80, %80 : vector<8x128xf32>
    %cst_59 = arith.constant dense<0.000000e+00> : vector<8xf32>
    %82 = vector.multi_reduction <add>, %81, %cst_59 [1] : vector<8x128xf32> to vector<8xf32>
    %83 = vector.shape_cast %82 : vector<8xf32> to vector<8x1xf32>
    %cst_60 = arith.constant 1.280000e+02 : f32
    %84 = vector.broadcast %cst_60 : f32 to vector<8x1xf32>
    %85 = arith.divf %83, %84 : vector<8x1xf32>
    %86 = vector.broadcast %78 : vector<8x1xf32> to vector<8x128xf32>
    %87 = arith.subf %70, %86 : vector<8x128xf32>
    %cst_61 = arith.constant 9.99999974E-6 : f32
    %88 = vector.broadcast %cst_61 : f32 to vector<8x1xf32>
    %89 = arith.addf %85, %88 : vector<8x1xf32>
    %90 = math.rsqrt %89 : vector<8x1xf32>
    %91 = vector.broadcast %90 : vector<8x1xf32> to vector<8x128xf32>
    %92 = arith.mulf %87, %91 : vector<8x128xf32>
    %93 = vector.broadcast %72 : vector<1x128xf32> to vector<8x128xf32>
    %94 = arith.mulf %92, %93 : vector<8x128xf32>
    %95 = vector.broadcast %74 : vector<1x128xf32> to vector<8x128xf32>
    %96 = arith.addf %94, %95 : vector<8x128xf32>
    %c1 = arith.constant 1 : index
    %c0_62 = arith.constant 0 : index
    %c0_63 = arith.constant 0 : index
    %97 = vector.load %arg5[%c1, %c0_62, %c0_63] : memref<3x128x128xf32, #tpu.memory_space<vmem>>, vector<1x128x128xf32>
    %98 = vector.shape_cast %97 : vector<1x128x128xf32> to vector<128x128xf32>
    %cst_64 = arith.constant dense<0.000000e+00> : vector<8x128xf32>
    %99 = tpu.matmul %96, %98, %cst_64 {dimension_numbers = #tpu.dot_dimension_numbers<[1], [0], [0], [1], [0, 0, 1, 1], [], []>} : vector<8x128xf32>, vector<128x128xf32>, vector<8x128xf32> -> vector<8x128xf32>
    %c1_65 = arith.constant 1 : index
    %c0_66 = arith.constant 0 : index
    %c0_67 = arith.constant 0 : index
    %100 = vector.load %arg6[%c1_65, %c0_66, %c0_67] : memref<3x1x128xf32, #tpu.memory_space<vmem>>, vector<1x1x128xf32>
    %101 = vector.shape_cast %100 : vector<1x1x128xf32> to vector<1x128xf32>
    %102 = vector.broadcast %101 : vector<1x128xf32> to vector<8x128xf32>
    %103 = arith.addf %99, %102 : vector<8x128xf32>
    %c1_68 = arith.constant 1 : index
    %c0_69 = arith.constant 0 : index
    %c0_70 = arith.constant 0 : index
    %104 = vector.load %arg7[%c1_68, %c0_69, %c0_70] : memref<3x128x128xf32, #tpu.memory_space<vmem>>, vector<1x128x128xf32>
    %105 = vector.shape_cast %104 : vector<1x128x128xf32> to vector<128x128xf32>
    %cst_71 = arith.constant dense<0.000000e+00> : vector<8x128xf32>
    %106 = tpu.matmul %103, %105, %cst_71 {dimension_numbers = #tpu.dot_dimension_numbers<[1], [0], [0], [1], [0, 0, 1, 1], [], []>} : vector<8x128xf32>, vector<128x128xf32>, vector<8x128xf32> -> vector<8x128xf32>
    %c1_72 = arith.constant 1 : index
    %c0_73 = arith.constant 0 : index
    %c0_74 = arith.constant 0 : index
    %107 = vector.load %arg8[%c1_72, %c0_73, %c0_74] : memref<3x1x128xf32, #tpu.memory_space<vmem>>, vector<1x1x128xf32>
    %108 = vector.shape_cast %107 : vector<1x1x128xf32> to vector<1x128xf32>
    %109 = vector.broadcast %108 : vector<1x128xf32> to vector<8x128xf32>
    %110 = arith.addf %106, %109 : vector<8x128xf32>
    %111 = arith.addf %96, %110 : vector<8x128xf32>
    %c1_75 = arith.constant 1 : index
    %c0_76 = arith.constant 0 : index
    %c0_77 = arith.constant 0 : index
    %112 = vector.load %arg13[%c1_75, %c0_76, %c0_77] : memref<3x1x128xf32, #tpu.memory_space<vmem>>, vector<1x1x128xf32>
    %113 = vector.shape_cast %112 : vector<1x1x128xf32> to vector<1x128xf32>
    %c1_78 = arith.constant 1 : index
    %c0_79 = arith.constant 0 : index
    %c0_80 = arith.constant 0 : index
    %114 = vector.load %arg14[%c1_78, %c0_79, %c0_80] : memref<3x1x128xf32, #tpu.memory_space<vmem>>, vector<1x1x128xf32>
    %115 = vector.shape_cast %114 : vector<1x1x128xf32> to vector<1x128xf32>
    %cst_81 = arith.constant dense<0.000000e+00> : vector<8xf32>
    %116 = vector.multi_reduction <add>, %111, %cst_81 [1] : vector<8x128xf32> to vector<8xf32>
    %117 = vector.shape_cast %116 : vector<8xf32> to vector<8x1xf32>
    %cst_82 = arith.constant 1.280000e+02 : f32
    %118 = vector.broadcast %cst_82 : f32 to vector<8x1xf32>
    %119 = arith.divf %117, %118 : vector<8x1xf32>
    %120 = vector.broadcast %119 : vector<8x1xf32> to vector<8x128xf32>
    %121 = arith.subf %111, %120 : vector<8x128xf32>
    %122 = arith.mulf %121, %121 : vector<8x128xf32>
    %cst_83 = arith.constant dense<0.000000e+00> : vector<8xf32>
    %123 = vector.multi_reduction <add>, %122, %cst_83 [1] : vector<8x128xf32> to vector<8xf32>
    %124 = vector.shape_cast %123 : vector<8xf32> to vector<8x1xf32>
    %cst_84 = arith.constant 1.280000e+02 : f32
    %125 = vector.broadcast %cst_84 : f32 to vector<8x1xf32>
    %126 = arith.divf %124, %125 : vector<8x1xf32>
    %127 = vector.broadcast %119 : vector<8x1xf32> to vector<8x128xf32>
    %128 = arith.subf %111, %127 : vector<8x128xf32>
    %cst_85 = arith.constant 9.99999974E-6 : f32
    %129 = vector.broadcast %cst_85 : f32 to vector<8x1xf32>
    %130 = arith.addf %126, %129 : vector<8x1xf32>
    %131 = math.rsqrt %130 : vector<8x1xf32>
    %132 = vector.broadcast %131 : vector<8x1xf32> to vector<8x128xf32>
    %133 = arith.mulf %128, %132 : vector<8x128xf32>
    %134 = vector.broadcast %113 : vector<1x128xf32> to vector<8x128xf32>
    %135 = arith.mulf %133, %134 : vector<8x128xf32>
    %136 = vector.broadcast %115 : vector<1x128xf32> to vector<8x128xf32>
    %137 = arith.addf %135, %136 : vector<8x128xf32>
    %c1_86 = arith.constant 1 : index
    %c0_87 = arith.constant 0 : index
    %c0_88 = arith.constant 0 : index
    %138 = vector.load %arg9[%c1_86, %c0_87, %c0_88] : memref<3x128x512xf32, #tpu.memory_space<vmem>>, vector<1x128x512xf32>
    %139 = vector.shape_cast %138 : vector<1x128x512xf32> to vector<128x512xf32>
    %cst_89 = arith.constant dense<0.000000e+00> : vector<8x512xf32>
    %140 = tpu.matmul %137, %139, %cst_89 {dimension_numbers = #tpu.dot_dimension_numbers<[1], [0], [0], [1], [0, 0, 1, 1], [], []>} : vector<8x128xf32>, vector<128x512xf32>, vector<8x512xf32> -> vector<8x512xf32>
    %c1_90 = arith.constant 1 : index
    %c0_91 = arith.constant 0 : index
    %c0_92 = arith.constant 0 : index
    %141 = vector.load %arg10[%c1_90, %c0_91, %c0_92] : memref<3x1x512xf32, #tpu.memory_space<vmem>>, vector<1x1x512xf32>
    %142 = vector.shape_cast %141 : vector<1x1x512xf32> to vector<1x512xf32>
    %143 = vector.broadcast %142 : vector<1x512xf32> to vector<8x512xf32>
    %144 = arith.addf %140, %143 : vector<8x512xf32>
    %cst_93 = arith.constant 0.000000e+00 : f32
    %145 = vector.broadcast %cst_93 : f32 to vector<8x512xf32>
    %146 = arith.maximumf %144, %145 : vector<8x512xf32>
    %c1_94 = arith.constant 1 : index
    %c0_95 = arith.constant 0 : index
    %c0_96 = arith.constant 0 : index
    %147 = vector.load %arg11[%c1_94, %c0_95, %c0_96] : memref<3x512x128xf32, #tpu.memory_space<vmem>>, vector<1x512x128xf32>
    %148 = vector.shape_cast %147 : vector<1x512x128xf32> to vector<512x128xf32>
    %cst_97 = arith.constant dense<0.000000e+00> : vector<8x128xf32>
    %149 = tpu.matmul %146, %148, %cst_97 {dimension_numbers = #tpu.dot_dimension_numbers<[1], [0], [0], [1], [0, 0, 1, 1], [], []>} : vector<8x512xf32>, vector<512x128xf32>, vector<8x128xf32> -> vector<8x128xf32>
    %c1_98 = arith.constant 1 : index
    %c0_99 = arith.constant 0 : index
    %c0_100 = arith.constant 0 : index
    %150 = vector.load %arg12[%c1_98, %c0_99, %c0_100] : memref<3x1x128xf32, #tpu.memory_space<vmem>>, vector<1x1x128xf32>
    %151 = vector.shape_cast %150 : vector<1x1x128xf32> to vector<1x128xf32>
    %152 = vector.broadcast %151 : vector<1x128xf32> to vector<8x128xf32>
    %153 = arith.addf %149, %152 : vector<8x128xf32>
    %154 = arith.addf %137, %153 : vector<8x128xf32>
    %c1_101 = arith.constant 1 : index
    %c0_102 = arith.constant 0 : index
    %c0_103 = arith.constant 0 : index
    %155 = vector.load %arg15[%c1_101, %c0_102, %c0_103] : memref<3x1x128xf32, #tpu.memory_space<vmem>>, vector<1x1x128xf32>
    %156 = vector.shape_cast %155 : vector<1x1x128xf32> to vector<1x128xf32>
    %c1_104 = arith.constant 1 : index
    %c0_105 = arith.constant 0 : index
    %c0_106 = arith.constant 0 : index
    %157 = vector.load %arg16[%c1_104, %c0_105, %c0_106] : memref<3x1x128xf32, #tpu.memory_space<vmem>>, vector<1x1x128xf32>
    %158 = vector.shape_cast %157 : vector<1x1x128xf32> to vector<1x128xf32>
    %cst_107 = arith.constant dense<0.000000e+00> : vector<8xf32>
    %159 = vector.multi_reduction <add>, %154, %cst_107 [1] : vector<8x128xf32> to vector<8xf32>
    %160 = vector.shape_cast %159 : vector<8xf32> to vector<8x1xf32>
    %cst_108 = arith.constant 1.280000e+02 : f32
    %161 = vector.broadcast %cst_108 : f32 to vector<8x1xf32>
    %162 = arith.divf %160, %161 : vector<8x1xf32>
    %163 = vector.broadcast %162 : vector<8x1xf32> to vector<8x128xf32>
    %164 = arith.subf %154, %163 : vector<8x128xf32>
    %165 = arith.mulf %164, %164 : vector<8x128xf32>
    %cst_109 = arith.constant dense<0.000000e+00> : vector<8xf32>
    %166 = vector.multi_reduction <add>, %165, %cst_109 [1] : vector<8x128xf32> to vector<8xf32>
    %167 = vector.shape_cast %166 : vector<8xf32> to vector<8x1xf32>
    %cst_110 = arith.constant 1.280000e+02 : f32
    %168 = vector.broadcast %cst_110 : f32 to vector<8x1xf32>
    %169 = arith.divf %167, %168 : vector<8x1xf32>
    %170 = vector.broadcast %162 : vector<8x1xf32> to vector<8x128xf32>
    %171 = arith.subf %154, %170 : vector<8x128xf32>
    %cst_111 = arith.constant 9.99999974E-6 : f32
    %172 = vector.broadcast %cst_111 : f32 to vector<8x1xf32>
    %173 = arith.addf %169, %172 : vector<8x1xf32>
    %174 = math.rsqrt %173 : vector<8x1xf32>
    %175 = vector.broadcast %174 : vector<8x1xf32> to vector<8x128xf32>
    %176 = arith.mulf %171, %175 : vector<8x128xf32>
    %177 = vector.broadcast %156 : vector<1x128xf32> to vector<8x128xf32>
    %178 = arith.mulf %176, %177 : vector<8x128xf32>
    %179 = vector.broadcast %158 : vector<1x128xf32> to vector<8x128xf32>
    %180 = arith.addf %178, %179 : vector<8x128xf32>
    %c2 = arith.constant 2 : index
    %c0_112 = arith.constant 0 : index
    %c0_113 = arith.constant 0 : index
    %181 = vector.load %arg5[%c2, %c0_112, %c0_113] : memref<3x128x128xf32, #tpu.memory_space<vmem>>, vector<1x128x128xf32>
    %182 = vector.shape_cast %181 : vector<1x128x128xf32> to vector<128x128xf32>
    %cst_114 = arith.constant dense<0.000000e+00> : vector<8x128xf32>
    %183 = tpu.matmul %180, %182, %cst_114 {dimension_numbers = #tpu.dot_dimension_numbers<[1], [0], [0], [1], [0, 0, 1, 1], [], []>} : vector<8x128xf32>, vector<128x128xf32>, vector<8x128xf32> -> vector<8x128xf32>
    %c2_115 = arith.constant 2 : index
    %c0_116 = arith.constant 0 : index
    %c0_117 = arith.constant 0 : index
    %184 = vector.load %arg6[%c2_115, %c0_116, %c0_117] : memref<3x1x128xf32, #tpu.memory_space<vmem>>, vector<1x1x128xf32>
    %185 = vector.shape_cast %184 : vector<1x1x128xf32> to vector<1x128xf32>
    %186 = vector.broadcast %185 : vector<1x128xf32> to vector<8x128xf32>
    %187 = arith.addf %183, %186 : vector<8x128xf32>
    %c2_118 = arith.constant 2 : index
    %c0_119 = arith.constant 0 : index
    %c0_120 = arith.constant 0 : index
    %188 = vector.load %arg7[%c2_118, %c0_119, %c0_120] : memref<3x128x128xf32, #tpu.memory_space<vmem>>, vector<1x128x128xf32>
    %189 = vector.shape_cast %188 : vector<1x128x128xf32> to vector<128x128xf32>
    %cst_121 = arith.constant dense<0.000000e+00> : vector<8x128xf32>
    %190 = tpu.matmul %187, %189, %cst_121 {dimension_numbers = #tpu.dot_dimension_numbers<[1], [0], [0], [1], [0, 0, 1, 1], [], []>} : vector<8x128xf32>, vector<128x128xf32>, vector<8x128xf32> -> vector<8x128xf32>
    %c2_122 = arith.constant 2 : index
    %c0_123 = arith.constant 0 : index
    %c0_124 = arith.constant 0 : index
    %191 = vector.load %arg8[%c2_122, %c0_123, %c0_124] : memref<3x1x128xf32, #tpu.memory_space<vmem>>, vector<1x1x128xf32>
    %192 = vector.shape_cast %191 : vector<1x1x128xf32> to vector<1x128xf32>
    %193 = vector.broadcast %192 : vector<1x128xf32> to vector<8x128xf32>
    %194 = arith.addf %190, %193 : vector<8x128xf32>
    %195 = arith.addf %180, %194 : vector<8x128xf32>
    %c2_125 = arith.constant 2 : index
    %c0_126 = arith.constant 0 : index
    %c0_127 = arith.constant 0 : index
    %196 = vector.load %arg13[%c2_125, %c0_126, %c0_127] : memref<3x1x128xf32, #tpu.memory_space<vmem>>, vector<1x1x128xf32>
    %197 = vector.shape_cast %196 : vector<1x1x128xf32> to vector<1x128xf32>
    %c2_128 = arith.constant 2 : index
    %c0_129 = arith.constant 0 : index
    %c0_130 = arith.constant 0 : index
    %198 = vector.load %arg14[%c2_128, %c0_129, %c0_130] : memref<3x1x128xf32, #tpu.memory_space<vmem>>, vector<1x1x128xf32>
    %199 = vector.shape_cast %198 : vector<1x1x128xf32> to vector<1x128xf32>
    %cst_131 = arith.constant dense<0.000000e+00> : vector<8xf32>
    %200 = vector.multi_reduction <add>, %195, %cst_131 [1] : vector<8x128xf32> to vector<8xf32>
    %201 = vector.shape_cast %200 : vector<8xf32> to vector<8x1xf32>
    %cst_132 = arith.constant 1.280000e+02 : f32
    %202 = vector.broadcast %cst_132 : f32 to vector<8x1xf32>
    %203 = arith.divf %201, %202 : vector<8x1xf32>
    %204 = vector.broadcast %203 : vector<8x1xf32> to vector<8x128xf32>
    %205 = arith.subf %195, %204 : vector<8x128xf32>
    %206 = arith.mulf %205, %205 : vector<8x128xf32>
    %cst_133 = arith.constant dense<0.000000e+00> : vector<8xf32>
    %207 = vector.multi_reduction <add>, %206, %cst_133 [1] : vector<8x128xf32> to vector<8xf32>
    %208 = vector.shape_cast %207 : vector<8xf32> to vector<8x1xf32>
    %cst_134 = arith.constant 1.280000e+02 : f32
    %209 = vector.broadcast %cst_134 : f32 to vector<8x1xf32>
    %210 = arith.divf %208, %209 : vector<8x1xf32>
    %211 = vector.broadcast %203 : vector<8x1xf32> to vector<8x128xf32>
    %212 = arith.subf %195, %211 : vector<8x128xf32>
    %cst_135 = arith.constant 9.99999974E-6 : f32
    %213 = vector.broadcast %cst_135 : f32 to vector<8x1xf32>
    %214 = arith.addf %210, %213 : vector<8x1xf32>
    %215 = math.rsqrt %214 : vector<8x1xf32>
    %216 = vector.broadcast %215 : vector<8x1xf32> to vector<8x128xf32>
    %217 = arith.mulf %212, %216 : vector<8x128xf32>
    %218 = vector.broadcast %197 : vector<1x128xf32> to vector<8x128xf32>
    %219 = arith.mulf %217, %218 : vector<8x128xf32>
    %220 = vector.broadcast %199 : vector<1x128xf32> to vector<8x128xf32>
    %221 = arith.addf %219, %220 : vector<8x128xf32>
    %c2_136 = arith.constant 2 : index
    %c0_137 = arith.constant 0 : index
    %c0_138 = arith.constant 0 : index
    %222 = vector.load %arg9[%c2_136, %c0_137, %c0_138] : memref<3x128x512xf32, #tpu.memory_space<vmem>>, vector<1x128x512xf32>
    %223 = vector.shape_cast %222 : vector<1x128x512xf32> to vector<128x512xf32>
    %cst_139 = arith.constant dense<0.000000e+00> : vector<8x512xf32>
    %224 = tpu.matmul %221, %223, %cst_139 {dimension_numbers = #tpu.dot_dimension_numbers<[1], [0], [0], [1], [0, 0, 1, 1], [], []>} : vector<8x128xf32>, vector<128x512xf32>, vector<8x512xf32> -> vector<8x512xf32>
    %c2_140 = arith.constant 2 : index
    %c0_141 = arith.constant 0 : index
    %c0_142 = arith.constant 0 : index
    %225 = vector.load %arg10[%c2_140, %c0_141, %c0_142] : memref<3x1x512xf32, #tpu.memory_space<vmem>>, vector<1x1x512xf32>
    %226 = vector.shape_cast %225 : vector<1x1x512xf32> to vector<1x512xf32>
    %227 = vector.broadcast %226 : vector<1x512xf32> to vector<8x512xf32>
    %228 = arith.addf %224, %227 : vector<8x512xf32>
    %cst_143 = arith.constant 0.000000e+00 : f32
    %229 = vector.broadcast %cst_143 : f32 to vector<8x512xf32>
    %230 = arith.maximumf %228, %229 : vector<8x512xf32>
    %c2_144 = arith.constant 2 : index
    %c0_145 = arith.constant 0 : index
    %c0_146 = arith.constant 0 : index
    %231 = vector.load %arg11[%c2_144, %c0_145, %c0_146] : memref<3x512x128xf32, #tpu.memory_space<vmem>>, vector<1x512x128xf32>
    %232 = vector.shape_cast %231 : vector<1x512x128xf32> to vector<512x128xf32>
    %cst_147 = arith.constant dense<0.000000e+00> : vector<8x128xf32>
    %233 = tpu.matmul %230, %232, %cst_147 {dimension_numbers = #tpu.dot_dimension_numbers<[1], [0], [0], [1], [0, 0, 1, 1], [], []>} : vector<8x512xf32>, vector<512x128xf32>, vector<8x128xf32> -> vector<8x128xf32>
    %c2_148 = arith.constant 2 : index
    %c0_149 = arith.constant 0 : index
    %c0_150 = arith.constant 0 : index
    %234 = vector.load %arg12[%c2_148, %c0_149, %c0_150] : memref<3x1x128xf32, #tpu.memory_space<vmem>>, vector<1x1x128xf32>
    %235 = vector.shape_cast %234 : vector<1x1x128xf32> to vector<1x128xf32>
    %236 = vector.broadcast %235 : vector<1x128xf32> to vector<8x128xf32>
    %237 = arith.addf %233, %236 : vector<8x128xf32>
    %238 = arith.addf %221, %237 : vector<8x128xf32>
    %c2_151 = arith.constant 2 : index
    %c0_152 = arith.constant 0 : index
    %c0_153 = arith.constant 0 : index
    %239 = vector.load %arg15[%c2_151, %c0_152, %c0_153] : memref<3x1x128xf32, #tpu.memory_space<vmem>>, vector<1x1x128xf32>
    %240 = vector.shape_cast %239 : vector<1x1x128xf32> to vector<1x128xf32>
    %c2_154 = arith.constant 2 : index
    %c0_155 = arith.constant 0 : index
    %c0_156 = arith.constant 0 : index
    %241 = vector.load %arg16[%c2_154, %c0_155, %c0_156] : memref<3x1x128xf32, #tpu.memory_space<vmem>>, vector<1x1x128xf32>
    %242 = vector.shape_cast %241 : vector<1x1x128xf32> to vector<1x128xf32>
    %cst_157 = arith.constant dense<0.000000e+00> : vector<8xf32>
    %243 = vector.multi_reduction <add>, %238, %cst_157 [1] : vector<8x128xf32> to vector<8xf32>
    %244 = vector.shape_cast %243 : vector<8xf32> to vector<8x1xf32>
    %cst_158 = arith.constant 1.280000e+02 : f32
    %245 = vector.broadcast %cst_158 : f32 to vector<8x1xf32>
    %246 = arith.divf %244, %245 : vector<8x1xf32>
    %247 = vector.broadcast %246 : vector<8x1xf32> to vector<8x128xf32>
    %248 = arith.subf %238, %247 : vector<8x128xf32>
    %249 = arith.mulf %248, %248 : vector<8x128xf32>
    %cst_159 = arith.constant dense<0.000000e+00> : vector<8xf32>
    %250 = vector.multi_reduction <add>, %249, %cst_159 [1] : vector<8x128xf32> to vector<8xf32>
    %251 = vector.shape_cast %250 : vector<8xf32> to vector<8x1xf32>
    %cst_160 = arith.constant 1.280000e+02 : f32
    %252 = vector.broadcast %cst_160 : f32 to vector<8x1xf32>
    %253 = arith.divf %251, %252 : vector<8x1xf32>
    %254 = vector.broadcast %246 : vector<8x1xf32> to vector<8x128xf32>
    %255 = arith.subf %238, %254 : vector<8x128xf32>
    %cst_161 = arith.constant 9.99999974E-6 : f32
    %256 = vector.broadcast %cst_161 : f32 to vector<8x1xf32>
    %257 = arith.addf %253, %256 : vector<8x1xf32>
    %258 = math.rsqrt %257 : vector<8x1xf32>
    %259 = vector.broadcast %258 : vector<8x1xf32> to vector<8x128xf32>
    %260 = arith.mulf %255, %259 : vector<8x128xf32>
    %261 = vector.broadcast %240 : vector<1x128xf32> to vector<8x128xf32>
    %262 = arith.mulf %260, %261 : vector<8x128xf32>
    %263 = vector.broadcast %242 : vector<1x128xf32> to vector<8x128xf32>
    %264 = arith.addf %262, %263 : vector<8x128xf32>
    %c0_162 = arith.constant 0 : index
    %c0_163 = arith.constant 0 : index
    %265 = vector.load %arg17[%c0_162, %c0_163] : memref<1x128xf32, #tpu.memory_space<vmem>>, vector<1x128xf32>
    %c0_164 = arith.constant 0 : index
    %c0_165 = arith.constant 0 : index
    %266 = vector.load %arg18[%c0_164, %c0_165] : memref<1x128xf32, #tpu.memory_space<vmem>>, vector<1x128xf32>
    %cst_166 = arith.constant dense<0.000000e+00> : vector<8xf32>
    %267 = vector.multi_reduction <add>, %264, %cst_166 [1] : vector<8x128xf32> to vector<8xf32>
    %268 = vector.shape_cast %267 : vector<8xf32> to vector<8x1xf32>
    %cst_167 = arith.constant 1.280000e+02 : f32
    %269 = vector.broadcast %cst_167 : f32 to vector<8x1xf32>
    %270 = arith.divf %268, %269 : vector<8x1xf32>
    %271 = vector.broadcast %270 : vector<8x1xf32> to vector<8x128xf32>
    %272 = arith.subf %264, %271 : vector<8x128xf32>
    %273 = arith.mulf %272, %272 : vector<8x128xf32>
    %cst_168 = arith.constant dense<0.000000e+00> : vector<8xf32>
    %274 = vector.multi_reduction <add>, %273, %cst_168 [1] : vector<8x128xf32> to vector<8xf32>
    %275 = vector.shape_cast %274 : vector<8xf32> to vector<8x1xf32>
    %cst_169 = arith.constant 1.280000e+02 : f32
    %276 = vector.broadcast %cst_169 : f32 to vector<8x1xf32>
    %277 = arith.divf %275, %276 : vector<8x1xf32>
    %278 = vector.broadcast %270 : vector<8x1xf32> to vector<8x128xf32>
    %279 = arith.subf %264, %278 : vector<8x128xf32>
    %cst_170 = arith.constant 9.99999974E-6 : f32
    %280 = vector.broadcast %cst_170 : f32 to vector<8x1xf32>
    %281 = arith.addf %277, %280 : vector<8x1xf32>
    %282 = math.rsqrt %281 : vector<8x1xf32>
    %283 = vector.broadcast %282 : vector<8x1xf32> to vector<8x128xf32>
    %284 = arith.mulf %279, %283 : vector<8x128xf32>
    %285 = vector.broadcast %265 : vector<1x128xf32> to vector<8x128xf32>
    %286 = arith.mulf %284, %285 : vector<8x128xf32>
    %287 = vector.broadcast %266 : vector<1x128xf32> to vector<8x128xf32>
    %288 = arith.addf %286, %287 : vector<8x128xf32>
    %c0_171 = arith.constant 0 : index
    %c0_172 = arith.constant 0 : index
    %c0_173 = arith.constant 0 : index
    %289 = vector.load %arg19[%c0_171, %c0_172, %c0_173] : memref<3x128x128xf32, #tpu.memory_space<vmem>>, vector<1x128x128xf32>
    %290 = vector.shape_cast %289 : vector<1x128x128xf32> to vector<128x128xf32>
    %cst_174 = arith.constant dense<0.000000e+00> : vector<8x128xf32>
    %291 = tpu.matmul %288, %290, %cst_174 {dimension_numbers = #tpu.dot_dimension_numbers<[1], [0], [0], [1], [0, 0, 1, 1], [], []>} : vector<8x128xf32>, vector<128x128xf32>, vector<8x128xf32> -> vector<8x128xf32>
    %c0_175 = arith.constant 0 : index
    %c0_176 = arith.constant 0 : index
    %c0_177 = arith.constant 0 : index
    %292 = vector.load %arg20[%c0_175, %c0_176, %c0_177] : memref<3x1x128xf32, #tpu.memory_space<vmem>>, vector<1x1x128xf32>
    %293 = vector.shape_cast %292 : vector<1x1x128xf32> to vector<1x128xf32>
    %294 = vector.broadcast %293 : vector<1x128xf32> to vector<8x128xf32>
    %295 = arith.addf %291, %294 : vector<8x128xf32>
    %c0_178 = arith.constant 0 : index
    %c0_179 = arith.constant 0 : index
    %c0_180 = arith.constant 0 : index
    %296 = vector.load %arg21[%c0_178, %c0_179, %c0_180] : memref<3x128x128xf32, #tpu.memory_space<vmem>>, vector<1x128x128xf32>
    %297 = vector.shape_cast %296 : vector<1x128x128xf32> to vector<128x128xf32>
    %cst_181 = arith.constant dense<0.000000e+00> : vector<8x128xf32>
    %298 = tpu.matmul %295, %297, %cst_181 {dimension_numbers = #tpu.dot_dimension_numbers<[1], [0], [0], [1], [0, 0, 1, 1], [], []>} : vector<8x128xf32>, vector<128x128xf32>, vector<8x128xf32> -> vector<8x128xf32>
    %c0_182 = arith.constant 0 : index
    %c0_183 = arith.constant 0 : index
    %c0_184 = arith.constant 0 : index
    %299 = vector.load %arg22[%c0_182, %c0_183, %c0_184] : memref<3x1x128xf32, #tpu.memory_space<vmem>>, vector<1x1x128xf32>
    %300 = vector.shape_cast %299 : vector<1x1x128xf32> to vector<1x128xf32>
    %301 = vector.broadcast %300 : vector<1x128xf32> to vector<8x128xf32>
    %302 = arith.addf %298, %301 : vector<8x128xf32>
    %c0_185 = arith.constant 0 : index
    %c0_186 = arith.constant 0 : index
    %c0_187 = arith.constant 0 : index
    %303 = vector.load %arg23[%c0_185, %c0_186, %c0_187] : memref<3x8x128xf32, #tpu.memory_space<vmem>>, vector<1x8x128xf32>
    %304 = vector.shape_cast %303 : vector<1x8x128xf32> to vector<8x128xf32>
    %305 = vector.shape_cast %302 : vector<8x128xf32> to vector<1x8x128xf32>
    tpu.vector_store %arg23[%c0_185, %c0_186, %c0_187], %305 {strides = array<i32>} : memref<3x8x128xf32, #tpu.memory_space<vmem>>, vector<1x8x128xf32>,
    %c1_188 = arith.constant 1 : index
    %c0_189 = arith.constant 0 : index
    %c0_190 = arith.constant 0 : index
    %306 = vector.load %arg19[%c1_188, %c0_189, %c0_190] : memref<3x128x128xf32, #tpu.memory_space<vmem>>, vector<1x128x128xf32>
    %307 = vector.shape_cast %306 : vector<1x128x128xf32> to vector<128x128xf32>
    %cst_191 = arith.constant dense<0.000000e+00> : vector<8x128xf32>
    %308 = tpu.matmul %288, %307, %cst_191 {dimension_numbers = #tpu.dot_dimension_numbers<[1], [0], [0], [1], [0, 0, 1, 1], [], []>} : vector<8x128xf32>, vector<128x128xf32>, vector<8x128xf32> -> vector<8x128xf32>
    %c1_192 = arith.constant 1 : index
    %c0_193 = arith.constant 0 : index
    %c0_194 = arith.constant 0 : index
    %309 = vector.load %arg20[%c1_192, %c0_193, %c0_194] : memref<3x1x128xf32, #tpu.memory_space<vmem>>, vector<1x1x128xf32>
    %310 = vector.shape_cast %309 : vector<1x1x128xf32> to vector<1x128xf32>
    %311 = vector.broadcast %310 : vector<1x128xf32> to vector<8x128xf32>
    %312 = arith.addf %308, %311 : vector<8x128xf32>
    %c1_195 = arith.constant 1 : index
    %c0_196 = arith.constant 0 : index
    %c0_197 = arith.constant 0 : index
    %313 = vector.load %arg21[%c1_195, %c0_196, %c0_197] : memref<3x128x128xf32, #tpu.memory_space<vmem>>, vector<1x128x128xf32>
    %314 = vector.shape_cast %313 : vector<1x128x128xf32> to vector<128x128xf32>
    %cst_198 = arith.constant dense<0.000000e+00> : vector<8x128xf32>
    %315 = tpu.matmul %312, %314, %cst_198 {dimension_numbers = #tpu.dot_dimension_numbers<[1], [0], [0], [1], [0, 0, 1, 1], [], []>} : vector<8x128xf32>, vector<128x128xf32>, vector<8x128xf32> -> vector<8x128xf32>
    %c1_199 = arith.constant 1 : index
    %c0_200 = arith.constant 0 : index
    %c0_201 = arith.constant 0 : index
    %316 = vector.load %arg22[%c1_199, %c0_200, %c0_201] : memref<3x1x128xf32, #tpu.memory_space<vmem>>, vector<1x1x128xf32>
    %317 = vector.shape_cast %316 : vector<1x1x128xf32> to vector<1x128xf32>
    %318 = vector.broadcast %317 : vector<1x128xf32> to vector<8x128xf32>
    %319 = arith.addf %315, %318 : vector<8x128xf32>
    %c1_202 = arith.constant 1 : index
    %c0_203 = arith.constant 0 : index
    %c0_204 = arith.constant 0 : index
    %320 = vector.load %arg23[%c1_202, %c0_203, %c0_204] : memref<3x8x128xf32, #tpu.memory_space<vmem>>, vector<1x8x128xf32>
    %321 = vector.shape_cast %320 : vector<1x8x128xf32> to vector<8x128xf32>
    %322 = vector.shape_cast %319 : vector<8x128xf32> to vector<1x8x128xf32>
    tpu.vector_store %arg23[%c1_202, %c0_203, %c0_204], %322 {strides = array<i32>} : memref<3x8x128xf32, #tpu.memory_space<vmem>>, vector<1x8x128xf32>,
    %c2_205 = arith.constant 2 : index
    %c0_206 = arith.constant 0 : index
    %c0_207 = arith.constant 0 : index
    %323 = vector.load %arg19[%c2_205, %c0_206, %c0_207] : memref<3x128x128xf32, #tpu.memory_space<vmem>>, vector<1x128x128xf32>
    %324 = vector.shape_cast %323 : vector<1x128x128xf32> to vector<128x128xf32>
    %cst_208 = arith.constant dense<0.000000e+00> : vector<8x128xf32>
    %325 = tpu.matmul %288, %324, %cst_208 {dimension_numbers = #tpu.dot_dimension_numbers<[1], [0], [0], [1], [0, 0, 1, 1], [], []>} : vector<8x128xf32>, vector<128x128xf32>, vector<8x128xf32> -> vector<8x128xf32>
    %c2_209 = arith.constant 2 : index
    %c0_210 = arith.constant 0 : index
    %c0_211 = arith.constant 0 : index
    %326 = vector.load %arg20[%c2_209, %c0_210, %c0_211] : memref<3x1x128xf32, #tpu.memory_space<vmem>>, vector<1x1x128xf32>
    %327 = vector.shape_cast %326 : vector<1x1x128xf32> to vector<1x128xf32>
    %328 = vector.broadcast %327 : vector<1x128xf32> to vector<8x128xf32>
    %329 = arith.addf %325, %328 : vector<8x128xf32>
    %c2_212 = arith.constant 2 : index
    %c0_213 = arith.constant 0 : index
    %c0_214 = arith.constant 0 : index
    %330 = vector.load %arg21[%c2_212, %c0_213, %c0_214] : memref<3x128x128xf32, #tpu.memory_space<vmem>>, vector<1x128x128xf32>
    %331 = vector.shape_cast %330 : vector<1x128x128xf32> to vector<128x128xf32>
    %cst_215 = arith.constant dense<0.000000e+00> : vector<8x128xf32>
    %332 = tpu.matmul %329, %331, %cst_215 {dimension_numbers = #tpu.dot_dimension_numbers<[1], [0], [0], [1], [0, 0, 1, 1], [], []>} : vector<8x128xf32>, vector<128x128xf32>, vector<8x128xf32> -> vector<8x128xf32>
    %c2_216 = arith.constant 2 : index
    %c0_217 = arith.constant 0 : index
    %c0_218 = arith.constant 0 : index
    %333 = vector.load %arg22[%c2_216, %c0_217, %c0_218] : memref<3x1x128xf32, #tpu.memory_space<vmem>>, vector<1x1x128xf32>
    %334 = vector.shape_cast %333 : vector<1x1x128xf32> to vector<1x128xf32>
    %335 = vector.broadcast %334 : vector<1x128xf32> to vector<8x128xf32>
    %336 = arith.addf %332, %335 : vector<8x128xf32>
    %c2_219 = arith.constant 2 : index
    %c0_220 = arith.constant 0 : index
    %c0_221 = arith.constant 0 : index
    %337 = vector.load %arg23[%c2_219, %c0_220, %c0_221] : memref<3x8x128xf32, #tpu.memory_space<vmem>>, vector<1x8x128xf32>
    %338 = vector.shape_cast %337 : vector<1x8x128xf32> to vector<8x128xf32>
    %339 = vector.shape_cast %336 : vector<8x128xf32> to vector<1x8x128xf32>
    tpu.vector_store %arg23[%c2_219, %c0_220, %c0_221], %339 {strides = array<i32>} : memref<3x8x128xf32, #tpu.memory_space<vmem>>, vector<1x8x128xf32>,
    return
  }
}

module attributes {stable_mosaic.version = 11 : i64} {
  func.func @_decoder_layer_kernel(%arg0: i32, %arg1: i32, %arg2: memref<1x8x128xf32, #tpu.memory_space<vmem>>, %arg3: memref<1x1x128xf32, #tpu.memory_space<vmem>>, %arg4: memref<128x128xbf16, #tpu.memory_space<vmem>>, %arg5: memref<1x128xf32, #tpu.memory_space<vmem>>, %arg6: memref<128x256xbf16, #tpu.memory_space<vmem>>, %arg7: memref<1x256xf32, #tpu.memory_space<vmem>>, %arg8: memref<128x128xbf16, #tpu.memory_space<vmem>>, %arg9: memref<1x128xf32, #tpu.memory_space<vmem>>, %arg10: memref<1x128xf32, #tpu.memory_space<vmem>>, %arg11: memref<1x128xf32, #tpu.memory_space<vmem>>, %arg12: memref<1x128xf32, #tpu.memory_space<vmem>>, %arg13: memref<1x128xf32, #tpu.memory_space<vmem>>, %arg14: memref<128x512xbf16, #tpu.memory_space<vmem>>, %arg15: memref<1x512xf32, #tpu.memory_space<vmem>>, %arg16: memref<512x128xbf16, #tpu.memory_space<vmem>>, %arg17: memref<1x128xf32, #tpu.memory_space<vmem>>, %arg18: memref<1x128xf32, #tpu.memory_space<vmem>>, %arg19: memref<1x128xf32, #tpu.memory_space<vmem>>, %arg20: memref<1x8x128xf32, #tpu.memory_space<vmem>>) attributes {dimension_semantics = [#tpu.dimension_semantics<parallel>, #tpu.dimension_semantics<parallel>], iteration_bounds = array<i64: 2, 1>, scalar_prefetch = 0 : i64, scratch_operands = 0 : i64, tpu.core_type = #tpu.core_type<tc>, window_params = [{transform_indices = @transform_0, window_bounds = array<i64: 1, 8, 128>}, {transform_indices = @transform_1, window_bounds = array<i64: 1, 1, 128>}, {pipeline_mode = #tpu.pipeline_mode<synchronous>, transform_indices = @transform_2, window_bounds = array<i64: 128, 128>}, {pipeline_mode = #tpu.pipeline_mode<synchronous>, transform_indices = @transform_3, window_bounds = array<i64: 1, 128>}, {pipeline_mode = #tpu.pipeline_mode<synchronous>, transform_indices = @transform_4, window_bounds = array<i64: 128, 256>}, {pipeline_mode = #tpu.pipeline_mode<synchronous>, transform_indices = @transform_5, window_bounds = array<i64: 1, 256>}, {pipeline_mode = #tpu.pipeline_mode<synchronous>, transform_indices = @transform_6, window_bounds = array<i64: 128, 128>}, {pipeline_mode = #tpu.pipeline_mode<synchronous>, transform_indices = @transform_7, window_bounds = array<i64: 1, 128>}, {pipeline_mode = #tpu.pipeline_mode<synchronous>, transform_indices = @transform_8, window_bounds = array<i64: 1, 128>}, {pipeline_mode = #tpu.pipeline_mode<synchronous>, transform_indices = @transform_9, window_bounds = array<i64: 1, 128>}, {pipeline_mode = #tpu.pipeline_mode<synchronous>, transform_indices = @transform_10, window_bounds = array<i64: 1, 128>}, {pipeline_mode = #tpu.pipeline_mode<synchronous>, transform_indices = @transform_11, window_bounds = array<i64: 1, 128>}, {pipeline_mode = #tpu.pipeline_mode<synchronous>, transform_indices = @transform_12, window_bounds = array<i64: 128, 512>}, {pipeline_mode = #tpu.pipeline_mode<synchronous>, transform_indices = @transform_13, window_bounds = array<i64: 1, 512>}, {pipeline_mode = #tpu.pipeline_mode<synchronous>, transform_indices = @transform_14, window_bounds = array<i64: 512, 128>}, {pipeline_mode = #tpu.pipeline_mode<synchronous>, transform_indices = @transform_15, window_bounds = array<i64: 1, 128>}, {pipeline_mode = #tpu.pipeline_mode<synchronous>, transform_indices = @transform_16, window_bounds = array<i64: 1, 128>}, {pipeline_mode = #tpu.pipeline_mode<synchronous>, transform_indices = @transform_17, window_bounds = array<i64: 1, 128>}, {transform_indices = @transform_18, window_bounds = array<i64: 1, 8, 128>}]} {
    %c8_i32 = arith.constant 8 : i32
    %0 = arith.muli %arg1, %c8_i32 : i32
    %1 = tpu.assume_multiple %0, 8 : i32
    %c0 = arith.constant 0 : index
    %2 = arith.index_cast %1 : i32 to index
    %c0_0 = arith.constant 0 : index
    %3 = vector.load %arg2[%c0, %2, %c0_0] : memref<1x8x128xf32, #tpu.memory_space<vmem>>, vector<1x8x128xf32>
    %4 = vector.shape_cast %3 : vector<1x8x128xf32> to vector<8x128xf32>
    %c0_1 = arith.constant 0 : index
    %c0_2 = arith.constant 0 : index
    %c0_3 = arith.constant 0 : index
    %5 = vector.load %arg2[%c0_1, %c0_2, %c0_3] : memref<1x8x128xf32, #tpu.memory_space<vmem>>, vector<1x8x128xf32>
    %6 = vector.shape_cast %5 : vector<1x8x128xf32> to vector<8x128xf32>
    %7 = arith.truncf %4 : vector<8x128xf32> to vector<8x128xbf16>
    %c0_4 = arith.constant 0 : index
    %c0_5 = arith.constant 0 : index
    %8 = vector.load %arg4[%c0_4, %c0_5] : memref<128x128xbf16, #tpu.memory_space<vmem>>, vector<128x128xbf16>
    %cst = arith.constant dense<0.000000e+00> : vector<8x128xf32>
    %9 = tpu.matmul %7, %8, %cst {dimension_numbers = #tpu.dot_dimension_numbers<[1], [0], [0], [1], [0, 0, 1, 1], [], []>} : vector<8x128xbf16>, vector<128x128xbf16>, vector<8x128xf32> -> vector<8x128xf32>
    %c0_6 = arith.constant 0 : index
    %c0_7 = arith.constant 0 : index
    %10 = vector.load %arg5[%c0_6, %c0_7] : memref<1x128xf32, #tpu.memory_space<vmem>>, vector<1x128xf32>
    %11 = vector.broadcast %10 : vector<1x128xf32> to vector<8x128xf32>
    %12 = arith.addf %9, %11 : vector<8x128xf32>
    %13 = arith.truncf %6 : vector<8x128xf32> to vector<8x128xbf16>
    %c0_8 = arith.constant 0 : index
    %c0_9 = arith.constant 0 : index
    %14 = vector.load %arg6[%c0_8, %c0_9] : memref<128x256xbf16, #tpu.memory_space<vmem>>, vector<128x256xbf16>
    %cst_10 = arith.constant dense<0.000000e+00> : vector<8x256xf32>
    %15 = tpu.matmul %13, %14, %cst_10 {dimension_numbers = #tpu.dot_dimension_numbers<[1], [0], [0], [1], [0, 0, 1, 1], [], []>} : vector<8x128xbf16>, vector<128x256xbf16>, vector<8x256xf32> -> vector<8x256xf32>
    %c0_11 = arith.constant 0 : index
    %c0_12 = arith.constant 0 : index
    %16 = vector.load %arg7[%c0_11, %c0_12] : memref<1x256xf32, #tpu.memory_space<vmem>>, vector<1x256xf32>
    %17 = vector.broadcast %16 : vector<1x256xf32> to vector<8x256xf32>
    %18 = arith.addf %15, %17 : vector<8x256xf32>
    %19 = vector.extract_strided_slice %18 {offsets = [0, 0], sizes = [8, 128], strides = [1, 1]} : vector<8x256xf32> to vector<8x128xf32>
    %20 = vector.extract_strided_slice %18 {offsets = [0, 128], sizes = [8, 128], strides = [1, 1]} : vector<8x256xf32> to vector<8x128xf32>
    %21 = tpu.transpose %19, [1, 0] : vector<8x128xf32> -> vector<128x8xf32>
    %c0_13 = arith.constant 0 : index
    %c0_14 = arith.constant 0 : index
    %22 = vector.load %arg8[%c0_13, %c0_14] : memref<128x128xbf16, #tpu.memory_space<vmem>>, vector<128x128xbf16>
    %cst_15 = arith.constant 0.000000e+00 : f32
    %23 = vector.broadcast %cst_15 : f32 to vector<8x128xf32>
    %24 = vector.extract_strided_slice %12 {offsets = [0, 0], sizes = [8, 16], strides = [1, 1]} : vector<8x128xf32> to vector<8x16xf32>
    %25 = arith.truncf %24 : vector<8x16xf32> to vector<8x16xbf16>
    %26 = vector.extract_strided_slice %21 {offsets = [0, 0], sizes = [16, 8], strides = [1, 1]} : vector<128x8xf32> to vector<16x8xf32>
    %27 = arith.truncf %26 : vector<16x8xf32> to vector<16x8xbf16>
    %cst_16 = arith.constant dense<0.000000e+00> : vector<8x8xf32>
    %28 = tpu.matmul %25, %27, %cst_16 {dimension_numbers = #tpu.dot_dimension_numbers<[1], [0], [0], [1], [0, 0, 1, 1], [], []>} : vector<8x16xbf16>, vector<16x8xbf16>, vector<8x8xf32> -> vector<8x8xf32>
    %cst_17 = arith.constant dense<0xFF800000> : vector<8xf32>
    %29 = vector.multi_reduction <maximumf>, %28, %cst_17 [1] : vector<8x8xf32> to vector<8xf32>
    %30 = vector.shape_cast %29 : vector<8xf32> to vector<8x1xf32>
    %31 = vector.broadcast %30 : vector<8x1xf32> to vector<8x8xf32>
    %32 = arith.subf %28, %31 : vector<8x8xf32>
    %33 = math.exp %32 : vector<8x8xf32>
    %cst_18 = arith.constant dense<0.000000e+00> : vector<8xf32>
    %34 = vector.multi_reduction <add>, %33, %cst_18 [1] : vector<8x8xf32> to vector<8xf32>
    %35 = vector.shape_cast %34 : vector<8xf32> to vector<8x1xf32>
    %36 = tpu.reciprocal %35 {approx = true} : vector<8x1xf32> -> vector<8x1xf32>
    %37 = vector.broadcast %36 : vector<8x1xf32> to vector<8x8xf32>
    %38 = arith.mulf %33, %37 : vector<8x8xf32>
    %39 = arith.truncf %38 : vector<8x8xf32> to vector<8x8xbf16>
    %40 = vector.extract_strided_slice %20 {offsets = [0, 0], sizes = [8, 16], strides = [1, 1]} : vector<8x128xf32> to vector<8x16xf32>
    %41 = arith.truncf %40 : vector<8x16xf32> to vector<8x16xbf16>
    %cst_19 = arith.constant dense<0.000000e+00> : vector<8x16xf32>
    %42 = tpu.matmul %39, %41, %cst_19 {dimension_numbers = #tpu.dot_dimension_numbers<[1], [0], [0], [1], [0, 0, 1, 1], [], []>} : vector<8x8xbf16>, vector<8x16xbf16>, vector<8x16xf32> -> vector<8x16xf32>
    %43 = arith.truncf %42 : vector<8x16xf32> to vector<8x16xbf16>
    %44 = vector.extract_strided_slice %22 {offsets = [0, 0], sizes = [16, 128], strides = [1, 1]} : vector<128x128xbf16> to vector<16x128xbf16>
    %cst_20 = arith.constant dense<0.000000e+00> : vector<8x128xf32>
    %45 = tpu.matmul %43, %44, %cst_20 {dimension_numbers = #tpu.dot_dimension_numbers<[1], [0], [0], [1], [0, 0, 1, 1], [], []>} : vector<8x16xbf16>, vector<16x128xbf16>, vector<8x128xf32> -> vector<8x128xf32>
    %46 = arith.addf %23, %45 : vector<8x128xf32>
    %47 = vector.extract_strided_slice %12 {offsets = [0, 16], sizes = [8, 16], strides = [1, 1]} : vector<8x128xf32> to vector<8x16xf32>
    %48 = arith.truncf %47 : vector<8x16xf32> to vector<8x16xbf16>
    %49 = vector.extract_strided_slice %21 {offsets = [16, 0], sizes = [16, 8], strides = [1, 1]} : vector<128x8xf32> to vector<16x8xf32>
    %50 = arith.truncf %49 : vector<16x8xf32> to vector<16x8xbf16>
    %cst_21 = arith.constant dense<0.000000e+00> : vector<8x8xf32>
    %51 = tpu.matmul %48, %50, %cst_21 {dimension_numbers = #tpu.dot_dimension_numbers<[1], [0], [0], [1], [0, 0, 1, 1], [], []>} : vector<8x16xbf16>, vector<16x8xbf16>, vector<8x8xf32> -> vector<8x8xf32>
    %cst_22 = arith.constant dense<0xFF800000> : vector<8xf32>
    %52 = vector.multi_reduction <maximumf>, %51, %cst_22 [1] : vector<8x8xf32> to vector<8xf32>
    %53 = vector.shape_cast %52 : vector<8xf32> to vector<8x1xf32>
    %54 = vector.broadcast %53 : vector<8x1xf32> to vector<8x8xf32>
    %55 = arith.subf %51, %54 : vector<8x8xf32>
    %56 = math.exp %55 : vector<8x8xf32>
    %cst_23 = arith.constant dense<0.000000e+00> : vector<8xf32>
    %57 = vector.multi_reduction <add>, %56, %cst_23 [1] : vector<8x8xf32> to vector<8xf32>
    %58 = vector.shape_cast %57 : vector<8xf32> to vector<8x1xf32>
    %59 = tpu.reciprocal %58 {approx = true} : vector<8x1xf32> -> vector<8x1xf32>
    %60 = vector.broadcast %59 : vector<8x1xf32> to vector<8x8xf32>
    %61 = arith.mulf %56, %60 : vector<8x8xf32>
    %62 = arith.truncf %61 : vector<8x8xf32> to vector<8x8xbf16>
    %63 = vector.extract_strided_slice %20 {offsets = [0, 16], sizes = [8, 16], strides = [1, 1]} : vector<8x128xf32> to vector<8x16xf32>
    %64 = arith.truncf %63 : vector<8x16xf32> to vector<8x16xbf16>
    %cst_24 = arith.constant dense<0.000000e+00> : vector<8x16xf32>
    %65 = tpu.matmul %62, %64, %cst_24 {dimension_numbers = #tpu.dot_dimension_numbers<[1], [0], [0], [1], [0, 0, 1, 1], [], []>} : vector<8x8xbf16>, vector<8x16xbf16>, vector<8x16xf32> -> vector<8x16xf32>
    %66 = arith.truncf %65 : vector<8x16xf32> to vector<8x16xbf16>
    %67 = vector.extract_strided_slice %22 {offsets = [16, 0], sizes = [16, 128], strides = [1, 1]} : vector<128x128xbf16> to vector<16x128xbf16>
    %cst_25 = arith.constant dense<0.000000e+00> : vector<8x128xf32>
    %68 = tpu.matmul %66, %67, %cst_25 {dimension_numbers = #tpu.dot_dimension_numbers<[1], [0], [0], [1], [0, 0, 1, 1], [], []>} : vector<8x16xbf16>, vector<16x128xbf16>, vector<8x128xf32> -> vector<8x128xf32>
    %69 = arith.addf %46, %68 : vector<8x128xf32>
    %70 = vector.extract_strided_slice %12 {offsets = [0, 32], sizes = [8, 16], strides = [1, 1]} : vector<8x128xf32> to vector<8x16xf32>
    %71 = arith.truncf %70 : vector<8x16xf32> to vector<8x16xbf16>
    %72 = vector.extract_strided_slice %21 {offsets = [32, 0], sizes = [16, 8], strides = [1, 1]} : vector<128x8xf32> to vector<16x8xf32>
    %73 = arith.truncf %72 : vector<16x8xf32> to vector<16x8xbf16>
    %cst_26 = arith.constant dense<0.000000e+00> : vector<8x8xf32>
    %74 = tpu.matmul %71, %73, %cst_26 {dimension_numbers = #tpu.dot_dimension_numbers<[1], [0], [0], [1], [0, 0, 1, 1], [], []>} : vector<8x16xbf16>, vector<16x8xbf16>, vector<8x8xf32> -> vector<8x8xf32>
    %cst_27 = arith.constant dense<0xFF800000> : vector<8xf32>
    %75 = vector.multi_reduction <maximumf>, %74, %cst_27 [1] : vector<8x8xf32> to vector<8xf32>
    %76 = vector.shape_cast %75 : vector<8xf32> to vector<8x1xf32>
    %77 = vector.broadcast %76 : vector<8x1xf32> to vector<8x8xf32>
    %78 = arith.subf %74, %77 : vector<8x8xf32>
    %79 = math.exp %78 : vector<8x8xf32>
    %cst_28 = arith.constant dense<0.000000e+00> : vector<8xf32>
    %80 = vector.multi_reduction <add>, %79, %cst_28 [1] : vector<8x8xf32> to vector<8xf32>
    %81 = vector.shape_cast %80 : vector<8xf32> to vector<8x1xf32>
    %82 = tpu.reciprocal %81 {approx = true} : vector<8x1xf32> -> vector<8x1xf32>
    %83 = vector.broadcast %82 : vector<8x1xf32> to vector<8x8xf32>
    %84 = arith.mulf %79, %83 : vector<8x8xf32>
    %85 = arith.truncf %84 : vector<8x8xf32> to vector<8x8xbf16>
    %86 = vector.extract_strided_slice %20 {offsets = [0, 32], sizes = [8, 16], strides = [1, 1]} : vector<8x128xf32> to vector<8x16xf32>
    %87 = arith.truncf %86 : vector<8x16xf32> to vector<8x16xbf16>
    %cst_29 = arith.constant dense<0.000000e+00> : vector<8x16xf32>
    %88 = tpu.matmul %85, %87, %cst_29 {dimension_numbers = #tpu.dot_dimension_numbers<[1], [0], [0], [1], [0, 0, 1, 1], [], []>} : vector<8x8xbf16>, vector<8x16xbf16>, vector<8x16xf32> -> vector<8x16xf32>
    %89 = arith.truncf %88 : vector<8x16xf32> to vector<8x16xbf16>
    %90 = vector.extract_strided_slice %22 {offsets = [32, 0], sizes = [16, 128], strides = [1, 1]} : vector<128x128xbf16> to vector<16x128xbf16>
    %cst_30 = arith.constant dense<0.000000e+00> : vector<8x128xf32>
    %91 = tpu.matmul %89, %90, %cst_30 {dimension_numbers = #tpu.dot_dimension_numbers<[1], [0], [0], [1], [0, 0, 1, 1], [], []>} : vector<8x16xbf16>, vector<16x128xbf16>, vector<8x128xf32> -> vector<8x128xf32>
    %92 = arith.addf %69, %91 : vector<8x128xf32>
    %93 = vector.extract_strided_slice %12 {offsets = [0, 48], sizes = [8, 16], strides = [1, 1]} : vector<8x128xf32> to vector<8x16xf32>
    %94 = arith.truncf %93 : vector<8x16xf32> to vector<8x16xbf16>
    %95 = vector.extract_strided_slice %21 {offsets = [48, 0], sizes = [16, 8], strides = [1, 1]} : vector<128x8xf32> to vector<16x8xf32>
    %96 = arith.truncf %95 : vector<16x8xf32> to vector<16x8xbf16>
    %cst_31 = arith.constant dense<0.000000e+00> : vector<8x8xf32>
    %97 = tpu.matmul %94, %96, %cst_31 {dimension_numbers = #tpu.dot_dimension_numbers<[1], [0], [0], [1], [0, 0, 1, 1], [], []>} : vector<8x16xbf16>, vector<16x8xbf16>, vector<8x8xf32> -> vector<8x8xf32>
    %cst_32 = arith.constant dense<0xFF800000> : vector<8xf32>
    %98 = vector.multi_reduction <maximumf>, %97, %cst_32 [1] : vector<8x8xf32> to vector<8xf32>
    %99 = vector.shape_cast %98 : vector<8xf32> to vector<8x1xf32>
    %100 = vector.broadcast %99 : vector<8x1xf32> to vector<8x8xf32>
    %101 = arith.subf %97, %100 : vector<8x8xf32>
    %102 = math.exp %101 : vector<8x8xf32>
    %cst_33 = arith.constant dense<0.000000e+00> : vector<8xf32>
    %103 = vector.multi_reduction <add>, %102, %cst_33 [1] : vector<8x8xf32> to vector<8xf32>
    %104 = vector.shape_cast %103 : vector<8xf32> to vector<8x1xf32>
    %105 = tpu.reciprocal %104 {approx = true} : vector<8x1xf32> -> vector<8x1xf32>
    %106 = vector.broadcast %105 : vector<8x1xf32> to vector<8x8xf32>
    %107 = arith.mulf %102, %106 : vector<8x8xf32>
    %108 = arith.truncf %107 : vector<8x8xf32> to vector<8x8xbf16>
    %109 = vector.extract_strided_slice %20 {offsets = [0, 48], sizes = [8, 16], strides = [1, 1]} : vector<8x128xf32> to vector<8x16xf32>
    %110 = arith.truncf %109 : vector<8x16xf32> to vector<8x16xbf16>
    %cst_34 = arith.constant dense<0.000000e+00> : vector<8x16xf32>
    %111 = tpu.matmul %108, %110, %cst_34 {dimension_numbers = #tpu.dot_dimension_numbers<[1], [0], [0], [1], [0, 0, 1, 1], [], []>} : vector<8x8xbf16>, vector<8x16xbf16>, vector<8x16xf32> -> vector<8x16xf32>
    %112 = arith.truncf %111 : vector<8x16xf32> to vector<8x16xbf16>
    %113 = vector.extract_strided_slice %22 {offsets = [48, 0], sizes = [16, 128], strides = [1, 1]} : vector<128x128xbf16> to vector<16x128xbf16>
    %cst_35 = arith.constant dense<0.000000e+00> : vector<8x128xf32>
    %114 = tpu.matmul %112, %113, %cst_35 {dimension_numbers = #tpu.dot_dimension_numbers<[1], [0], [0], [1], [0, 0, 1, 1], [], []>} : vector<8x16xbf16>, vector<16x128xbf16>, vector<8x128xf32> -> vector<8x128xf32>
    %115 = arith.addf %92, %114 : vector<8x128xf32>
    %116 = vector.extract_strided_slice %12 {offsets = [0, 64], sizes = [8, 16], strides = [1, 1]} : vector<8x128xf32> to vector<8x16xf32>
    %117 = arith.truncf %116 : vector<8x16xf32> to vector<8x16xbf16>
    %118 = vector.extract_strided_slice %21 {offsets = [64, 0], sizes = [16, 8], strides = [1, 1]} : vector<128x8xf32> to vector<16x8xf32>
    %119 = arith.truncf %118 : vector<16x8xf32> to vector<16x8xbf16>
    %cst_36 = arith.constant dense<0.000000e+00> : vector<8x8xf32>
    %120 = tpu.matmul %117, %119, %cst_36 {dimension_numbers = #tpu.dot_dimension_numbers<[1], [0], [0], [1], [0, 0, 1, 1], [], []>} : vector<8x16xbf16>, vector<16x8xbf16>, vector<8x8xf32> -> vector<8x8xf32>
    %cst_37 = arith.constant dense<0xFF800000> : vector<8xf32>
    %121 = vector.multi_reduction <maximumf>, %120, %cst_37 [1] : vector<8x8xf32> to vector<8xf32>
    %122 = vector.shape_cast %121 : vector<8xf32> to vector<8x1xf32>
    %123 = vector.broadcast %122 : vector<8x1xf32> to vector<8x8xf32>
    %124 = arith.subf %120, %123 : vector<8x8xf32>
    %125 = math.exp %124 : vector<8x8xf32>
    %cst_38 = arith.constant dense<0.000000e+00> : vector<8xf32>
    %126 = vector.multi_reduction <add>, %125, %cst_38 [1] : vector<8x8xf32> to vector<8xf32>
    %127 = vector.shape_cast %126 : vector<8xf32> to vector<8x1xf32>
    %128 = tpu.reciprocal %127 {approx = true} : vector<8x1xf32> -> vector<8x1xf32>
    %129 = vector.broadcast %128 : vector<8x1xf32> to vector<8x8xf32>
    %130 = arith.mulf %125, %129 : vector<8x8xf32>
    %131 = arith.truncf %130 : vector<8x8xf32> to vector<8x8xbf16>
    %132 = vector.extract_strided_slice %20 {offsets = [0, 64], sizes = [8, 16], strides = [1, 1]} : vector<8x128xf32> to vector<8x16xf32>
    %133 = arith.truncf %132 : vector<8x16xf32> to vector<8x16xbf16>
    %cst_39 = arith.constant dense<0.000000e+00> : vector<8x16xf32>
    %134 = tpu.matmul %131, %133, %cst_39 {dimension_numbers = #tpu.dot_dimension_numbers<[1], [0], [0], [1], [0, 0, 1, 1], [], []>} : vector<8x8xbf16>, vector<8x16xbf16>, vector<8x16xf32> -> vector<8x16xf32>
    %135 = arith.truncf %134 : vector<8x16xf32> to vector<8x16xbf16>
    %136 = vector.extract_strided_slice %22 {offsets = [64, 0], sizes = [16, 128], strides = [1, 1]} : vector<128x128xbf16> to vector<16x128xbf16>
    %cst_40 = arith.constant dense<0.000000e+00> : vector<8x128xf32>
    %137 = tpu.matmul %135, %136, %cst_40 {dimension_numbers = #tpu.dot_dimension_numbers<[1], [0], [0], [1], [0, 0, 1, 1], [], []>} : vector<8x16xbf16>, vector<16x128xbf16>, vector<8x128xf32> -> vector<8x128xf32>
    %138 = arith.addf %115, %137 : vector<8x128xf32>
    %139 = vector.extract_strided_slice %12 {offsets = [0, 80], sizes = [8, 16], strides = [1, 1]} : vector<8x128xf32> to vector<8x16xf32>
    %140 = arith.truncf %139 : vector<8x16xf32> to vector<8x16xbf16>
    %141 = vector.extract_strided_slice %21 {offsets = [80, 0], sizes = [16, 8], strides = [1, 1]} : vector<128x8xf32> to vector<16x8xf32>
    %142 = arith.truncf %141 : vector<16x8xf32> to vector<16x8xbf16>
    %cst_41 = arith.constant dense<0.000000e+00> : vector<8x8xf32>
    %143 = tpu.matmul %140, %142, %cst_41 {dimension_numbers = #tpu.dot_dimension_numbers<[1], [0], [0], [1], [0, 0, 1, 1], [], []>} : vector<8x16xbf16>, vector<16x8xbf16>, vector<8x8xf32> -> vector<8x8xf32>
    %cst_42 = arith.constant dense<0xFF800000> : vector<8xf32>
    %144 = vector.multi_reduction <maximumf>, %143, %cst_42 [1] : vector<8x8xf32> to vector<8xf32>
    %145 = vector.shape_cast %144 : vector<8xf32> to vector<8x1xf32>
    %146 = vector.broadcast %145 : vector<8x1xf32> to vector<8x8xf32>
    %147 = arith.subf %143, %146 : vector<8x8xf32>
    %148 = math.exp %147 : vector<8x8xf32>
    %cst_43 = arith.constant dense<0.000000e+00> : vector<8xf32>
    %149 = vector.multi_reduction <add>, %148, %cst_43 [1] : vector<8x8xf32> to vector<8xf32>
    %150 = vector.shape_cast %149 : vector<8xf32> to vector<8x1xf32>
    %151 = tpu.reciprocal %150 {approx = true} : vector<8x1xf32> -> vector<8x1xf32>
    %152 = vector.broadcast %151 : vector<8x1xf32> to vector<8x8xf32>
    %153 = arith.mulf %148, %152 : vector<8x8xf32>
    %154 = arith.truncf %153 : vector<8x8xf32> to vector<8x8xbf16>
    %155 = vector.extract_strided_slice %20 {offsets = [0, 80], sizes = [8, 16], strides = [1, 1]} : vector<8x128xf32> to vector<8x16xf32>
    %156 = arith.truncf %155 : vector<8x16xf32> to vector<8x16xbf16>
    %cst_44 = arith.constant dense<0.000000e+00> : vector<8x16xf32>
    %157 = tpu.matmul %154, %156, %cst_44 {dimension_numbers = #tpu.dot_dimension_numbers<[1], [0], [0], [1], [0, 0, 1, 1], [], []>} : vector<8x8xbf16>, vector<8x16xbf16>, vector<8x16xf32> -> vector<8x16xf32>
    %158 = arith.truncf %157 : vector<8x16xf32> to vector<8x16xbf16>
    %159 = vector.extract_strided_slice %22 {offsets = [80, 0], sizes = [16, 128], strides = [1, 1]} : vector<128x128xbf16> to vector<16x128xbf16>
    %cst_45 = arith.constant dense<0.000000e+00> : vector<8x128xf32>
    %160 = tpu.matmul %158, %159, %cst_45 {dimension_numbers = #tpu.dot_dimension_numbers<[1], [0], [0], [1], [0, 0, 1, 1], [], []>} : vector<8x16xbf16>, vector<16x128xbf16>, vector<8x128xf32> -> vector<8x128xf32>
    %161 = arith.addf %138, %160 : vector<8x128xf32>
    %162 = vector.extract_strided_slice %12 {offsets = [0, 96], sizes = [8, 16], strides = [1, 1]} : vector<8x128xf32> to vector<8x16xf32>
    %163 = arith.truncf %162 : vector<8x16xf32> to vector<8x16xbf16>
    %164 = vector.extract_strided_slice %21 {offsets = [96, 0], sizes = [16, 8], strides = [1, 1]} : vector<128x8xf32> to vector<16x8xf32>
    %165 = arith.truncf %164 : vector<16x8xf32> to vector<16x8xbf16>
    %cst_46 = arith.constant dense<0.000000e+00> : vector<8x8xf32>
    %166 = tpu.matmul %163, %165, %cst_46 {dimension_numbers = #tpu.dot_dimension_numbers<[1], [0], [0], [1], [0, 0, 1, 1], [], []>} : vector<8x16xbf16>, vector<16x8xbf16>, vector<8x8xf32> -> vector<8x8xf32>
    %cst_47 = arith.constant dense<0xFF800000> : vector<8xf32>
    %167 = vector.multi_reduction <maximumf>, %166, %cst_47 [1] : vector<8x8xf32> to vector<8xf32>
    %168 = vector.shape_cast %167 : vector<8xf32> to vector<8x1xf32>
    %169 = vector.broadcast %168 : vector<8x1xf32> to vector<8x8xf32>
    %170 = arith.subf %166, %169 : vector<8x8xf32>
    %171 = math.exp %170 : vector<8x8xf32>
    %cst_48 = arith.constant dense<0.000000e+00> : vector<8xf32>
    %172 = vector.multi_reduction <add>, %171, %cst_48 [1] : vector<8x8xf32> to vector<8xf32>
    %173 = vector.shape_cast %172 : vector<8xf32> to vector<8x1xf32>
    %174 = tpu.reciprocal %173 {approx = true} : vector<8x1xf32> -> vector<8x1xf32>
    %175 = vector.broadcast %174 : vector<8x1xf32> to vector<8x8xf32>
    %176 = arith.mulf %171, %175 : vector<8x8xf32>
    %177 = arith.truncf %176 : vector<8x8xf32> to vector<8x8xbf16>
    %178 = vector.extract_strided_slice %20 {offsets = [0, 96], sizes = [8, 16], strides = [1, 1]} : vector<8x128xf32> to vector<8x16xf32>
    %179 = arith.truncf %178 : vector<8x16xf32> to vector<8x16xbf16>
    %cst_49 = arith.constant dense<0.000000e+00> : vector<8x16xf32>
    %180 = tpu.matmul %177, %179, %cst_49 {dimension_numbers = #tpu.dot_dimension_numbers<[1], [0], [0], [1], [0, 0, 1, 1], [], []>} : vector<8x8xbf16>, vector<8x16xbf16>, vector<8x16xf32> -> vector<8x16xf32>
    %181 = arith.truncf %180 : vector<8x16xf32> to vector<8x16xbf16>
    %182 = vector.extract_strided_slice %22 {offsets = [96, 0], sizes = [16, 128], strides = [1, 1]} : vector<128x128xbf16> to vector<16x128xbf16>
    %cst_50 = arith.constant dense<0.000000e+00> : vector<8x128xf32>
    %183 = tpu.matmul %181, %182, %cst_50 {dimension_numbers = #tpu.dot_dimension_numbers<[1], [0], [0], [1], [0, 0, 1, 1], [], []>} : vector<8x16xbf16>, vector<16x128xbf16>, vector<8x128xf32> -> vector<8x128xf32>
    %184 = arith.addf %161, %183 : vector<8x128xf32>
    %185 = vector.extract_strided_slice %12 {offsets = [0, 112], sizes = [8, 16], strides = [1, 1]} : vector<8x128xf32> to vector<8x16xf32>
    %186 = arith.truncf %185 : vector<8x16xf32> to vector<8x16xbf16>
    %187 = vector.extract_strided_slice %21 {offsets = [112, 0], sizes = [16, 8], strides = [1, 1]} : vector<128x8xf32> to vector<16x8xf32>
    %188 = arith.truncf %187 : vector<16x8xf32> to vector<16x8xbf16>
    %cst_51 = arith.constant dense<0.000000e+00> : vector<8x8xf32>
    %189 = tpu.matmul %186, %188, %cst_51 {dimension_numbers = #tpu.dot_dimension_numbers<[1], [0], [0], [1], [0, 0, 1, 1], [], []>} : vector<8x16xbf16>, vector<16x8xbf16>, vector<8x8xf32> -> vector<8x8xf32>
    %cst_52 = arith.constant dense<0xFF800000> : vector<8xf32>
    %190 = vector.multi_reduction <maximumf>, %189, %cst_52 [1] : vector<8x8xf32> to vector<8xf32>
    %191 = vector.shape_cast %190 : vector<8xf32> to vector<8x1xf32>
    %192 = vector.broadcast %191 : vector<8x1xf32> to vector<8x8xf32>
    %193 = arith.subf %189, %192 : vector<8x8xf32>
    %194 = math.exp %193 : vector<8x8xf32>
    %cst_53 = arith.constant dense<0.000000e+00> : vector<8xf32>
    %195 = vector.multi_reduction <add>, %194, %cst_53 [1] : vector<8x8xf32> to vector<8xf32>
    %196 = vector.shape_cast %195 : vector<8xf32> to vector<8x1xf32>
    %197 = tpu.reciprocal %196 {approx = true} : vector<8x1xf32> -> vector<8x1xf32>
    %198 = vector.broadcast %197 : vector<8x1xf32> to vector<8x8xf32>
    %199 = arith.mulf %194, %198 : vector<8x8xf32>
    %200 = arith.truncf %199 : vector<8x8xf32> to vector<8x8xbf16>
    %201 = vector.extract_strided_slice %20 {offsets = [0, 112], sizes = [8, 16], strides = [1, 1]} : vector<8x128xf32> to vector<8x16xf32>
    %202 = arith.truncf %201 : vector<8x16xf32> to vector<8x16xbf16>
    %cst_54 = arith.constant dense<0.000000e+00> : vector<8x16xf32>
    %203 = tpu.matmul %200, %202, %cst_54 {dimension_numbers = #tpu.dot_dimension_numbers<[1], [0], [0], [1], [0, 0, 1, 1], [], []>} : vector<8x8xbf16>, vector<8x16xbf16>, vector<8x16xf32> -> vector<8x16xf32>
    %204 = arith.truncf %203 : vector<8x16xf32> to vector<8x16xbf16>
    %205 = vector.extract_strided_slice %22 {offsets = [112, 0], sizes = [16, 128], strides = [1, 1]} : vector<128x128xbf16> to vector<16x128xbf16>
    %cst_55 = arith.constant dense<0.000000e+00> : vector<8x128xf32>
    %206 = tpu.matmul %204, %205, %cst_55 {dimension_numbers = #tpu.dot_dimension_numbers<[1], [0], [0], [1], [0, 0, 1, 1], [], []>} : vector<8x16xbf16>, vector<16x128xbf16>, vector<8x128xf32> -> vector<8x128xf32>
    %207 = arith.addf %184, %206 : vector<8x128xf32>
    %208 = arith.addf %4, %207 : vector<8x128xf32>
    %c0_56 = arith.constant 0 : index
    %c0_57 = arith.constant 0 : index
    %209 = vector.load %arg9[%c0_56, %c0_57] : memref<1x128xf32, #tpu.memory_space<vmem>>, vector<1x128xf32>
    %210 = vector.broadcast %209 : vector<1x128xf32> to vector<8x128xf32>
    %211 = arith.addf %208, %210 : vector<8x128xf32>
    %c0_58 = arith.constant 0 : index
    %c0_59 = arith.constant 0 : index
    %212 = vector.load %arg10[%c0_58, %c0_59] : memref<1x128xf32, #tpu.memory_space<vmem>>, vector<1x128xf32>
    %c0_60 = arith.constant 0 : index
    %c0_61 = arith.constant 0 : index
    %213 = vector.load %arg11[%c0_60, %c0_61] : memref<1x128xf32, #tpu.memory_space<vmem>>, vector<1x128xf32>
    %cst_62 = arith.constant dense<0.000000e+00> : vector<8xf32>
    %214 = vector.multi_reduction <add>, %211, %cst_62 [1] : vector<8x128xf32> to vector<8xf32>
    %215 = vector.shape_cast %214 : vector<8xf32> to vector<8x1xf32>
    %cst_63 = arith.constant 1.280000e+02 : f32
    %216 = vector.broadcast %cst_63 : f32 to vector<8x1xf32>
    %217 = arith.divf %215, %216 : vector<8x1xf32>
    %218 = vector.broadcast %217 : vector<8x1xf32> to vector<8x128xf32>
    %219 = arith.subf %211, %218 : vector<8x128xf32>
    %220 = arith.mulf %219, %219 : vector<8x128xf32>
    %cst_64 = arith.constant dense<0.000000e+00> : vector<8xf32>
    %221 = vector.multi_reduction <add>, %220, %cst_64 [1] : vector<8x128xf32> to vector<8xf32>
    %222 = vector.shape_cast %221 : vector<8xf32> to vector<8x1xf32>
    %cst_65 = arith.constant 1.280000e+02 : f32
    %223 = vector.broadcast %cst_65 : f32 to vector<8x1xf32>
    %224 = arith.divf %222, %223 : vector<8x1xf32>
    %225 = vector.broadcast %217 : vector<8x1xf32> to vector<8x128xf32>
    %226 = arith.subf %211, %225 : vector<8x128xf32>
    %cst_66 = arith.constant 9.99999974E-6 : f32
    %227 = vector.broadcast %cst_66 : f32 to vector<8x1xf32>
    %228 = arith.addf %224, %227 : vector<8x1xf32>
    %229 = math.rsqrt %228 : vector<8x1xf32>
    %230 = vector.broadcast %229 : vector<8x1xf32> to vector<8x128xf32>
    %231 = arith.mulf %226, %230 : vector<8x128xf32>
    %232 = vector.broadcast %212 : vector<1x128xf32> to vector<8x128xf32>
    %233 = arith.mulf %231, %232 : vector<8x128xf32>
    %234 = vector.broadcast %213 : vector<1x128xf32> to vector<8x128xf32>
    %235 = arith.addf %233, %234 : vector<8x128xf32>
    %c0_67 = arith.constant 0 : index
    %c0_68 = arith.constant 0 : index
    %c0_69 = arith.constant 0 : index
    %236 = vector.load %arg3[%c0_67, %c0_68, %c0_69] : memref<1x1x128xf32, #tpu.memory_space<vmem>>, vector<1x1x128xf32>
    %237 = vector.shape_cast %236 : vector<1x1x128xf32> to vector<1x128xf32>
    %238 = vector.broadcast %237 : vector<1x128xf32> to vector<8x128xf32>
    %239 = arith.addf %235, %238 : vector<8x128xf32>
    %c0_70 = arith.constant 0 : index
    %c0_71 = arith.constant 0 : index
    %240 = vector.load %arg12[%c0_70, %c0_71] : memref<1x128xf32, #tpu.memory_space<vmem>>, vector<1x128xf32>
    %c0_72 = arith.constant 0 : index
    %c0_73 = arith.constant 0 : index
    %241 = vector.load %arg13[%c0_72, %c0_73] : memref<1x128xf32, #tpu.memory_space<vmem>>, vector<1x128xf32>
    %cst_74 = arith.constant dense<0.000000e+00> : vector<8xf32>
    %242 = vector.multi_reduction <add>, %239, %cst_74 [1] : vector<8x128xf32> to vector<8xf32>
    %243 = vector.shape_cast %242 : vector<8xf32> to vector<8x1xf32>
    %cst_75 = arith.constant 1.280000e+02 : f32
    %244 = vector.broadcast %cst_75 : f32 to vector<8x1xf32>
    %245 = arith.divf %243, %244 : vector<8x1xf32>
    %246 = vector.broadcast %245 : vector<8x1xf32> to vector<8x128xf32>
    %247 = arith.subf %239, %246 : vector<8x128xf32>
    %248 = arith.mulf %247, %247 : vector<8x128xf32>
    %cst_76 = arith.constant dense<0.000000e+00> : vector<8xf32>
    %249 = vector.multi_reduction <add>, %248, %cst_76 [1] : vector<8x128xf32> to vector<8xf32>
    %250 = vector.shape_cast %249 : vector<8xf32> to vector<8x1xf32>
    %cst_77 = arith.constant 1.280000e+02 : f32
    %251 = vector.broadcast %cst_77 : f32 to vector<8x1xf32>
    %252 = arith.divf %250, %251 : vector<8x1xf32>
    %253 = vector.broadcast %245 : vector<8x1xf32> to vector<8x128xf32>
    %254 = arith.subf %239, %253 : vector<8x128xf32>
    %cst_78 = arith.constant 9.99999974E-6 : f32
    %255 = vector.broadcast %cst_78 : f32 to vector<8x1xf32>
    %256 = arith.addf %252, %255 : vector<8x1xf32>
    %257 = math.rsqrt %256 : vector<8x1xf32>
    %258 = vector.broadcast %257 : vector<8x1xf32> to vector<8x128xf32>
    %259 = arith.mulf %254, %258 : vector<8x128xf32>
    %260 = vector.broadcast %240 : vector<1x128xf32> to vector<8x128xf32>
    %261 = arith.mulf %259, %260 : vector<8x128xf32>
    %262 = vector.broadcast %241 : vector<1x128xf32> to vector<8x128xf32>
    %263 = arith.addf %261, %262 : vector<8x128xf32>
    %264 = arith.truncf %263 : vector<8x128xf32> to vector<8x128xbf16>
    %c0_79 = arith.constant 0 : index
    %c0_80 = arith.constant 0 : index
    %265 = vector.load %arg14[%c0_79, %c0_80] : memref<128x512xbf16, #tpu.memory_space<vmem>>, vector<128x512xbf16>
    %cst_81 = arith.constant dense<0.000000e+00> : vector<8x512xf32>
    %266 = tpu.matmul %264, %265, %cst_81 {dimension_numbers = #tpu.dot_dimension_numbers<[1], [0], [0], [1], [0, 0, 1, 1], [], []>} : vector<8x128xbf16>, vector<128x512xbf16>, vector<8x512xf32> -> vector<8x512xf32>
    %c0_82 = arith.constant 0 : index
    %c0_83 = arith.constant 0 : index
    %267 = vector.load %arg15[%c0_82, %c0_83] : memref<1x512xf32, #tpu.memory_space<vmem>>, vector<1x512xf32>
    %268 = vector.broadcast %267 : vector<1x512xf32> to vector<8x512xf32>
    %269 = arith.addf %266, %268 : vector<8x512xf32>
    %cst_84 = arith.constant 0.000000e+00 : f32
    %270 = vector.broadcast %cst_84 : f32 to vector<8x512xf32>
    %271 = arith.maximumf %269, %270 : vector<8x512xf32>
    %272 = arith.truncf %271 : vector<8x512xf32> to vector<8x512xbf16>
    %c0_85 = arith.constant 0 : index
    %c0_86 = arith.constant 0 : index
    %273 = vector.load %arg16[%c0_85, %c0_86] : memref<512x128xbf16, #tpu.memory_space<vmem>>, vector<512x128xbf16>
    %cst_87 = arith.constant dense<0.000000e+00> : vector<8x128xf32>
    %274 = tpu.matmul %272, %273, %cst_87 {dimension_numbers = #tpu.dot_dimension_numbers<[1], [0], [0], [1], [0, 0, 1, 1], [], []>} : vector<8x512xbf16>, vector<512x128xbf16>, vector<8x128xf32> -> vector<8x128xf32>
    %c0_88 = arith.constant 0 : index
    %c0_89 = arith.constant 0 : index
    %275 = vector.load %arg17[%c0_88, %c0_89] : memref<1x128xf32, #tpu.memory_space<vmem>>, vector<1x128xf32>
    %276 = vector.broadcast %275 : vector<1x128xf32> to vector<8x128xf32>
    %277 = arith.addf %274, %276 : vector<8x128xf32>
    %278 = arith.addf %263, %277 : vector<8x128xf32>
    %c0_90 = arith.constant 0 : index
    %c0_91 = arith.constant 0 : index
    %279 = vector.load %arg18[%c0_90, %c0_91] : memref<1x128xf32, #tpu.memory_space<vmem>>, vector<1x128xf32>
    %c0_92 = arith.constant 0 : index
    %c0_93 = arith.constant 0 : index
    %280 = vector.load %arg19[%c0_92, %c0_93] : memref<1x128xf32, #tpu.memory_space<vmem>>, vector<1x128xf32>
    %cst_94 = arith.constant dense<0.000000e+00> : vector<8xf32>
    %281 = vector.multi_reduction <add>, %278, %cst_94 [1] : vector<8x128xf32> to vector<8xf32>
    %282 = vector.shape_cast %281 : vector<8xf32> to vector<8x1xf32>
    %cst_95 = arith.constant 1.280000e+02 : f32
    %283 = vector.broadcast %cst_95 : f32 to vector<8x1xf32>
    %284 = arith.divf %282, %283 : vector<8x1xf32>
    %285 = vector.broadcast %284 : vector<8x1xf32> to vector<8x128xf32>
    %286 = arith.subf %278, %285 : vector<8x128xf32>
    %287 = arith.mulf %286, %286 : vector<8x128xf32>
    %cst_96 = arith.constant dense<0.000000e+00> : vector<8xf32>
    %288 = vector.multi_reduction <add>, %287, %cst_96 [1] : vector<8x128xf32> to vector<8xf32>
    %289 = vector.shape_cast %288 : vector<8xf32> to vector<8x1xf32>
    %cst_97 = arith.constant 1.280000e+02 : f32
    %290 = vector.broadcast %cst_97 : f32 to vector<8x1xf32>
    %291 = arith.divf %289, %290 : vector<8x1xf32>
    %292 = vector.broadcast %284 : vector<8x1xf32> to vector<8x128xf32>
    %293 = arith.subf %278, %292 : vector<8x128xf32>
    %cst_98 = arith.constant 9.99999974E-6 : f32
    %294 = vector.broadcast %cst_98 : f32 to vector<8x1xf32>
    %295 = arith.addf %291, %294 : vector<8x1xf32>
    %296 = math.rsqrt %295 : vector<8x1xf32>
    %297 = vector.broadcast %296 : vector<8x1xf32> to vector<8x128xf32>
    %298 = arith.mulf %293, %297 : vector<8x128xf32>
    %299 = vector.broadcast %279 : vector<1x128xf32> to vector<8x128xf32>
    %300 = arith.mulf %298, %299 : vector<8x128xf32>
    %301 = vector.broadcast %280 : vector<1x128xf32> to vector<8x128xf32>
    %302 = arith.addf %300, %301 : vector<8x128xf32>
    %c0_99 = arith.constant 0 : index
    %c0_100 = arith.constant 0 : index
    %c0_101 = arith.constant 0 : index
    %303 = vector.load %arg20[%c0_99, %c0_100, %c0_101] : memref<1x8x128xf32, #tpu.memory_space<vmem>>, vector<1x8x128xf32>
    %304 = vector.shape_cast %303 : vector<1x8x128xf32> to vector<8x128xf32>
    %305 = vector.shape_cast %302 : vector<8x128xf32> to vector<1x8x128xf32>
    tpu.vector_store %arg20[%c0_99, %c0_100, %c0_101], %305 {strides = array<i32>} : memref<1x8x128xf32, #tpu.memory_space<vmem>>, vector<1x8x128xf32>,
    return
  }
  func.func @transform_0(%arg0: i32, %arg1: i32) -> (i32, i32, i32) {
    %c0_i32 = arith.constant 0 : i32
    %c0_i32_0 = arith.constant 0 : i32
    %c0_i32_1 = arith.constant 0 : i32
    return %arg0, %c0_i32, %c0_i32_0 : i32, i32, i32
  }
  func.func @transform_1(%arg0: i32, %arg1: i32) -> (i32, i32, i32) {
    %c0_i32 = arith.constant 0 : i32
    %c0_i32_0 = arith.constant 0 : i32
    %c0_i32_1 = arith.constant 0 : i32
    return %arg0, %c0_i32, %c0_i32_0 : i32, i32, i32
  }
  func.func @transform_2(%arg0: i32, %arg1: i32) -> (i32, i32) {
    %c0_i32 = arith.constant 0 : i32
    %c0_i32_0 = arith.constant 0 : i32
    %c0_i32_1 = arith.constant 0 : i32
    return %c0_i32, %c0_i32_0 : i32, i32
  }
  func.func @transform_3(%arg0: i32, %arg1: i32) -> (i32, i32) {
    %c0_i32 = arith.constant 0 : i32
    %c0_i32_0 = arith.constant 0 : i32
    %c0_i32_1 = arith.constant 0 : i32
    return %c0_i32, %c0_i32_0 : i32, i32
  }
  func.func @transform_4(%arg0: i32, %arg1: i32) -> (i32, i32) {
    %c0_i32 = arith.constant 0 : i32
    %c0_i32_0 = arith.constant 0 : i32
    %c0_i32_1 = arith.constant 0 : i32
    return %c0_i32, %c0_i32_0 : i32, i32
  }
  func.func @transform_5(%arg0: i32, %arg1: i32) -> (i32, i32) {
    %c0_i32 = arith.constant 0 : i32
    %c0_i32_0 = arith.constant 0 : i32
    %c0_i32_1 = arith.constant 0 : i32
    return %c0_i32, %c0_i32_0 : i32, i32
  }
  func.func @transform_6(%arg0: i32, %arg1: i32) -> (i32, i32) {
    %c0_i32 = arith.constant 0 : i32
    %c0_i32_0 = arith.constant 0 : i32
    %c0_i32_1 = arith.constant 0 : i32
    return %c0_i32, %c0_i32_0 : i32, i32
  }
  func.func @transform_7(%arg0: i32, %arg1: i32) -> (i32, i32) {
    %c0_i32 = arith.constant 0 : i32
    %c0_i32_0 = arith.constant 0 : i32
    %c0_i32_1 = arith.constant 0 : i32
    return %c0_i32, %c0_i32_0 : i32, i32
  }
  func.func @transform_8(%arg0: i32, %arg1: i32) -> (i32, i32) {
    %c0_i32 = arith.constant 0 : i32
    %c0_i32_0 = arith.constant 0 : i32
    %c0_i32_1 = arith.constant 0 : i32
    return %c0_i32, %c0_i32_0 : i32, i32
  }
  func.func @transform_9(%arg0: i32, %arg1: i32) -> (i32, i32) {
    %c0_i32 = arith.constant 0 : i32
    %c0_i32_0 = arith.constant 0 : i32
    %c0_i32_1 = arith.constant 0 : i32
    return %c0_i32, %c0_i32_0 : i32, i32
  }
  func.func @transform_10(%arg0: i32, %arg1: i32) -> (i32, i32) {
    %c0_i32 = arith.constant 0 : i32
    %c0_i32_0 = arith.constant 0 : i32
    %c0_i32_1 = arith.constant 0 : i32
    return %c0_i32, %c0_i32_0 : i32, i32
  }
  func.func @transform_11(%arg0: i32, %arg1: i32) -> (i32, i32) {
    %c0_i32 = arith.constant 0 : i32
    %c0_i32_0 = arith.constant 0 : i32
    %c0_i32_1 = arith.constant 0 : i32
    return %c0_i32, %c0_i32_0 : i32, i32
  }
  func.func @transform_12(%arg0: i32, %arg1: i32) -> (i32, i32) {
    %c0_i32 = arith.constant 0 : i32
    %c0_i32_0 = arith.constant 0 : i32
    %c0_i32_1 = arith.constant 0 : i32
    return %c0_i32, %c0_i32_0 : i32, i32
  }
  func.func @transform_13(%arg0: i32, %arg1: i32) -> (i32, i32) {
    %c0_i32 = arith.constant 0 : i32
    %c0_i32_0 = arith.constant 0 : i32
    %c0_i32_1 = arith.constant 0 : i32
    return %c0_i32, %c0_i32_0 : i32, i32
  }
  func.func @transform_14(%arg0: i32, %arg1: i32) -> (i32, i32) {
    %c0_i32 = arith.constant 0 : i32
    %c0_i32_0 = arith.constant 0 : i32
    %c0_i32_1 = arith.constant 0 : i32
    return %c0_i32, %c0_i32_0 : i32, i32
  }
  func.func @transform_15(%arg0: i32, %arg1: i32) -> (i32, i32) {
    %c0_i32 = arith.constant 0 : i32
    %c0_i32_0 = arith.constant 0 : i32
    %c0_i32_1 = arith.constant 0 : i32
    return %c0_i32, %c0_i32_0 : i32, i32
  }
  func.func @transform_16(%arg0: i32, %arg1: i32) -> (i32, i32) {
    %c0_i32 = arith.constant 0 : i32
    %c0_i32_0 = arith.constant 0 : i32
    %c0_i32_1 = arith.constant 0 : i32
    return %c0_i32, %c0_i32_0 : i32, i32
  }
  func.func @transform_17(%arg0: i32, %arg1: i32) -> (i32, i32) {
    %c0_i32 = arith.constant 0 : i32
    %c0_i32_0 = arith.constant 0 : i32
    %c0_i32_1 = arith.constant 0 : i32
    return %c0_i32, %c0_i32_0 : i32, i32
  }
  func.func @transform_18(%arg0: i32, %arg1: i32) -> (i32, i32, i32) {
    %c0_i32 = arith.constant 0 : i32
    %c0_i32_0 = arith.constant 0 : i32
    return %arg0, %arg1, %c0_i32 : i32, i32, i32
  }
}

module attributes {stable_mosaic.version = 11 : i64} {
  func.func @_embed_pe_kernel(%arg0: i32, %arg1: memref<1x8x1xf32, #tpu.memory_space<vmem>>, %arg2: memref<1x128xf32, #tpu.memory_space<vmem>>, %arg3: memref<1x128xf32, #tpu.memory_space<vmem>>, %arg4: memref<8x128xf32, #tpu.memory_space<vmem>>, %arg5: memref<1x8x128xf32, #tpu.memory_space<vmem>>) attributes {dimension_semantics = [#tpu.dimension_semantics<parallel>], iteration_bounds = array<i64: 2>, scalar_prefetch = 0 : i64, scratch_operands = 0 : i64, tpu.core_type = #tpu.core_type<tc>, window_params = [{transform_indices = @transform_0, window_bounds = array<i64: 1, 8, 1>}, {pipeline_mode = #tpu.pipeline_mode<synchronous>, transform_indices = @transform_1, window_bounds = array<i64: 1, 128>}, {pipeline_mode = #tpu.pipeline_mode<synchronous>, transform_indices = @transform_2, window_bounds = array<i64: 1, 128>}, {pipeline_mode = #tpu.pipeline_mode<synchronous>, transform_indices = @transform_3, window_bounds = array<i64: 8, 128>}, {transform_indices = @transform_4, window_bounds = array<i64: 1, 8, 128>}]} {
    %c0 = arith.constant 0 : index
    %c0_0 = arith.constant 0 : index
    %c0_1 = arith.constant 0 : index
    %0 = vector.load %arg1[%c0, %c0_0, %c0_1] : memref<1x8x1xf32, #tpu.memory_space<vmem>>, vector<1x8x1xf32>
    %1 = vector.shape_cast %0 : vector<1x8x1xf32> to vector<8x1xf32>
    %c0_2 = arith.constant 0 : index
    %c0_3 = arith.constant 0 : index
    %2 = vector.load %arg2[%c0_2, %c0_3] : memref<1x128xf32, #tpu.memory_space<vmem>>, vector<1x128xf32>
    %3 = vector.broadcast %1 : vector<8x1xf32> to vector<8x128xf32>
    %4 = vector.broadcast %2 : vector<1x128xf32> to vector<8x128xf32>
    %5 = arith.mulf %3, %4 : vector<8x128xf32>
    %c0_4 = arith.constant 0 : index
    %c0_5 = arith.constant 0 : index
    %6 = vector.load %arg3[%c0_4, %c0_5] : memref<1x128xf32, #tpu.memory_space<vmem>>, vector<1x128xf32>
    %7 = vector.broadcast %6 : vector<1x128xf32> to vector<8x128xf32>
    %8 = arith.addf %5, %7 : vector<8x128xf32>
    %cst = arith.constant 0.000000e+00 : f32
    %9 = vector.broadcast %cst : f32 to vector<8x128xf32>
    %10 = arith.maximumf %8, %9 : vector<8x128xf32>
    %c0_6 = arith.constant 0 : index
    %c0_7 = arith.constant 0 : index
    %11 = vector.load %arg4[%c0_6, %c0_7] : memref<8x128xf32, #tpu.memory_space<vmem>>, vector<8x128xf32>
    %12 = arith.addf %10, %11 : vector<8x128xf32>
    %c0_8 = arith.constant 0 : index
    %c0_9 = arith.constant 0 : index
    %c0_10 = arith.constant 0 : index
    %13 = vector.load %arg5[%c0_8, %c0_9, %c0_10] : memref<1x8x128xf32, #tpu.memory_space<vmem>>, vector<1x8x128xf32>
    %14 = vector.shape_cast %13 : vector<1x8x128xf32> to vector<8x128xf32>
    %15 = vector.shape_cast %12 : vector<8x128xf32> to vector<1x8x128xf32>
    tpu.vector_store %arg5[%c0_8, %c0_9, %c0_10], %15 {strides = array<i32>} : memref<1x8x128xf32, #tpu.memory_space<vmem>>, vector<1x8x128xf32>,
    return
  }
  func.func @transform_0(%arg0: i32) -> (i32, i32, i32) {
    %c0_i32 = arith.constant 0 : i32
    %c0_i32_0 = arith.constant 0 : i32
    %c0_i32_1 = arith.constant 0 : i32
    return %arg0, %c0_i32, %c0_i32_0 : i32, i32, i32
  }
  func.func @transform_1(%arg0: i32) -> (i32, i32) {
    %c0_i32 = arith.constant 0 : i32
    %c0_i32_0 = arith.constant 0 : i32
    %c0_i32_1 = arith.constant 0 : i32
    return %c0_i32, %c0_i32_0 : i32, i32
  }
  func.func @transform_2(%arg0: i32) -> (i32, i32) {
    %c0_i32 = arith.constant 0 : i32
    %c0_i32_0 = arith.constant 0 : i32
    %c0_i32_1 = arith.constant 0 : i32
    return %c0_i32, %c0_i32_0 : i32, i32
  }
  func.func @transform_3(%arg0: i32) -> (i32, i32) {
    %c0_i32 = arith.constant 0 : i32
    %c0_i32_0 = arith.constant 0 : i32
    %c0_i32_1 = arith.constant 0 : i32
    return %c0_i32, %c0_i32_0 : i32, i32
  }
  func.func @transform_4(%arg0: i32) -> (i32, i32, i32) {
    %c0_i32 = arith.constant 0 : i32
    %c0_i32_0 = arith.constant 0 : i32
    %c0_i32_1 = arith.constant 0 : i32
    return %arg0, %c0_i32, %c0_i32_0 : i32, i32, i32
  }
}

module attributes {stable_mosaic.version = 11 : i64} {
  func.func @_final_kernel(%arg0: i32, %arg1: i32, %arg2: memref<1x8x128xf32, #tpu.memory_space<vmem>>, %arg3: memref<1x128xf32, #tpu.memory_space<vmem>>, %arg4: memref<1x128xf32, #tpu.memory_space<vmem>>, %arg5: memref<1x128xf32, #tpu.memory_space<vmem>>, %arg6: memref<1x1xf32, #tpu.memory_space<vmem>>, %arg7: memref<1x8x1xf32, #tpu.memory_space<vmem>>) attributes {dimension_semantics = [#tpu.dimension_semantics<parallel>, #tpu.dimension_semantics<parallel>], iteration_bounds = array<i64: 2, 1>, scalar_prefetch = 0 : i64, scratch_operands = 0 : i64, tpu.core_type = #tpu.core_type<tc>, window_params = [{transform_indices = @transform_0, window_bounds = array<i64: 1, 8, 128>}, {pipeline_mode = #tpu.pipeline_mode<synchronous>, transform_indices = @transform_1, window_bounds = array<i64: 1, 128>}, {pipeline_mode = #tpu.pipeline_mode<synchronous>, transform_indices = @transform_2, window_bounds = array<i64: 1, 128>}, {pipeline_mode = #tpu.pipeline_mode<synchronous>, transform_indices = @transform_3, window_bounds = array<i64: 1, 128>}, {pipeline_mode = #tpu.pipeline_mode<synchronous>, transform_indices = @transform_4, window_bounds = array<i64: 1, 1>}, {transform_indices = @transform_5, window_bounds = array<i64: 1, 8, 1>}]} {
    %c0 = arith.constant 0 : index
    %c0_0 = arith.constant 0 : index
    %c0_1 = arith.constant 0 : index
    %0 = vector.load %arg2[%c0, %c0_0, %c0_1] : memref<1x8x128xf32, #tpu.memory_space<vmem>>, vector<1x8x128xf32>
    %1 = vector.shape_cast %0 : vector<1x8x128xf32> to vector<8x128xf32>
    %c0_2 = arith.constant 0 : index
    %c0_3 = arith.constant 0 : index
    %2 = vector.load %arg3[%c0_2, %c0_3] : memref<1x128xf32, #tpu.memory_space<vmem>>, vector<1x128xf32>
    %c0_4 = arith.constant 0 : index
    %c0_5 = arith.constant 0 : index
    %3 = vector.load %arg4[%c0_4, %c0_5] : memref<1x128xf32, #tpu.memory_space<vmem>>, vector<1x128xf32>
    %cst = arith.constant dense<0.000000e+00> : vector<8xf32>
    %4 = vector.multi_reduction <add>, %1, %cst [1] : vector<8x128xf32> to vector<8xf32>
    %5 = vector.shape_cast %4 : vector<8xf32> to vector<8x1xf32>
    %cst_6 = arith.constant 1.280000e+02 : f32
    %6 = vector.broadcast %cst_6 : f32 to vector<8x1xf32>
    %7 = arith.divf %5, %6 : vector<8x1xf32>
    %8 = vector.broadcast %7 : vector<8x1xf32> to vector<8x128xf32>
    %9 = arith.subf %1, %8 : vector<8x128xf32>
    %10 = arith.mulf %9, %9 : vector<8x128xf32>
    %cst_7 = arith.constant dense<0.000000e+00> : vector<8xf32>
    %11 = vector.multi_reduction <add>, %10, %cst_7 [1] : vector<8x128xf32> to vector<8xf32>
    %12 = vector.shape_cast %11 : vector<8xf32> to vector<8x1xf32>
    %cst_8 = arith.constant 1.280000e+02 : f32
    %13 = vector.broadcast %cst_8 : f32 to vector<8x1xf32>
    %14 = arith.divf %12, %13 : vector<8x1xf32>
    %15 = vector.broadcast %7 : vector<8x1xf32> to vector<8x128xf32>
    %16 = arith.subf %1, %15 : vector<8x128xf32>
    %cst_9 = arith.constant 9.99999974E-6 : f32
    %17 = vector.broadcast %cst_9 : f32 to vector<8x1xf32>
    %18 = arith.addf %14, %17 : vector<8x1xf32>
    %19 = math.rsqrt %18 : vector<8x1xf32>
    %20 = vector.broadcast %19 : vector<8x1xf32> to vector<8x128xf32>
    %21 = arith.mulf %16, %20 : vector<8x128xf32>
    %22 = vector.broadcast %2 : vector<1x128xf32> to vector<8x128xf32>
    %23 = arith.mulf %21, %22 : vector<8x128xf32>
    %24 = vector.broadcast %3 : vector<1x128xf32> to vector<8x128xf32>
    %25 = arith.addf %23, %24 : vector<8x128xf32>
    %c0_10 = arith.constant 0 : index
    %c0_11 = arith.constant 0 : index
    %26 = vector.load %arg5[%c0_10, %c0_11] : memref<1x128xf32, #tpu.memory_space<vmem>>, vector<1x128xf32>
    %27 = vector.broadcast %26 : vector<1x128xf32> to vector<8x128xf32>
    %28 = arith.mulf %25, %27 : vector<8x128xf32>
    %cst_12 = arith.constant dense<0.000000e+00> : vector<8xf32>
    %29 = vector.multi_reduction <add>, %28, %cst_12 [1] : vector<8x128xf32> to vector<8xf32>
    %30 = vector.shape_cast %29 : vector<8xf32> to vector<8x1xf32>
    %c0_13 = arith.constant 0 : index
    %c0_14 = arith.constant 0 : index
    %31 = vector.load %arg6[%c0_13, %c0_14] : memref<1x1xf32, #tpu.memory_space<vmem>>, vector<1x1xf32>
    %32 = vector.broadcast %31 : vector<1x1xf32> to vector<8x1xf32>
    %33 = arith.addf %30, %32 : vector<8x1xf32>
    %c0_15 = arith.constant 0 : index
    %c0_16 = arith.constant 0 : index
    %c0_17 = arith.constant 0 : index
    %34 = vector.load %arg7[%c0_15, %c0_16, %c0_17] : memref<1x8x1xf32, #tpu.memory_space<vmem>>, vector<1x8x1xf32>
    %35 = vector.shape_cast %34 : vector<1x8x1xf32> to vector<8x1xf32>
    %36 = vector.shape_cast %33 : vector<8x1xf32> to vector<1x8x1xf32>
    tpu.vector_store %arg7[%c0_15, %c0_16, %c0_17], %36 {strides = array<i32>} : memref<1x8x1xf32, #tpu.memory_space<vmem>>, vector<1x8x1xf32>,
    return
  }
  func.func @transform_0(%arg0: i32, %arg1: i32) -> (i32, i32, i32) {
    %c0_i32 = arith.constant 0 : i32
    %c0_i32_0 = arith.constant 0 : i32
    return %arg0, %arg1, %c0_i32 : i32, i32, i32
  }
  func.func @transform_1(%arg0: i32, %arg1: i32) -> (i32, i32) {
    %c0_i32 = arith.constant 0 : i32
    %c0_i32_0 = arith.constant 0 : i32
    %c0_i32_1 = arith.constant 0 : i32
    return %c0_i32, %c0_i32_0 : i32, i32
  }
  func.func @transform_2(%arg0: i32, %arg1: i32) -> (i32, i32) {
    %c0_i32 = arith.constant 0 : i32
    %c0_i32_0 = arith.constant 0 : i32
    %c0_i32_1 = arith.constant 0 : i32
    return %c0_i32, %c0_i32_0 : i32, i32
  }
  func.func @transform_3(%arg0: i32, %arg1: i32) -> (i32, i32) {
    %c0_i32 = arith.constant 0 : i32
    %c0_i32_0 = arith.constant 0 : i32
    %c0_i32_1 = arith.constant 0 : i32
    return %c0_i32, %c0_i32_0 : i32, i32
  }
  func.func @transform_4(%arg0: i32, %arg1: i32) -> (i32, i32) {
    %c0_i32 = arith.constant 0 : i32
    %c0_i32_0 = arith.constant 0 : i32
    %c0_i32_1 = arith.constant 0 : i32
    return %c0_i32, %c0_i32_0 : i32, i32
  }
  func.func @transform_5(%arg0: i32, %arg1: i32) -> (i32, i32, i32) {
    %c0_i32 = arith.constant 0 : i32
    %c0_i32_0 = arith.constant 0 : i32
    return %arg0, %arg1, %c0_i32 : i32, i32, i32
  }
}

</mosaic_0001>

<bundles_post_ra>
// kernel: forward.11
= control target key start
LH: loop header
LB: loop body
LE: loop exit
PB: predicated region body
PF: predicated region fallthrough
CT: control target
= control target key end

     0   :  { %s472_s20 = smov 0   ;;  %s474_s21 = smov 0   ;;  %s514_s0 = inlined_call_operand.vmem [shape: f32[2,8,128], index: 0, kind: input, shape index: {}]   ;;  %s515_s1 = inlined_call_operand.vmem [shape: f32[1,128], index: 1, kind: input, shape index: {}]   ;;  %s516_s2 = inlined_call_operand.vmem [shape: f32[1,128], index: 2, kind: input, shape index: {}]   ;;  %s517_s3 = inlined_call_operand.vmem [shape: f32[1,128], index: 3, kind: input, shape index: {}]   ;;  %s518_s4 = inlined_call_operand.<no memory space> [shape: f32[1,1], index: 4, kind: input, shape index: {}]   ;;  %s519_s5 = inlined_call_operand.vmem [shape: f32[2,8,1], index: 5, kind: output, shape index: {}]  }
   0x1   :  { %v10_v0 = vstv %s518_s4  ;;  %s476_s22 = smov 0  }
   0x2   :  { %11 = vst [vmem:[#allocation2] sm:$0x1] %v10_v0 }
   0x3 LB: > { %s29_s4 = sadd.s32 1, %s433_s21  ;;  %p380_p0 = scmp.ge.s32.totalorder %s437_s22, 1  ;;  %s437_s22 = sphi %s476_s22, %s17_s22   ;;  %s433_s21 = sphi %s474_s21, %s521_s21   ;;  %s429_s20 = sphi %s472_s20, %s520_s20  }
   0x4   : > { %p31_p1 = scmp.ge.s32.totalorder %s29_s4, 2  ;;  %p207_p2 = scmp.lt.s32.totalorder %s437_s22, 3 }
   0x6   : > { %s523_s4 = smov (%p31_p1, %s29_s4), 0  ;;  %p208_p3 = pnand %p380_p0, %p207_p2 }
   0x7   : > { %p239_p4 = scmp.lt.s32.totalorder (!%p208_p3), %s429_s20, 1  ;;  %v383_v10 = vld [vmem:[%s515_s1] ss:$0 sm:$0xff] (!%p208_p3)  ;;  %vm300_vm0 = vcmask (!%p208_p3), 7168  }
   0x8   : > { %211 = sbr.rel (%p208_p3) target bundleno = 477 (0x1dd), region = 40  ;;  %v384_v12 = vld [vmem:[%s516_s2] ss:$0 sm:$0xff] (!%p208_p3) }
   0x9   : > { %v385_v14 = vld [vmem:[%s517_s3] ss:$0 sm:$0xff] (!%p208_p3) }
   0xa   : > { %v386_v17 = vld [vmem:[#allocation2] ss:$0 sm:$0xff] (!%p208_p3) }
   0xf   : > { %s525_s20 = smov (!%p239_p4, %s429_s20), 1 }
  0x10   : > { %s381_s23 = sshll.u32 %s525_s20, 3 }
  0x11   : > { %s245_s26 = scalar_lea.vmem %s514_s0, %s381_s23  ;;  %s252_s10 = scalar_lea.vmem %s519_s5, %s381_s23 }
  0x12   : > { %v253_v1 = vld [vmem:[%s245_s26] sm:$0xff] }
  0x13   : > { %256 = vadd.xlane.f32.xlu0 %v253_v1 }
  0xa0   : > { %v257_v2 = vpop.xlane.xlu0 %256 }
  0xa1   : > { %v259_v3 = vmul.f32 0.0078125, %v257_v2 }
  0xa3   : > { %v260_v4 = vsub.f32 %v253_v1, %v259_v3 }
  0xa5   : > { %v261_v5 = vmul.f32 %v260_v4, %v260_v4 }
  0xa7   : > { %262 = vadd.xlane.f32.xlu0 %v261_v5 }
 0x134   : > { %v263_v6 = vpop.xlane.xlu0 %262 }
 0x135   : > { %v264_v7 = vmul.f32 0.0078125, %v263_v6 }
 0x137   : > { %v265_v8 = vadd.f32 1e-05, %v264_v7 }
 0x139   : > { %413 = vrsqrt.f32 %v265_v8 }
 0x143   : > { %v414_v9 = vpop.eup %413 }
 0x144   : > { %v267_v11 = vmul.f32 %v414_v9, %v260_v4 }
 0x146   : > { %v274_v13 = vmul.f32 %v383_v10, %v267_v11 }
 0x148   : > { %v281_v15 = vadd.f32 %v384_v12, %v274_v13 }
 0x14a   : > { %v289_v16 = vmul.f32 %v385_v14, %v281_v15 }
 0x14c   : > { %290 = vadd.xlane.f32.xlu1 %v289_v16 }
 0x1d9   : > { %v291_v18 = vpop.xlane.xlu1 %290 }
 0x1da   : > { %v299_v19 = vadd.f32 %v386_v17, %v291_v18 }
 0x1dc   : > { %301 = vst.msk [vmem:[%s252_s10] sm:$0xff] %vm300_vm0, %v299_v19 }
 0x1dd PF: > { %s17_s22 = sadd.s32 1, %s437_s22   ;;  %s520_s20 = smov %s433_s21 }
 0x1de   : > { %p14_p5 = scmp.ge.s32.totalorder %s17_s22, 4   ;;  %s521_s21 = smov %s523_s4 }
 0x1e0   :  { %16 = sbr.rel (!%p14_p5) target bundleno = 3 (0x3), region = 70 }

// kernel: forward.7
= control target key start
LH: loop header
LB: loop body
LE: loop exit
PB: predicated region body
PF: predicated region fallthrough
CT: control target
= control target key end

     0   :  { %s327_s15 = smov 0   ;;  %s347_s0 = inlined_call_operand.vmem [shape: f32[2,8,1], index: 0, kind: input, shape index: {}]   ;;  %s348_s1 = inlined_call_operand.vmem [shape: f32[1,128], index: 1, kind: input, shape index: {}]   ;;  %s349_s2 = inlined_call_operand.vmem [shape: f32[1,128], index: 2, kind: input, shape index: {}]   ;;  %s350_s3 = inlined_call_operand.vmem [shape: f32[8,128], index: 3, kind: input, shape index: {}]   ;;  %s351_s4 = inlined_call_operand.vmem [shape: f32[2,8,128], index: 4, kind: output, shape index: {}]  }
   0x1 LB: > { %s272_s16 = sadd.s32 4294967295, %s299_s15   ;;  %p276_p0 = scmp.ge.s32.totalorder %s299_s15, 1  ;;  %s299_s15 = sphi %s327_s15, %s14_s15  }
   0x2   : > { %p161_p1 = scmp.lt.s32.totalorder %s299_s15, 3 }
   0x4   : > { %p162_p2 = pnand %p276_p0, %p161_p1 }
   0x5   : > { %p185_p3 = scmp.lt.s32.totalorder (!%p162_p2), %s272_s16, 1  ;;  %v301_v0 = vmov (!%p162_p2), 0   ;;  %v279_v2 = vld [vmem:[%s348_s1] ss:$0 sm:$0xff] (!%p162_p2) }
   0x6   : > { %165 = sbr.rel (%p162_p2) target bundleno = 154 (0x9a), region = 36  ;;  %292 = vset.pattern.permute.xlu0 (!%p162_p2), %v301_v0  ;;  %v280_v3 = vld [vmem:[%s349_s2] ss:$0 sm:$0xff] (!%p162_p2) }
   0x7   : > { %v216_v7 = vld [vmem:[%s350_s3] sm:$0xff] (!%p162_p2) }
   0xd   : > { %s353_s16 = smov (!%p185_p3, %s272_s16), 1 }
   0xe   : > { %s277_s17 = sshll.u32 %s353_s16, 3 }
   0xf   : > { %s188_s20 = scalar_lea.vmem %s347_s0, %s277_s17  ;;  %s192_s29 = scalar_lea.vmem %s351_s4, %s277_s17 }
  0x10   : > { %v193_v1 = vld [vmem:[%s188_s20] sm:$0xff] }
  0x11   : > { %197 = vperm.xlu0 %292, %v193_v1  }
  0x90   : > { %v198_v4 = vpop.permute.xlu0 %197 }
  0x91   : > { %v206_v5 = vmul.f32 %v279_v2, %v198_v4 }
  0x93   : > { %v214_v6 = vadd.f32 %v280_v3, %v206_v5 }
  0x95   : > { %v215_v8 = vmax.f32 %v214_v6, 0.0 }
  0x97   : > { %v217_v9 = vadd.f32 %v216_v7, %v215_v8 }
  0x99   : > { %218 = vst [vmem:[%s192_s29] sm:$0xff] %v217_v9 }
  0x9a PF: > { %s14_s15 = sadd.s32 1, %s299_s15  }
  0x9b   : > { %p11_p4 = scmp.ge.s32.totalorder %s14_s15, 4  }
  0x9d   :  { %13 = sbr.rel (!%p11_p4) target bundleno = 1 (0x1), region = 66 }

// kernel: forward.8
= control target key start
LH: loop header
LB: loop body
LE: loop exit
PB: predicated region body
PF: predicated region fallthrough
CT: control target
= control target key end

     0   :  { %s3734_s27 = smov 0   ;;  %s3736_s28 = smov 0   ;;  %s4329_s0 = inlined_call_operand.vmem [shape: f32[2,8,128], index: 0, kind: input, shape index: {}]   ;;  %s4330_s1 = inlined_call_operand.vmem [shape: f32[2,1,128], index: 1, kind: input, shape index: {}]   ;;  %s4331_s2 = inlined_call_operand.vmem [shape: bf16[128,128], index: 2, kind: input, shape index: {}]   ;;  %s4332_s3 = inlined_call_operand.vmem [shape: f32[1,128], index: 3, kind: input, shape index: {}]   ;;  %s4333_s4 = inlined_call_operand.vmem [shape: bf16[128,256], index: 4, kind: input, shape index: {}]   ;;  %s4334_s5 = inlined_call_operand.vmem [shape: f32[1,256], index: 5, kind: input, shape index: {}]   ;;  %s4335_s6 = inlined_call_operand.vmem [shape: bf16[128,128], index: 6, kind: input, shape index: {}]   ;;  %s4336_s7 = inlined_call_operand.vmem [shape: f32[1,128], index: 7, kind: input, shape index: {}]   ;;  %s4337_s8 = inlined_call_operand.vmem [shape: f32[1,128], index: 8, kind: input, shape index: {}]   ;;  %s4338_s9 = inlined_call_operand.vmem [shape: f32[1,128], index: 9, kind: input, shape index: {}]   ;;  %s4339_s10 = inlined_call_operand.vmem [shape: f32[1,128], index: 10, kind: input, shape index: {}]   ;;  %s4340_s11 = inlined_call_operand.vmem [shape: f32[1,128], index: 11, kind: input, shape index: {}]   ;;  %s4341_s12 = inlined_call_operand.vmem [shape: bf16[128,512], index: 12, kind: input, shape index: {}]   ;;  %s4342_s13 = inlined_call_operand.vmem [shape: f32[1,512], index: 13, kind: input, shape index: {}]   ;;  %s4343_s14 = inlined_call_operand.vmem [shape: bf16[512,128], index: 14, kind: input, shape index: {}]   ;;  %s4344_s15 = inlined_call_operand.vmem [shape: f32[1,128], index: 15, kind: input, shape index: {}]   ;;  %s4345_s16 = inlined_call_operand.vmem [shape: f32[1,128], index: 16, kind: input, shape index: {}]   ;;  %s4346_s17 = inlined_call_operand.vmem [shape: f32[1,128], index: 17, kind: input, shape index: {}]   ;;  %s4347_s18 = inlined_call_operand.vmem [shape: f32[2,8,128], index: 18, kind: output, shape index: {}]  }
   0x1   :  { %4350 = sst [smem:[#allocation4_spill]] %s4329_s0  ;;  %s3738_s29 = smov 0  }
   0x2   :  { %4351 = sst [smem:[#allocation5_spill]] %s4330_s1 }
   0x3   :  { %4352 = sst [smem:[#allocation6_spill]] %s4331_s2 }
   0x4 LB: > { %4353 = sst [smem:[#allocation2_spill]] %s3623_s28  ;;  %s40_s30 = sadd.s32 1, %s3623_s28  ;;  %s3627_s29 = sphi %s3738_s29, %s28_s29   ;;  %s3623_s28 = sphi %s3736_s28, %s4359_s28   ;;  %s3619_s27 = sphi %s3734_s27, %s4358_s27  }
   0x5   : > { %p3012_p0 = scmp.ge.s32.totalorder %s3627_s29, 1  ;;  %p42_p1 = scmp.ge.s32.totalorder %s40_s30, 2 }
   0x6   : > { %p533_p2 = scmp.lt.s32.totalorder %s3627_s29, 3 }
   0x7   : > { %s4361_s30 = smov (%p42_p1, %s40_s30), 0 }
   0x8   : > { %4354 = sst [smem:[#allocation3_spill]] %s4361_s30  ;;  %p534_p3 = pnand %p3012_p0, %p533_p2 }
   0x9   : > { %s4355_s1 = sld [smem:[#allocation6_spill]] (!%p534_p3)  ;;  %v3629_v1 = vmov (!%p534_p3), 0.0   ;;  %vm3630_vm0 = vmmov (!%p534_p3), 0   ;;  %v3631_v3 = vmov (!%p534_p3), 0   ;;  %v3454_v5 = vld [vmem:[%s4333_s4 + $0x4] ss:$8 sps:$4 sm:$0xff] (!%p534_p3)   ;;  %v741_v28 = vlaneseq (!%p534_p3) }
   0xa   : > { %537 = sbr.rel (%p534_p3) target bundleno = 6208 (0x1840), region = 92  ;;  %3248 = vmatprep.subr.bf16.mxu0 (!%p534_p3), %v3629_v1  ;;  %3264 = vmatprep.mubr.msk.bf16.mxu0 (!%p534_p3), %vm3630_vm0, %v3629_v1  ;;  %v3456_v6 = vld [vmem:[%s4333_s4] ss:$8 sps:$4 sm:$0xff] (!%p534_p3)   ;;  %p591_p4 = scmp.lt.s32.totalorder (!%p534_p3), %s3619_s27, 1  ;;  %v3457_v8 = vld [vmem:[%s4333_s4 + $0x14] ss:$8 sps:$4 sm:$0xff] (!%p534_p3)  }
   0xb   : > { %863 = vmatprep.mubr.bf16.mxu1 (!%p534_p3), %v3631_v3  ;;  %831 = vmatprep.subr.bf16.mxu1 (!%p534_p3), %v3454_v5  ;;  %v3459_v9 = vld [vmem:[%s4333_s4 + $0x10] ss:$8 sps:$4 sm:$0xff] (!%p534_p3)   ;;  %v3460_v10 = vld [vmem:[%s4333_s4 + $0x24] ss:$8 sps:$4 sm:$0xff] (!%p534_p3)   ;;  %v3462_v12 = vld [vmem:[%s4333_s4 + $0x20] ss:$8 sps:$4 sm:$0xff] (!%p534_p3)  }
   0xc   : > { %832 = vmatpush1.bf16.msra.mxu1 (!%p534_p3), %v3456_v6  ;;  %v3463_v13 = vld [vmem:[%s4333_s4 + $0x34] ss:$8 sps:$4 sm:$0xff] (!%p534_p3)   ;;  %v3465_v15 = vld [vmem:[%s4333_s4 + $0x30] ss:$8 sps:$4 sm:$0xff] (!%p534_p3)   ;;  %v3466_v16 = vld [vmem:[%s4333_s4 + $0x44] ss:$8 sps:$4 sm:$0xff] (!%p534_p3)  }
   0xd   : > { %833 = vmatprep.subr.bf16.mxu1 (!%p534_p3), %v3457_v8  ;;  %s4356_s2 = sld [smem:[#allocation4_spill]] (!%p534_p3)  ;;  %v3468_v18 = vld [vmem:[%s4333_s4 + $0x40] ss:$8 sps:$4 sm:$0xff] (!%p534_p3)   ;;  %v3469_v19 = vld [vmem:[%s4333_s4 + $0x54] ss:$8 sps:$4 sm:$0xff] (!%p534_p3)   ;;  %v3859_v30 = vshrl.u32 (!%p534_p3), %v741_v28, 7 }
   0xe   : > { %v3471_v22 = vld [vmem:[%s4333_s4 + $0x50] ss:$8 sps:$4 sm:$0xff] (!%p534_p3)   ;;  %v3472_v23 = vld [vmem:[%s4333_s4 + $0x64] ss:$8 sps:$4 sm:$0xff] (!%p534_p3)   ;;  %v3474_v25 = vld [vmem:[%s4333_s4 + $0x60] ss:$8 sps:$4 sm:$0xff] (!%p534_p3)  }
   0xf   : > { %v3446_v0 = vld [vmem:[%s4355_s1] sm:$0xff] (!%p534_p3)   ;;  %v3447_v2 = vld [vmem:[%s4355_s1 + $0x8] sm:$0xff] (!%p534_p3)   ;;  %v3448_v4 = vld [vmem:[%s4355_s1 + $0x10] sm:$0xff] (!%p534_p3)   ;;  %v747_v37 = vsub.s32 (!%p534_p3), 1, %v3859_v30  ;;  %s3632_s28 = smov (!%p534_p3), 112   ;;  %vm983_vm1 = vcmask (!%p534_p3), 1043456  }
  0x10   : > { %3249 = vmatpush3.bf16.msra.mxu0 (!%p534_p3), %v3446_v0  ;;  %v3449_v7 = vld [vmem:[%s4355_s1 + $0x18] sm:$0xff] (!%p534_p3)   ;;  %v3450_v11 = vld [vmem:[%s4355_s1 + $0x20] sm:$0xff] (!%p534_p3)   ;;  %834 = vmatpush1.bf16.msra.mxu1 (!%p534_p3), %v3459_v9  ;;  %v3451_v14 = vld [vmem:[%s4355_s1 + $0x28] sm:$0xff] (!%p534_p3)   ;;  %v743_v47 = vsub.s32 (!%p534_p3), 0, %v3859_v30  ;;  %vm922_vm2 = vcmask (!%p534_p3), 130048   ;;  %vm966_vm3 = vcmask (!%p534_p3), 64512  }
  0x11   : > { %3250 = vmatprep.subr.bf16.mxu0 %v3629_v1  ;;  %s4363_s27 = smov (!%p591_p4, %s3619_s27), 1  ;;  %835 = vmatprep.subr.bf16.mxu1 %v3460_v10  ;;  %v3452_v17 = vld [vmem:[%s4355_s1 + $0x30] sm:$0xff]   ;;  %v3453_v20 = vld [vmem:[%s4355_s1 + $0x38] sm:$0xff]   ;;  %v3015_v29 = vld [vmem:[%s4332_s3] ss:$0 sm:$0xff]  ;;  %s3633_s24 = smov 96  }
  0x12   : > { %s3013_s23 = sshll.u32 %s4363_s27, 3  ;;  %v3475_v26 = vld [vmem:[%s4333_s4 + $0x74] ss:$8 sps:$4 sm:$0xff]   ;;  %v3477_v27 = vld [vmem:[%s4333_s4 + $0x70] ss:$8 sps:$4 sm:$0xff]   ;;  %s3634_s20 = smov 64  }
  0x13   : > { %s3821_s30 = scalar_lea.vmem %s4356_s2, %s3013_s23  ;;  %v739_v38 = vld [vmem:[%s4334_s5] sm:$0x3]  ;;  %s3635_s21 = smov 80  }
  0x14   : > { %3251 = vmatpush3.bf16.msra.mxu0 %v3447_v2  ;;  %836 = vmatpush1.bf16.msra.mxu1 %v3462_v12  ;;  %v608_v21 = vld [vmem:[%s3821_s30] sm:$0xff]  ;;  %v748_v39 = vrot.slane %v739_v38, %v747_v37  ;;  %v744_v48 = vrot.slane %v739_v38, %v743_v47  ;;  %s3636_s25 = smov 48   ;;  %s3637_s19 = smov 32  }
  0x15   : > { %3252 = vmatprep.subr.bf16.mxu0 %v3629_v1  ;;  %837 = vmatprep.subr.bf16.mxu1 %v3463_v13  ;;  %v610_v24 = vpack.c.bf16 %v608_v21, %v608_v21  ;;  %s3638_s22 = smov 16  }
  0x18   : > { %3253 = vmatpush3.bf16.msra.mxu0 %v3448_v4  ;;  %838 = vmatpush1.bf16.msra.mxu1 %v3465_v15 }
  0x19   : > { %3254 = vmatprep.subr.bf16.mxu0 %v3629_v1  ;;  %839 = vmatprep.subr.bf16.mxu1 %v3466_v16 }
  0x1c   : > { %3255 = vmatpush3.bf16.msra.mxu0 %v3449_v7  ;;  %840 = vmatpush1.bf16.msra.mxu1 %v3468_v18 }
  0x1d   : > { %3256 = vmatprep.subr.bf16.mxu0 %v3629_v1  ;;  %841 = vmatprep.subr.bf16.mxu1 %v3469_v19 }
  0x20   : > { %3257 = vmatpush3.bf16.msra.mxu0 %v3450_v11  ;;  %842 = vmatpush1.bf16.msra.mxu1 %v3471_v22 }
  0x21   : > { %3258 = vmatprep.subr.bf16.mxu0 %v3629_v1  ;;  %843 = vmatprep.subr.bf16.mxu1 %v3472_v23 }
  0x24   : > { %3259 = vmatpush3.bf16.msra.mxu0 %v3451_v14  ;;  %844 = vmatpush1.bf16.msra.mxu1 %v3474_v25  ;;  %v3478_v25 = vld [vmem:[%s4335_s6] sm:$0xff]  }
  0x25   : > { %3260 = vmatprep.subr.bf16.mxu0 %v3629_v1  ;;  %845 = vmatprep.subr.bf16.mxu1 %v3475_v26  ;;  %v3479_v26 = vld [vmem:[%s4335_s6 + $0x8] sm:$0xff]  }
  0x28   : > { %3261 = vmatpush3.bf16.msra.mxu0 %v3452_v17  ;;  %846 = vmatpush1.bf16.msra.mxu1 %v3477_v27 }
  0x29   : > { %3262 = vmatprep.subr.bf16.mxu0 %v3629_v1  ;;  %3274 = vmatprep.subr.bf16.mxu1 %v3629_v1 }
  0x2b   : > { %864 = vmatmul.mubr.bf16.vlgmr.msra.gmra.mrb[0].mxu1 %v610_v24 }
  0x2c   : > { %3263 = vmatpush3.bf16.msra.mxu0 %v3453_v20  ;;  %3276 = vmatprep.mubr.msk.bf16.mxu1 %vm3630_vm0, %v3629_v1 }
  0x2d   : > { %3268 = vmatprep.subr.bf16.mxu0 %v3629_v1 }
  0x2f   : > { %3265 = vmatmul.mubr.bf16.vlgmr.msra.gmra.mrb[0].mxu0 %v610_v24 }
  0x30   : > { %3270 = vmatprep.mubr.msk.bf16.mxu0 %vm3630_vm0, %v3629_v1 }
  0xfe   : > { %v865_v40 = vpop.f32.mrb[0].mxu1 }
  0xff   : > { %v867_v41 = vpop.f32.mrb[1].mxu1  ;;  %v866_v49 = vadd.f32 %v865_v40, %v744_v48 }
 0x100   : > { %v868_v42 = vadd.f32 %v867_v41, %v748_v39  ;;  %v869_v43 = vpop.f32.mrb[2].mxu1 }
 0x101   : > { %v870_v44 = vpop.f32.mrb[3].mxu1 }
 0x102   : > { %v716_v31 = vpop.f32.mrb[0].mxu0  ;;  %v3871_v45 = vpack.c.bf16 %v868_v42, %v868_v42 }
 0x103   : > { %v717_v32 = vadd.f32 %v3015_v29, %v716_v31  ;;  %v3266_v33 = vpop.f32.mrb[1].mxu0 }
 0x104   : > { %v719_v34 = vpop.f32.mrb[2].mxu0  ;;  %v985_v46 = vsel %vm983_vm1, %v3871_v45, 0 }
 0x105   : > { %v3861_v35 = vpack.c.bf16 %v717_v32, %v717_v32  ;;  %v3267_v36 = vpop.f32.mrb[3].mxu0  ;;  %3275 = vmatpush3.bf16.msra.mxu1 %v985_v46 }
 0x106   : > { %3286 = vmatprep.subr.bf16.mxu1 %v3629_v1 }
 0x107   : > { %1030 = vrot.lane.b32.xlu0 %v3861_v35, %s3632_s28 }
 0x125   : > { %872 = vxpose.xlu0.b32.start.end [1/1] (short) %v866_v49, 128 }
 0x179   : > { %v1031_v50 = vpop.permute.xlu0 %1030 }
 0x1a5   : > { %v888_v51 = vpop.trf.xlu0 }
 0x1a9   : > { %v889_v52 = vpop.trf.xlu0 }
 0x1aa   : > { %v921_v53 = vpack.c.bf16 %v889_v52, %v888_v51 }
 0x1ac   : > { %3269 = vmatpush3.bf16.msra.mxu0 %v921_v53 }
 0x1ad   : > { %v890_v54 = vpop.trf.xlu0  ;;  %3280 = vmatprep.subr.bf16.mxu0 %v3629_v1 }
 0x1af   : > { %3271 = vmatmul.mubr.msk.bf16.vlgmr.msra.gmra.mrb[4].mxu0 %vm922_vm2, %v3861_v35 }
 0x1b0   : > { %3282 = vmatprep.mubr.msk.bf16.mxu0 %vm3630_vm0, %v3629_v1 }
 0x1b1   : > { %v891_v55 = vpop.trf.xlu0 }
 0x1b2   : > { %v1028_v56 = vpack.c.bf16 %v891_v55, %v890_v54 }
 0x1b4   : > { %3281 = vmatpush3.bf16.msra.mxu0 %v1028_v56 }
 0x1b5   : > { %3292 = vmatprep.subr.bf16.mxu0 %v3629_v1  ;;  %v892_v27 = vpop.trf.xlu0 }
 0x1b7   : > { %3283 = vmatmul.mubr.msk.bf16.vlgmr.msra.gmra.mrb[8].mxu0 %vm922_vm2, %v1031_v50 }
 0x1b8   : > { %3294 = vmatprep.mubr.msk.bf16.mxu0 %vm3630_vm0, %v3629_v1  ;;  %3293 = vmatpush3.bf16.msra.mxu0 %v3479_v26 }
 0x1b9   : > { %3304 = vmatprep.subr.bf16.mxu0 %v3629_v1  ;;  %v893_v34 = vpop.trf.xlu0 }
 0x1ba   : > { %v1235_v38 = vpack.c.bf16 %v893_v34, %v892_v27 }
 0x1bd   : > { %v894_v44 = vpop.trf.xlu0 }
 0x1c1   : > { %v895_v46 = vpop.trf.xlu0 }
 0x1c2   : > { %v1392_v48 = vpack.c.bf16 %v895_v46, %v894_v44 }
 0x1c5   : > { %v3922_v49 = vpop.trf.xlu0 }
 0x1c9   : > { %v3924_v50 = vpop.trf.xlu0 }
 0x1ca   : > { %v1549_v51 = vpack.c.bf16 %v3924_v50, %v3922_v49 }
 0x1cd   : > { %v3928_v52 = vpop.trf.xlu0 }
 0x1d1   : > { %v3930_v53 = vpop.trf.xlu0 }
 0x1d2   : > { %v1706_v54 = vpack.c.bf16 %v3930_v53, %v3928_v52 }
 0x1d5   : > { %v3934_v55 = vpop.trf.xlu0 }
 0x1d9   : > { %v3936_v56 = vpop.trf.xlu0 }
 0x282   : > { %v960_v57 = vpop.f32.mrb[4].mxu0 }
 0x283   : > { %v3272_v58 = vpop.f32.mrb[5].mxu0  ;;  %v967_v59 = vsel %vm966_vm3, %v960_v57, -inf }
 0x284   : > { %968 = vmax.xlane.f32.xlu1 %v967_v59  ;;  %v963_v60 = vpop.f32.mrb[6].mxu0 }
 0x285   : > { %v3273_v61 = vpop.f32.mrb[7].mxu0 }
 0x28a   : > { %v1069_v62 = vpop.f32.mrb[8].mxu0 }
 0x28b   : > { %v3284_v63 = vpop.f32.mrb[9].mxu0  ;;  %v1075_v0 = vsel %vm966_vm3, %v1069_v62, -inf }
 0x28c   : > { %1076 = vmax.xlane.f32.xlu1 %v1075_v0  ;;  %v1072_v2 = vpop.f32.mrb[10].mxu0 }
 0x28d   : > { %v3285_v4 = vpop.f32.mrb[11].mxu0 }
 0x311   : > { %v969_v5 = vpop.xlane.xlu1 %968 }
 0x312   : > { %v970_v6 = vsub.f32 %v960_v57, %v969_v5  ;;  %v1863_v57 = vpack.c.bf16 %v3936_v56, %v3934_v55 }
 0x314   : > { %v971_v7 = vmul.f32 1.442695, %v970_v6 }
 0x316   : > { %3566 = vpow2.f32 %v971_v7 }
 0x319   : > { %v1077_v8 = vpop.xlane.xlu1 %1076 }
 0x31a   : > { %v1078_v9 = vsub.f32 %v1069_v62, %v1077_v8 }
 0x31c   : > { %v1079_v10 = vmul.f32 1.442695, %v1078_v9 }
 0x31e   : > { %3568 = vpow2.f32 %v1079_v10  ;;  %v3945_v10 = vpop.trf.xlu0 }
 0x320   : > { %v3567_v11 = vpop.eup %3566 }
 0x321   : > { %v973_v12 = vsel %vm966_vm3, %v3567_v11, 0.0 }
 0x322   : > { %974 = vadd.xlane.f32.xlu1 %v973_v12 }
 0x328   : > { %v3569_v13 = vpop.eup %3568 }
 0x329   : > { %v1081_v14 = vsel %vm966_vm3, %v3569_v13, 0.0 }
 0x32a   : > { %1082 = vadd.xlane.f32.xlu1 %v1081_v14 }
 0x33b   : > { %1088 = vrot.lane.b32.xlu1 %v3871_v45, %s3632_s28 }
 0x33f   : > { %1236 = vrot.lane.b32.xlu1 %v3861_v35, %s3633_s24 }
 0x3af   : > { %v975_v15 = vpop.xlane.xlu1 %974 }
 0x3b0   : > { %3570 = vrcp.f32 %v975_v15 }
 0x3b7   : > { %v1083_v16 = vpop.xlane.xlu1 %1082 }
 0x3b8   : > { %3572 = vrcp.f32 %v1083_v16 }
 0x3ba   : > { %v3571_v17 = vpop.eup %3570 }
 0x3bb   : > { %v977_v18 = vmul.f32 %v3571_v17, %v3567_v11  ;;  %v1089_v19 = vpop.permute.xlu1 %1088  ;;  %v3947_v11 = vpop.trf.xlu0 }
 0x3bc   : > { %v1094_v21 = vsel %vm983_vm1, %v1089_v19, 0 }
 0x3bd   : > { %v978_v20 = vpack.c.bf16 %v977_v18, %v977_v18 }
 0x3bf   : > { %3277 = vmatmul.mubr.msk.bf16.vlgmr.msra.gmra.mrb[4].mxu1 %vm966_vm3, %v978_v20  ;;  %v1237_v43 = vpop.permute.xlu1 %1236 }
 0x3c0   : > { %3287 = vmatpush3.bf16.msra.mxu1 %v1094_v21  ;;  %3288 = vmatprep.mubr.msk.bf16.mxu1 %vm3630_vm0, %v3629_v1 }
 0x3c1   : > { %3298 = vmatprep.subr.bf16.mxu1 %v3629_v1 }
 0x3c2   : > { %v3573_v22 = vpop.eup %3572 }
 0x3c3   : > { %v1085_v23 = vmul.f32 %v3573_v22, %v3569_v13 }
 0x3c5   : > { %v1086_v24 = vpack.c.bf16 %v1085_v23, %v1085_v23 }
 0x3c7   : > { %3289 = vmatmul.mubr.msk.bf16.vlgmr.msra.gmra.mrb[8].mxu1 %vm966_vm3, %v1086_v24  ;;  %v3480_v24 = vld [vmem:[%s4335_s6 + $0x10] sm:$0xff]  }
 0x3c8   : > { %3300 = vmatprep.mubr.msk.bf16.mxu1 %vm3630_vm0, %v3629_v1  ;;  %3299 = vmatpush3.bf16.msra.mxu1 %v3478_v25 }
 0x3c9   : > { %3310 = vmatprep.subr.bf16.mxu1 %v3629_v1 }
 0x492   : > { %v1021_v28 = vpop.f32.mrb[4].mxu1 }
 0x493   : > { %v1027_v29 = vpack.c.bf16 %v1021_v28, %v1021_v28  ;;  %v3278_v31 = vpop.f32.mrb[5].mxu1 }
 0x494   : > { %v1024_v32 = vpop.f32.mrb[6].mxu1 }
 0x495   : > { %v3279_v33 = vpop.f32.mrb[7].mxu1  ;;  %3301 = vmatmul.mubr.msk.bf16.vlgmr.msra.gmra.mrb[12].mxu1 %vm922_vm2, %v1027_v29 }
 0x496   : > { %3312 = vmatprep.mubr.msk.bf16.mxu1 %vm3630_vm0, %v3629_v1 }
 0x49a   : > { %v1130_v36 = vpop.f32.mrb[8].mxu1 }
 0x49b   : > { %v1136_v39 = vpack.c.bf16 %v1130_v36, %v1130_v36  ;;  %v3290_v40 = vpop.f32.mrb[9].mxu1 }
 0x49c   : > { %v1133_v41 = vpop.f32.mrb[10].mxu1 }
 0x49d   : > { %v3291_v42 = vpop.f32.mrb[11].mxu1  ;;  %3295 = vmatmul.mubr.msk.bf16.vlgmr.msra.gmra.mrb[12].mxu0 %vm922_vm2, %v1136_v39 }
 0x49e   : > { %3305 = vmatpush3.bf16.msra.mxu0 %v1235_v38  ;;  %3306 = vmatprep.mubr.msk.bf16.mxu0 %vm3630_vm0, %v3629_v1 }
 0x49f   : > { %3316 = vmatprep.subr.bf16.mxu0 %v3629_v1 }
 0x4a5   : > { %3307 = vmatmul.mubr.msk.bf16.vlgmr.msra.gmra.mrb[16].mxu0 %vm922_vm2, %v1237_v43 }
 0x4a6   : > { %3318 = vmatprep.mubr.msk.bf16.mxu0 %vm3630_vm0, %v3629_v1  ;;  %3317 = vmatpush3.bf16.msra.mxu0 %v3480_v24 }
 0x4a7   : > { %3328 = vmatprep.subr.bf16.mxu0 %v3629_v1 }
 0x568   : > { %v1229_v58 = vpop.f32.mrb[12].mxu1 }
 0x569   : > { %v3302_v59 = vpop.f32.mrb[13].mxu1 }
 0x56a   : > { %v1232_v60 = vpop.f32.mrb[14].mxu1 }
 0x56b   : > { %v3303_v61 = vpop.f32.mrb[15].mxu1 }
 0x570   : > { %v1180_v62 = vpop.f32.mrb[12].mxu0 }
 0x571   : > { %v3940_v63 = vadd.f32 %v1229_v58, %v1180_v62  ;;  %v3296_v0 = vpop.f32.mrb[13].mxu0 }
 0x572   : > { %v1183_v2 = vpop.f32.mrb[14].mxu0 }
 0x573   : > { %v3297_v4 = vpop.f32.mrb[15].mxu0 }
 0x574   : > { %v3481_v4 = vld [vmem:[%s4335_s6 + $0x18] sm:$0xff]  }
 0x578   : > { %v1275_v5 = vpop.f32.mrb[16].mxu0 }
 0x579   : > { %v3308_v6 = vpop.f32.mrb[17].mxu0  ;;  %v1281_v7 = vsel %vm966_vm3, %v1275_v5, -inf }
 0x57a   : > { %1282 = vmax.xlane.f32.xlu0 %v1281_v7  ;;  %v1278_v8 = vpop.f32.mrb[18].mxu0 }
 0x57b   : > { %v3309_v9 = vpop.f32.mrb[19].mxu0 }
 0x590   : > { %1550 = vrot.lane.b32.xlu0 %v3861_v35, %s3634_s20 }
 0x607   : > { %v1283_v12 = vpop.xlane.xlu0 %1282 }
 0x608   : > { %v1284_v13 = vsub.f32 %v1275_v5, %v1283_v12 }
 0x60a   : > { %v1285_v14 = vmul.f32 1.442695, %v1284_v13 }
 0x60c   : > { %3574 = vpow2.f32 %v1285_v14 }
 0x616   : > { %v3575_v15 = vpop.eup %3574 }
 0x617   : > { %v1287_v16 = vsel %vm966_vm3, %v3575_v15, 0.0 }
 0x618   : > { %1288 = vadd.xlane.f32.xlu1 %v1287_v16 }
 0x629   : > { %1293 = vrot.lane.b32.xlu1 %v3871_v45, %s3633_s24  ;;  %s604_s24 = scalar_lea.vmem %s4347_s18, %s3013_s23 }
 0x62d   : > { %1393 = vrot.lane.b32.xlu1 %v3861_v35, %s3635_s21 }
 0x6a5   : > { %v1289_v17 = vpop.xlane.xlu1 %1288 }
 0x6a6   : > { %3576 = vrcp.f32 %v1289_v17 }
 0x6a9   : > { %v1294_v18 = vpop.permute.xlu1 %1293 }
 0x6aa   : > { %v1299_v19 = vsel %vm983_vm1, %v1294_v18, 0 }
 0x6ab   : > { %3311 = vmatpush3.bf16.msra.mxu1 %v1299_v19 }
 0x6ac   : > { %3322 = vmatprep.subr.bf16.mxu1 %v3629_v1 }
 0x6ad   : > { %v1394_v23 = vpop.permute.xlu1 %1393 }
 0x6b0   : > { %v3577_v20 = vpop.eup %3576 }
 0x6b1   : > { %v1291_v21 = vmul.f32 %v3577_v20, %v3575_v15 }
 0x6b3   : > { %v1292_v22 = vpack.c.bf16 %v1291_v21, %v1291_v21 }
 0x6b5   : > { %3313 = vmatmul.mubr.msk.bf16.vlgmr.msra.gmra.mrb[16].mxu1 %vm966_vm3, %v1292_v22 }
 0x6b6   : > { %3323 = vmatpush3.bf16.msra.mxu1 %v1392_v48  ;;  %3324 = vmatprep.mubr.msk.bf16.mxu1 %vm3630_vm0, %v3629_v1 }
 0x6b7   : > { %3334 = vmatprep.subr.bf16.mxu1 %v3629_v1 }
 0x6bd   : > { %3325 = vmatmul.mubr.msk.bf16.vlgmr.msra.gmra.mrb[20].mxu1 %vm922_vm2, %v1394_v23 }
 0x6be   : > { %3336 = vmatprep.mubr.msk.bf16.mxu1 %vm3630_vm0, %v3629_v1  ;;  %3335 = vmatpush3.bf16.msra.mxu1 %v3481_v4 }
 0x6bf   : > { %3346 = vmatprep.subr.bf16.mxu1 %v3629_v1 }
 0x788   : > { %v1335_v25 = vpop.f32.mrb[16].mxu1 }
 0x789   : > { %v1341_v26 = vpack.c.bf16 %v1335_v25, %v1335_v25  ;;  %v3314_v27 = vpop.f32.mrb[17].mxu1 }
 0x78a   : > { %v1338_v28 = vpop.f32.mrb[18].mxu1 }
 0x78b   : > { %v3315_v29 = vpop.f32.mrb[19].mxu1  ;;  %3319 = vmatmul.mubr.msk.bf16.vlgmr.msra.gmra.mrb[20].mxu0 %vm922_vm2, %v1341_v26 }
 0x78c   : > { %3330 = vmatprep.mubr.msk.bf16.mxu0 %vm3630_vm0, %v3629_v1 }
 0x790   : > { %v1432_v31 = vpop.f32.mrb[20].mxu1 }
 0x791   : > { %v3326_v32 = vpop.f32.mrb[21].mxu1  ;;  %v1438_v33 = vsel %vm966_vm3, %v1432_v31, -inf }
 0x792   : > { %1439 = vmax.xlane.f32.xlu1 %v1438_v33  ;;  %v1435_v34 = vpop.f32.mrb[22].mxu1  ;;  %v3482_v32 = vld [vmem:[%s4335_s6 + $0x20] sm:$0xff]  }
 0x793   : > { %v3327_v36 = vpop.f32.mrb[23].mxu1 }
 0x81f   : > { %v1440_v38 = vpop.xlane.xlu1 %1439 }
 0x820   : > { %v1441_v39 = vsub.f32 %v1432_v31, %v1440_v38 }
 0x822   : > { %v1442_v40 = vmul.f32 1.442695, %v1441_v39 }
 0x824   : > { %3578 = vpow2.f32 %v1442_v40 }
 0x82e   : > { %v3579_v41 = vpop.eup %3578 }
 0x82f   : > { %v1444_v42 = vsel %vm966_vm3, %v3579_v41, 0.0 }
 0x830   : > { %1445 = vadd.xlane.f32.xlu1 %v1444_v42 }
 0x841   : > { %1450 = vrot.lane.b32.xlu1 %v3871_v45, %s3635_s21 }
 0x85e   : > { %v1385_v43 = vpop.f32.mrb[20].mxu0 }
 0x85f   : > { %v1391_v44 = vadd.f32 %v1385_v43, %v3940_v63  ;;  %v3320_v46 = vpop.f32.mrb[21].mxu0  ;;  %v1551_v63 = vpop.permute.xlu0 %1550 }
 0x860   : > { %v1388_v48 = vpop.f32.mrb[22].mxu0 }
 0x861   : > { %v3321_v58 = vpop.f32.mrb[23].mxu0 }
 0x8bd   : > { %v1446_v59 = vpop.xlane.xlu1 %1445 }
 0x8be   : > { %3580 = vrcp.f32 %v1446_v59 }
 0x8c1   : > { %v1451_v60 = vpop.permute.xlu1 %1450 }
 0x8c2   : > { %v1456_v61 = vsel %vm983_vm1, %v1451_v60, 0 }
 0x8c3   : > { %3329 = vmatpush3.bf16.msra.mxu0 %v1456_v61 }
 0x8c4   : > { %3340 = vmatprep.subr.bf16.mxu0 %v3629_v1 }
 0x8c8   : > { %v3581_v62 = vpop.eup %3580 }
 0x8c9   : > { %v1448_v0 = vmul.f32 %v3581_v62, %v3579_v41 }
 0x8cb   : > { %v1449_v2 = vpack.c.bf16 %v1448_v0, %v1448_v0 }
 0x8cd   : > { %3331 = vmatmul.mubr.msk.bf16.vlgmr.msra.gmra.mrb[24].mxu0 %vm966_vm3, %v1449_v2 }
 0x8ce   : > { %3341 = vmatpush3.bf16.msra.mxu0 %v1549_v51  ;;  %3342 = vmatprep.mubr.msk.bf16.mxu0 %vm3630_vm0, %v3629_v1 }
 0x8cf   : > { %3352 = vmatprep.subr.bf16.mxu0 %v3629_v1 }
 0x8d5   : > { %3343 = vmatmul.mubr.msk.bf16.vlgmr.msra.gmra.mrb[28].mxu0 %vm922_vm2, %v1551_v63 }
 0x8d6   : > { %3354 = vmatprep.mubr.msk.bf16.mxu0 %vm3630_vm0, %v3629_v1  ;;  %3353 = vmatpush3.bf16.msra.mxu0 %v3482_v32  ;;  %v2020_v32 = vpack.c.bf16 %v3947_v11, %v3945_v10 }
 0x8d7   : > { %3364 = vmatprep.subr.bf16.mxu0 %v3629_v1 }
 0x9a0   : > { %v1492_v49 = vpop.f32.mrb[24].mxu0 }
 0x9a1   : > { %v1498_v50 = vpack.c.bf16 %v1492_v49, %v1492_v49  ;;  %v3332_v51 = vpop.f32.mrb[25].mxu0 }
 0x9a2   : > { %v1495_v5 = vpop.f32.mrb[26].mxu0 }
 0x9a3   : > { %v3333_v6 = vpop.f32.mrb[27].mxu0  ;;  %3337 = vmatmul.mubr.msk.bf16.vlgmr.msra.gmra.mrb[24].mxu1 %vm922_vm2, %v1498_v50  ;;  %v3483_v5 = vld [vmem:[%s4335_s6 + $0x28] sm:$0xff]  }
 0x9a4   : > { %3348 = vmatprep.mubr.msk.bf16.mxu1 %vm3630_vm0, %v3629_v1 }
 0x9a8   : > { %v1589_v7 = vpop.f32.mrb[28].mxu0 }
 0x9a9   : > { %v3344_v8 = vpop.f32.mrb[29].mxu0  ;;  %v1595_v9 = vsel %vm966_vm3, %v1589_v7, -inf }
 0x9aa   : > { %1596 = vmax.xlane.f32.xlu1 %v1595_v9  ;;  %v1592_v12 = vpop.f32.mrb[30].mxu0 }
 0x9ab   : > { %v3345_v13 = vpop.f32.mrb[31].mxu0 }
 0x9bb   : > { %1607 = vrot.lane.b32.xlu1 %v3871_v45, %s3634_s20 }
 0xa37   : > { %v1597_v14 = vpop.xlane.xlu1 %1596 }
 0xa38   : > { %v1598_v15 = vsub.f32 %v1589_v7, %v1597_v14 }
 0xa3a   : > { %v1599_v16 = vmul.f32 1.442695, %v1598_v15 }
 0xa3b   : > { %v1608_v17 = vpop.permute.xlu1 %1607 }
 0xa3c   : > { %3582 = vpow2.f32 %v1599_v16  ;;  %v1613_v18 = vsel %vm983_vm1, %v1608_v17, 0 }
 0xa3d   : > { %3347 = vmatpush3.bf16.msra.mxu1 %v1613_v18 }
 0xa3e   : > { %3358 = vmatprep.subr.bf16.mxu1 %v3629_v1 }
 0xa46   : > { %v3583_v19 = vpop.eup %3582 }
 0xa47   : > { %v1601_v20 = vsel %vm966_vm3, %v3583_v19, 0.0 }
 0xa48   : > { %1602 = vadd.xlane.f32.xlu0 %v1601_v20 }
 0xa5e   : > { %1707 = vrot.lane.b32.xlu0 %v3861_v35, %s3636_s25 }
 0xa76   : > { %v1542_v21 = vpop.f32.mrb[24].mxu1 }
 0xa77   : > { %v1548_v22 = vadd.f32 %v1542_v21, %v1391_v44  ;;  %v3338_v23 = vpop.f32.mrb[25].mxu1 }
 0xa78   : > { %v1545_v24 = vpop.f32.mrb[26].mxu1 }
 0xa79   : > { %v3339_v25 = vpop.f32.mrb[27].mxu1 }
 0xad5   : > { %v1603_v26 = vpop.xlane.xlu0 %1602 }
 0xad6   : > { %3584 = vrcp.f32 %v1603_v26 }
 0xad9   : > { %v1708_v31 = vpop.permute.xlu0 %1707 }
 0xae0   : > { %v3585_v27 = vpop.eup %3584 }
 0xae1   : > { %v1605_v28 = vmul.f32 %v3585_v27, %v3583_v19 }
 0xae3   : > { %v1606_v29 = vpack.c.bf16 %v1605_v28, %v1605_v28 }
 0xae5   : > { %3349 = vmatmul.mubr.msk.bf16.vlgmr.msra.gmra.mrb[28].mxu1 %vm966_vm3, %v1606_v29 }
 0xae6   : > { %3359 = vmatpush3.bf16.msra.mxu1 %v1706_v54  ;;  %3360 = vmatprep.mubr.msk.bf16.mxu1 %vm3630_vm0, %v3629_v1 }
 0xae7   : > { %3370 = vmatprep.subr.bf16.mxu1 %v3629_v1 }
 0xaed   : > { %3361 = vmatmul.mubr.msk.bf16.vlgmr.msra.gmra.mrb[32].mxu1 %vm922_vm2, %v1708_v31 }
 0xaee   : > { %3372 = vmatprep.mubr.msk.bf16.mxu1 %vm3630_vm0, %v3629_v1  ;;  %3371 = vmatpush3.bf16.msra.mxu1 %v3483_v5 }
 0xaef   : > { %3382 = vmatprep.subr.bf16.mxu1 %v3629_v1 }
 0xbb8   : > { %v1649_v52 = vpop.f32.mrb[28].mxu1 }
 0xbb9   : > { %v1655_v53 = vpack.c.bf16 %v1649_v52, %v1649_v52  ;;  %v3350_v54 = vpop.f32.mrb[29].mxu1  ;;  %v3484_v52 = vld [vmem:[%s4335_s6 + $0x30] sm:$0xff]  }
 0xbba   : > { %v1652_v33 = vpop.f32.mrb[30].mxu1 }
 0xbbb   : > { %v3351_v34 = vpop.f32.mrb[31].mxu1  ;;  %3355 = vmatmul.mubr.msk.bf16.vlgmr.msra.gmra.mrb[32].mxu0 %vm922_vm2, %v1655_v53 }
 0xbbc   : > { %3366 = vmatprep.mubr.msk.bf16.mxu0 %vm3630_vm0, %v3629_v1 }
 0xbc0   : > { %v1746_v36 = vpop.f32.mrb[32].mxu1 }
 0xbc1   : > { %v3362_v38 = vpop.f32.mrb[33].mxu1  ;;  %v1752_v39 = vsel %vm966_vm3, %v1746_v36, -inf }
 0xbc2   : > { %1753 = vmax.xlane.f32.xlu1 %v1752_v39  ;;  %v1749_v40 = vpop.f32.mrb[34].mxu1 }
 0xbc3   : > { %v3363_v41 = vpop.f32.mrb[35].mxu1 }
 0xbd3   : > { %1764 = vrot.lane.b32.xlu1 %v3871_v45, %s3636_s25 }
 0xc4f   : > { %v1754_v42 = vpop.xlane.xlu1 %1753 }
 0xc50   : > { %v1755_v43 = vsub.f32 %v1746_v36, %v1754_v42 }
 0xc52   : > { %v1756_v44 = vmul.f32 1.442695, %v1755_v43 }
 0xc53   : > { %v1765_v46 = vpop.permute.xlu1 %1764 }
 0xc54   : > { %3586 = vpow2.f32 %v1756_v44  ;;  %v1770_v48 = vsel %vm983_vm1, %v1765_v46, 0 }
 0xc55   : > { %3365 = vmatpush3.bf16.msra.mxu0 %v1770_v48 }
 0xc56   : > { %3376 = vmatprep.subr.bf16.mxu0 %v3629_v1 }
 0xc5e   : > { %v3587_v58 = vpop.eup %3586 }
 0xc5f   : > { %v1758_v59 = vsel %vm966_vm3, %v3587_v58, 0.0 }
 0xc60   : > { %1759 = vadd.xlane.f32.xlu0 %v1758_v59 }
 0xc76   : > { %1864 = vrot.lane.b32.xlu0 %v3861_v35, %s3637_s19 }
 0xc8e   : > { %v1699_v60 = vpop.f32.mrb[32].mxu0 }
 0xc8f   : > { %v1705_v61 = vadd.f32 %v1699_v60, %v1548_v22  ;;  %v3356_v62 = vpop.f32.mrb[33].mxu0 }
 0xc90   : > { %v1702_v0 = vpop.f32.mrb[34].mxu0 }
 0xc91   : > { %v3357_v2 = vpop.f32.mrb[35].mxu0 }
 0xced   : > { %v1760_v63 = vpop.xlane.xlu0 %1759 }
 0xcee   : > { %3588 = vrcp.f32 %v1760_v63 }
 0xcf1   : > { %v1865_v51 = vpop.permute.xlu0 %1864 }
 0xcf8   : > { %v3589_v4 = vpop.eup %3588 }
 0xcf9   : > { %v1762_v49 = vmul.f32 %v3589_v4, %v3587_v58  ;;  %v3485_v4 = vld [vmem:[%s4335_s6 + $0x38] sm:$0xff]  }
 0xcfb   : > { %v1763_v50 = vpack.c.bf16 %v1762_v49, %v1762_v49 }
 0xcfd   : > { %3367 = vmatmul.mubr.msk.bf16.vlgmr.msra.gmra.mrb[36].mxu0 %vm966_vm3, %v1763_v50 }
 0xcfe   : > { %3377 = vmatpush3.bf16.msra.mxu0 %v1863_v57  ;;  %3378 = vmatprep.mubr.msk.bf16.mxu0 %vm3630_vm0, %v3629_v1 }
 0xcff   : > { %3388 = vmatprep.subr.bf16.mxu0 %v3629_v1 }
 0xd05   : > { %3379 = vmatmul.mubr.msk.bf16.vlgmr.msra.gmra.mrb[40].mxu0 %vm922_vm2, %v1865_v51 }
 0xd06   : > { %3390 = vmatprep.mubr.msk.bf16.mxu0 %vm3630_vm0, %v3629_v1  ;;  %3389 = vmatpush3.bf16.msra.mxu0 %v3484_v52  ;;  %v3494_v52 = vld [vmem:[%s4341_s12 + $0x24] ss:$16 sps:$4 sm:$0xff]  }
 0xd07   : > { %3400 = vmatprep.subr.bf16.mxu0 %v3629_v1 }
 0xdd0   : > { %v1806_v55 = vpop.f32.mrb[36].mxu0 }
 0xdd1   : > { %v1812_v56 = vpack.c.bf16 %v1806_v55, %v1806_v55  ;;  %v3368_v57 = vpop.f32.mrb[37].mxu0 }
 0xdd2   : > { %v1809_v6 = vpop.f32.mrb[38].mxu0 }
 0xdd3   : > { %v3369_v7 = vpop.f32.mrb[39].mxu0  ;;  %3373 = vmatmul.mubr.msk.bf16.vlgmr.msra.gmra.mrb[36].mxu1 %vm922_vm2, %v1812_v56 }
 0xdd4   : > { %3384 = vmatprep.mubr.msk.bf16.mxu1 %vm3630_vm0, %v3629_v1 }
 0xdd8   : > { %v1903_v8 = vpop.f32.mrb[40].mxu0 }
 0xdd9   : > { %v3380_v9 = vpop.f32.mrb[41].mxu0  ;;  %v1909_v12 = vsel %vm966_vm3, %v1903_v8, -inf }
 0xdda   : > { %1910 = vmax.xlane.f32.xlu1 %v1909_v12  ;;  %v1906_v13 = vpop.f32.mrb[42].mxu0  ;;  %v3604_v9 = vld [vmem:[%s3821_s30] sm:$0xff] }
 0xddb   : > { %v3381_v14 = vpop.f32.mrb[43].mxu0 }
 0xdeb   : > { %1921 = vrot.lane.b32.xlu1 %v3871_v45, %s3637_s19 }
 0xe67   : > { %v1911_v15 = vpop.xlane.xlu1 %1910 }
 0xe68   : > { %v1912_v16 = vsub.f32 %v1903_v8, %v1911_v15  ;;  %v3072_v8 = vld [vmem:[%s4336_s7] ss:$0 sm:$0xff] }
 0xe6a   : > { %v1913_v17 = vmul.f32 1.442695, %v1912_v16 }
 0xe6b   : > { %v1922_v18 = vpop.permute.xlu1 %1921 }
 0xe6c   : > { %3590 = vpow2.f32 %v1913_v17  ;;  %v1927_v19 = vsel %vm983_vm1, %v1922_v18, 0 }
 0xe6d   : > { %3383 = vmatpush3.bf16.msra.mxu1 %v1927_v19 }
 0xe6e   : > { %3394 = vmatprep.subr.bf16.mxu1 %v3629_v1 }
 0xe76   : > { %v3591_v20 = vpop.eup %3590 }
 0xe77   : > { %v1915_v21 = vsel %vm966_vm3, %v3591_v20, 0.0 }
 0xe78   : > { %1916 = vadd.xlane.f32.xlu0 %v1915_v21 }
 0xe8e   : > { %2021 = vrot.lane.b32.xlu0 %v3861_v35, %s3638_s22 }
 0xea6   : > { %v1856_v22 = vpop.f32.mrb[36].mxu1 }
 0xea7   : > { %v1862_v23 = vadd.f32 %v1856_v22, %v1705_v61  ;;  %v3374_v24 = vpop.f32.mrb[37].mxu1  ;;  %v3073_v22 = vld [vmem:[%s4337_s8] ss:$0 sm:$0xff] }
 0xea8   : > { %v1859_v25 = vpop.f32.mrb[38].mxu1  ;;  %v3074_v24 = vld [vmem:[%s4338_s9] ss:$0 sm:$0xff] }
 0xea9   : > { %v3375_v26 = vpop.f32.mrb[39].mxu1 }
 0xf05   : > { %v1917_v27 = vpop.xlane.xlu0 %1916 }
 0xf06   : > { %3592 = vrcp.f32 %v1917_v27 }
 0xf09   : > { %v2022_v35 = vpop.permute.xlu0 %2021 }
 0xf10   : > { %v3593_v28 = vpop.eup %3592 }
 0xf11   : > { %v1919_v29 = vmul.f32 %v3593_v28, %v3591_v20 }
 0xf13   : > { %v1920_v31 = vpack.c.bf16 %v1919_v29, %v1919_v29  ;;  %v3486_v29 = vld [vmem:[%s4341_s12] ss:$16 sps:$4 sm:$0xff]  }
 0xf15   : > { %3385 = vmatmul.mubr.msk.bf16.vlgmr.msra.gmra.mrb[40].mxu1 %vm966_vm3, %v1920_v31  ;;  %v3488_v31 = vld [vmem:[%s4341_s12 + $0x4] ss:$16 sps:$4 sm:$0xff]  }
 0xf16   : > { %3395 = vmatpush3.bf16.msra.mxu1 %v2020_v32  ;;  %3396 = vmatprep.mubr.msk.bf16.mxu1 %vm3630_vm0, %v3629_v1  ;;  %v3489_v32 = vld [vmem:[%s4341_s12 + $0x8] ss:$16 sps:$4 sm:$0xff]  }
 0xf17   : > { %3406 = vmatprep.subr.bf16.mxu1 %v3629_v1 }
 0xf1d   : > { %3397 = vmatmul.mubr.msk.bf16.vlgmr.msra.gmra.mrb[44].mxu1 %vm922_vm2, %v2022_v35  ;;  %v3491_v35 = vld [vmem:[%s4341_s12 + $0xc] ss:$16 sps:$4 sm:$0xff]  }
 0xf1e   : > { %3408 = vmatprep.mubr.msk.bf16.mxu1 %vm3630_vm0, %v3629_v1  ;;  %3407 = vmatpush3.bf16.msra.mxu1 %v3485_v4  ;;  %v3525_v4 = vld [vmem:[%s4341_s12 + $0xc8] ss:$16 sps:$4 sm:$0xff]  }
 0xf1f   : > { %2505 = vmatprep.subr.bf16.mxu1 %v3491_v35  ;;  %v3552_v35 = vld [vmem:[%s4343_s14 + $0x20] sm:$0xff]  }
 0xfe8   : > { %v1963_v10 = vpop.f32.mrb[40].mxu1 }
 0xfe9   : > { %v1969_v11 = vpack.c.bf16 %v1963_v10, %v1963_v10  ;;  %v3386_v53 = vpop.f32.mrb[41].mxu1  ;;  %v3497_v10 = vld [vmem:[%s4341_s12 + $0x2c] ss:$16 sps:$4 sm:$0xff]  }
 0xfea   : > { %v1966_v54 = vpop.f32.mrb[42].mxu1  ;;  %v3495_v53 = vld [vmem:[%s4341_s12 + $0x28] ss:$16 sps:$4 sm:$0xff]  }
 0xfeb   : > { %v3387_v33 = vpop.f32.mrb[43].mxu1  ;;  %3391 = vmatmul.mubr.msk.bf16.vlgmr.msra.gmra.mrb[44].mxu0 %vm922_vm2, %v1969_v11  ;;  %v3492_v11 = vld [vmem:[%s4341_s12 + $0x20] ss:$16 sps:$4 sm:$0xff]   ;;  %v3500_v54 = vld [vmem:[%s4341_s12 + $0x44] ss:$16 sps:$4 sm:$0xff]  }
 0xfec   : > { %3402 = vmatprep.mubr.msk.bf16.mxu0 %vm3630_vm0, %v3629_v1  ;;  %v3503_v33 = vld [vmem:[%s4341_s12 + $0x4c] ss:$16 sps:$4 sm:$0xff]  }
 0xff0   : > { %v2060_v34 = vpop.f32.mrb[44].mxu1 }
 0xff1   : > { %v3398_v36 = vpop.f32.mrb[45].mxu1  ;;  %v2066_v38 = vsel %vm966_vm3, %v2060_v34, -inf }
 0xff2   : > { %2067 = vmax.xlane.f32.xlu1 %v2066_v38  ;;  %v2063_v39 = vpop.f32.mrb[46].mxu1  ;;  %v3501_v36 = vld [vmem:[%s4341_s12 + $0x48] ss:$16 sps:$4 sm:$0xff]  }
 0xff3   : > { %v3399_v40 = vpop.f32.mrb[47].mxu1 }
0x1003   : > { %2078 = vrot.lane.b32.xlu1 %v3871_v45, %s3638_s22  ;;  %s4357_s22 = sld [smem:[#allocation5_spill]] }
0x1009   : > { %s597_s2 = scalar_lea.vmem %s4357_s22, %s4363_s27 }
0x100a   : > { %v3075_v26 = vld [vmem:[%s597_s2] ss:$0 sm:$0xff] }
0x107f   : > { %v2068_v41 = vpop.xlane.xlu1 %2067 }
0x1080   : > { %v2069_v42 = vsub.f32 %v2060_v34, %v2068_v41  ;;  %v3498_v34 = vld [vmem:[%s4341_s12 + $0x40] ss:$16 sps:$4 sm:$0xff]  }
0x1082   : > { %v2070_v43 = vmul.f32 1.442695, %v2069_v42  ;;  %v3506_v42 = vld [vmem:[%s4341_s12 + $0x64] ss:$16 sps:$4 sm:$0xff]  }
0x1083   : > { %v2079_v44 = vpop.permute.xlu1 %2078 }
0x1084   : > { %3594 = vpow2.f32 %v2070_v43  ;;  %v2084_v46 = vsel %vm983_vm1, %v2079_v44, 0  ;;  %v3509_v43 = vld [vmem:[%s4341_s12 + $0x6c] ss:$16 sps:$4 sm:$0xff]   ;;  %v3504_v44 = vld [vmem:[%s4341_s12 + $0x60] ss:$16 sps:$4 sm:$0xff]  }
0x1085   : > { %3401 = vmatpush3.bf16.msra.mxu0 %v2084_v46  ;;  %v3507_v46 = vld [vmem:[%s4341_s12 + $0x68] ss:$16 sps:$4 sm:$0xff]  }
0x1086   : > { %2464 = vmatprep.subr.bf16.mxu0 %v3488_v31  ;;  %v3550_v31 = vld [vmem:[%s4343_s14 + $0x60] sm:$0xff]  }
0x108e   : > { %v3595_v48 = vpop.eup %3594 }
0x108f   : > { %v2072_v1 = vsel %vm966_vm3, %v3595_v48, 0.0 }
0x1090   : > { %2073 = vadd.xlane.f32.xlu0 %v2072_v1  ;;  %v3515_v1 = vld [vmem:[%s4341_s12 + $0x8c] ss:$16 sps:$4 sm:$0xff]  }
0x10be   : > { %v2013_v58 = vpop.f32.mrb[44].mxu0 }
0x10bf   : > { %v2019_v59 = vadd.f32 %v2013_v58, %v1862_v23  ;;  %v3392_v60 = vpop.f32.mrb[45].mxu0  ;;  %v3510_v58 = vld [vmem:[%s4341_s12 + $0x80] ss:$16 sps:$4 sm:$0xff]  }
0x10c0   : > { %v2016_v61 = vpop.f32.mrb[46].mxu0  ;;  %v3518_v60 = vld [vmem:[%s4341_s12 + $0xa4] ss:$16 sps:$4 sm:$0xff]  }
0x10c1   : > { %v3393_v62 = vpop.f32.mrb[47].mxu0  ;;  %v3521_v61 = vld [vmem:[%s4341_s12 + $0xac] ss:$16 sps:$4 sm:$0xff]  }
0x10c2   : > { %v3516_v62 = vld [vmem:[%s4341_s12 + $0xa0] ss:$16 sps:$4 sm:$0xff]  }
0x111d   : > { %v2074_v0 = vpop.xlane.xlu0 %2073 }
0x111e   : > { %3596 = vrcp.f32 %v2074_v0  ;;  %v3519_v0 = vld [vmem:[%s4341_s12 + $0xa8] ss:$16 sps:$4 sm:$0xff]  }
0x1128   : > { %v3597_v45 = vpop.eup %3596 }
0x1129   : > { %v2076_v2 = vmul.f32 %v3597_v45, %v3595_v48  ;;  %v3512_v48 = vld [vmem:[%s4341_s12 + $0x84] ss:$16 sps:$4 sm:$0xff]  }
0x112a   : > { %v3524_v45 = vld [vmem:[%s4341_s12 + $0xc4] ss:$16 sps:$4 sm:$0xff]  }
0x112b   : > { %v2077_v63 = vpack.c.bf16 %v2076_v2, %v2076_v2  ;;  %v3527_v2 = vld [vmem:[%s4341_s12 + $0xcc] ss:$16 sps:$4 sm:$0xff]  }
0x112d   : > { %3403 = vmatmul.mubr.msk.bf16.vlgmr.msra.gmra.mrb[48].mxu0 %vm966_vm3, %v2077_v63  ;;  %v3522_v63 = vld [vmem:[%s4341_s12 + $0xc0] ss:$16 sps:$4 sm:$0xff]  }
0x112e   : > { %2496 = vmatprep.mubr.bf16.mxu0 %v3631_v3  ;;  %2465 = vmatpush1.bf16.msra.mxu0 %v3486_v29  ;;  %v3549_v29 = vld [vmem:[%s4343_s14 + $0x98] sm:$0xff]  }
0x112f   : > { %2466 = vmatprep.subr.bf16.mxu0 %v3494_v52  ;;  %v3553_v52 = vld [vmem:[%s4343_s14 + $0xa0] sm:$0xff]  }
0x1132   : > { %2467 = vmatpush1.bf16.msra.mxu0 %v3492_v11  ;;  %v3555_v11 = vld [vmem:[%s4343_s14 + $0xe8] sm:$0xff]  }
0x1133   : > { %2468 = vmatprep.subr.bf16.mxu0 %v3500_v54  ;;  %v3557_v54 = vld [vmem:[%s4343_s14 + $0xa8] sm:$0xff]  }
0x1136   : > { %2469 = vmatpush1.bf16.msra.mxu0 %v3498_v34  ;;  %v3559_v34 = vld [vmem:[%s4343_s14 + $0xf0] sm:$0xff]  }
0x1137   : > { %2470 = vmatprep.subr.bf16.mxu0 %v3506_v42  ;;  %v3565_v42 = vld [vmem:[%s4343_s14 + $0xb8] sm:$0xff]  }
0x113a   : > { %2471 = vmatpush1.bf16.msra.mxu0 %v3504_v44  ;;  %v2282_v44 = vld [vmem:[%s4342_s13] sm:$0xf] }
0x113b   : > { %2472 = vmatprep.subr.bf16.mxu0 %v3512_v48  ;;  %v2287_v48 = vrot.slane %v2282_v44, %v743_v47 }
0x113e   : > { %2473 = vmatpush1.bf16.msra.mxu0 %v3510_v58  ;;  %v2291_v58 = vrot.slane %v2282_v44, %v747_v37 }
0x113f   : > { %2474 = vmatprep.subr.bf16.mxu0 %v3518_v60 }
0x1142   : > { %2475 = vmatpush1.bf16.msra.mxu0 %v3516_v62 }
0x1143   : > { %2476 = vmatprep.subr.bf16.mxu0 %v3524_v45 }
0x1146   : > { %2477 = vmatpush1.bf16.msra.mxu0 %v3522_v63 }
0x1200   : > { %v2120_v49 = vpop.f32.mrb[48].mxu0 }
0x1201   : > { %v2126_v50 = vpack.c.bf16 %v2120_v49, %v2120_v49  ;;  %v3404_v51 = vpop.f32.mrb[49].mxu0  ;;  %v3530_v49 = vld [vmem:[%s4341_s12 + $0xe4] ss:$16 sps:$4 sm:$0xff]  }
0x1202   : > { %v2123_v5 = vpop.f32.mrb[50].mxu0  ;;  %v3528_v51 = vld [vmem:[%s4341_s12 + $0xe0] ss:$16 sps:$4 sm:$0xff]   ;;  %2478 = vmatprep.subr.bf16.mxu0 %v3530_v49 }
0x1203   : > { %v3405_v55 = vpop.f32.mrb[51].mxu0  ;;  %3409 = vmatmul.mubr.msk.bf16.vlgmr.msra.gmra.mrb[48].mxu1 %vm922_vm2, %v2126_v50  ;;  %v3533_v50 = vld [vmem:[%s4341_s12 + $0xec] ss:$16 sps:$4 sm:$0xff]   ;;  %v3531_v5 = vld [vmem:[%s4341_s12 + $0xe8] ss:$16 sps:$4 sm:$0xff]   ;;  %2479 = vmatpush1.bf16.msra.mxu0 %v3528_v51 }
0x1204   : > { %2537 = vmatprep.mubr.bf16.mxu1 %v3631_v3  ;;  %2506 = vmatpush1.bf16.msra.mxu1 %v3489_v32  ;;  %v3534_v55 = vld [vmem:[%s4343_s14 + $0x40] sm:$0xff]  }
0x1205   : > { %2507 = vmatprep.subr.bf16.mxu1 %v3497_v10  ;;  %3204 = vmatprep.subr.bf16.mxu0 %v3534_v55  ;;  %v3551_v32 = vld [vmem:[%s4343_s14 + $0xe0] sm:$0xff]   ;;  %v3554_v10 = vld [vmem:[%s4343_s14 + $0x68] sm:$0xff]  }
0x1208   : > { %2508 = vmatpush1.bf16.msra.mxu1 %v3495_v53  ;;  %v3556_v53 = vld [vmem:[%s4343_s14 + $0x28] sm:$0xff]  }
0x1209   : > { %2509 = vmatprep.subr.bf16.mxu1 %v3503_v33  ;;  %v3558_v33 = vld [vmem:[%s4343_s14 + $0x70] sm:$0xff]  }
0x120c   : > { %2510 = vmatpush1.bf16.msra.mxu1 %v3501_v36  ;;  %v3560_v36 = vld [vmem:[%s4343_s14 + $0x30] sm:$0xff]  }
0x120d   : > { %2511 = vmatprep.subr.bf16.mxu1 %v3509_v43  ;;  %v2294_v43 = vsub.s32 2, %v3859_v30 }
0x1210   : > { %2512 = vmatpush1.bf16.msra.mxu1 %v3507_v46  ;;  %v2298_v46 = vsub.s32 3, %v3859_v30 }
0x1211   : > { %2513 = vmatprep.subr.bf16.mxu1 %v3515_v1  ;;  %v2295_v1 = vrot.slane %v2282_v44, %v2294_v43 }
0x12d6   : > { %v2170_v56 = vpop.f32.mrb[48].mxu1 }
0x12d7   : > { %v2176_v57 = vadd.f32 %v2170_v56, %v2019_v59  ;;  %v3410_v6 = vpop.f32.mrb[49].mxu1  ;;  %v3513_v59 = vld [vmem:[%s4341_s12 + $0x88] ss:$16 sps:$4 sm:$0xff]   ;;  %v3535_v56 = vld [vmem:[%s4343_s14 + $0xc0] sm:$0xff]  }
0x12d8   : > { %v2173_v7 = vpop.f32.mrb[50].mxu1  ;;  %2514 = vmatpush1.bf16.msra.mxu1 %v3513_v59  ;;  %v2299_v59 = vrot.slane %v2282_v44, %v2298_v46 }
0x12d9   : > { %v2177_v12 = vadd.f32 %v3604_v9, %v2176_v57  ;;  %v3411_v13 = vpop.f32.mrb[51].mxu1  ;;  %2515 = vmatprep.subr.bf16.mxu1 %v3521_v61  ;;  %v3076_v9 = vld [vmem:[%s4339_s10] ss:$0 sm:$0xff] }
0x12da   : > { %v3077_v13 = vld [vmem:[%s4340_s11] ss:$0 sm:$0xff] }
0x12db   : > { %v2185_v14 = vadd.f32 %v3072_v8, %v2177_v12 }
0x12dc   : > { %2516 = vmatpush1.bf16.msra.mxu1 %v3519_v0 }
0x12dd   : > { %2188 = vadd.xlane.f32.xlu0 %v2185_v14  ;;  %2517 = vmatprep.subr.bf16.mxu1 %v3527_v2 }
0x12e0   : > { %2518 = vmatpush1.bf16.msra.mxu1 %v3525_v4 }
0x12e1   : > { %2519 = vmatprep.subr.bf16.mxu1 %v3533_v50 }
0x12e4   : > { %2520 = vmatpush1.bf16.msra.mxu1 %v3531_v5 }
0x12e5   : > { %3226 = vmatprep.subr.bf16.mxu1 %v3535_v56 }
0x136a   : > { %v2189_v15 = vpop.xlane.xlu0 %2188 }
0x136b   : > { %v2191_v16 = vmul.f32 0.0078125, %v2189_v15 }
0x136d   : > { %v2192_v17 = vsub.f32 %v2185_v14, %v2191_v16  ;;  %v3536_v16 = vld [vmem:[%s4343_s14] sm:$0xff]  }
0x136f   : > { %v2193_v18 = vmul.f32 %v2192_v17, %v2192_v17 }
0x1371   : > { %2194 = vadd.xlane.f32.xlu0 %v2193_v18 }
0x13fe   : > { %v2195_v3 = vpop.xlane.xlu0 %2194 }
0x13ff   : > { %v2196_v19 = vmul.f32 0.0078125, %v2195_v3  ;;  %v3538_v3 = vld [vmem:[%s4343_s14 + $0x48] sm:$0xff]  }
0x1401   : > { %v2197_v20 = vadd.f32 1e-05, %v2196_v19  ;;  %v3539_v19 = vld [vmem:[%s4343_s14 + $0xc8] sm:$0xff]  }
0x1403   : > { %3598 = vrsqrt.f32 %v2197_v20  ;;  %v3540_v20 = vld [vmem:[%s4343_s14 + $0x8] sm:$0xff]  }
0x140d   : > { %v3599_v21 = vpop.eup %3598 }
0x140e   : > { %v2199_v23 = vmul.f32 %v3599_v21, %v2192_v17  ;;  %v3537_v17 = vld [vmem:[%s4343_s14 + $0x80] sm:$0xff]   ;;  %v3541_v21 = vld [vmem:[%s4343_s14 + $0x88] sm:$0xff]  }
0x1410   : > { %v2206_v25 = vmul.f32 %v3073_v22, %v2199_v23  ;;  %v3542_v22 = vld [vmem:[%s4343_s14 + $0x50] sm:$0xff]  }
0x1411   : > { %v3543_v23 = vld [vmem:[%s4343_s14 + $0xd0] sm:$0xff]  }
0x1412   : > { %v2213_v27 = vadd.f32 %v3074_v24, %v2206_v25  ;;  %v3544_v24 = vld [vmem:[%s4343_s14 + $0x10] sm:$0xff]  }
0x1413   : > { %v3545_v25 = vld [vmem:[%s4343_s14 + $0x90] sm:$0xff]  }
0x1414   : > { %v2221_v28 = vadd.f32 %v3075_v26, %v2213_v27  ;;  %v3546_v26 = vld [vmem:[%s4343_s14 + $0x58] sm:$0xff]  }
0x1415   : > { %v3547_v27 = vld [vmem:[%s4343_s14 + $0xd8] sm:$0xff]  }
0x1416   : > { %2224 = vadd.xlane.f32.xlu0 %v2221_v28 }
0x14a3   : > { %v2225_v38 = vpop.xlane.xlu0 %2224 }
0x14a4   : > { %v2226_v39 = vmul.f32 0.0078125, %v2225_v38  ;;  %v3561_v38 = vld [vmem:[%s4343_s14 + $0xb0] sm:$0xff]  }
0x14a6   : > { %v2227_v40 = vsub.f32 %v2221_v28, %v2226_v39  ;;  %v3548_v28 = vld [vmem:[%s4343_s14 + $0x18] sm:$0xff]  }
0x14a7   : > { %v3562_v39 = vld [vmem:[%s4343_s14 + $0x78] sm:$0xff]  }
0x14a8   : > { %v2228_v41 = vmul.f32 %v2227_v40, %v2227_v40 }
0x14aa   : > { %2229 = vadd.xlane.f32.xlu0 %v2228_v41  ;;  %v3564_v41 = vld [vmem:[%s4343_s14 + $0x38] sm:$0xff]  }
0x1537   : > { %v2230_v57 = vpop.xlane.xlu0 %2229 }
0x1538   : > { %v2231_v6 = vmul.f32 0.0078125, %v2230_v57 }
0x153a   : > { %v2232_v7 = vadd.f32 1e-05, %v2231_v6 }
0x153c   : > { %3600 = vrsqrt.f32 %v2232_v7 }
0x1546   : > { %v3601_v8 = vpop.eup %3600 }
0x1547   : > { %v2234_v12 = vmul.f32 %v3601_v8, %v2227_v40  ;;  %v3563_v40 = vld [vmem:[%s4343_s14 + $0xf8] sm:$0xff]  }
0x1549   : > { %v2241_v14 = vmul.f32 %v3076_v9, %v2234_v12  ;;  %v3110_v12 = vld [vmem:[%s4344_s15] ss:$0 sm:$0xff] }
0x154b   : > { %v4202_v15 = vadd.f32 %v3077_v13, %v2241_v14 }
0x154d   : > { %v2249_v18 = vpack.c.bf16 %v4202_v15, %v4202_v15 }
0x154f   : > { %2497 = vmatmul.mubr.bf16.vlgmr.msra.gmra.mrb[52].mxu0 %v2249_v18  ;;  %2538 = vmatmul.mubr.bf16.vlgmr.msra.gmra.mrb[52].mxu1 %v2249_v18 }
0x1550   : > { %3205 = vmatpush3.bf16.msra.mxu0 %v3536_v16  ;;  %3227 = vmatpush3.bf16.msra.mxu1 %v3537_v17 }
0x1551   : > { %3206 = vmatprep.subr.bf16.mxu0 %v3538_v3  ;;  %3228 = vmatprep.subr.bf16.mxu1 %v3539_v19 }
0x1554   : > { %3207 = vmatpush3.bf16.msra.mxu0 %v3540_v20  ;;  %3229 = vmatpush3.bf16.msra.mxu1 %v3541_v21 }
0x1555   : > { %3208 = vmatprep.subr.bf16.mxu0 %v3542_v22  ;;  %3230 = vmatprep.subr.bf16.mxu1 %v3543_v23 }
0x1558   : > { %3209 = vmatpush3.bf16.msra.mxu0 %v3544_v24  ;;  %3231 = vmatpush3.bf16.msra.mxu1 %v3545_v25 }
0x1559   : > { %3210 = vmatprep.subr.bf16.mxu0 %v3546_v26  ;;  %3232 = vmatprep.subr.bf16.mxu1 %v3547_v27 }
0x155c   : > { %3211 = vmatpush3.bf16.msra.mxu0 %v3548_v28  ;;  %3233 = vmatpush3.bf16.msra.mxu1 %v3549_v29 }
0x155d   : > { %3212 = vmatprep.subr.bf16.mxu0 %v3550_v31  ;;  %3234 = vmatprep.subr.bf16.mxu1 %v3551_v32 }
0x1560   : > { %3213 = vmatpush3.bf16.msra.mxu0 %v3552_v35  ;;  %3235 = vmatpush3.bf16.msra.mxu1 %v3553_v52  ;;  %v3143_v35 = vld [vmem:[%s4345_s16] ss:$0 sm:$0xff] }
0x1561   : > { %3214 = vmatprep.subr.bf16.mxu0 %v3554_v10  ;;  %3236 = vmatprep.subr.bf16.mxu1 %v3555_v11 }
0x1564   : > { %3215 = vmatpush3.bf16.msra.mxu0 %v3556_v53  ;;  %3237 = vmatpush3.bf16.msra.mxu1 %v3557_v54 }
0x1565   : > { %3216 = vmatprep.subr.bf16.mxu0 %v3558_v33  ;;  %3238 = vmatprep.subr.bf16.mxu1 %v3559_v34 }
0x1568   : > { %3217 = vmatpush3.bf16.msra.mxu0 %v3560_v36  ;;  %3239 = vmatpush3.bf16.msra.mxu1 %v3561_v38 }
0x1569   : > { %3218 = vmatprep.subr.bf16.mxu0 %v3562_v39  ;;  %3240 = vmatprep.subr.bf16.mxu1 %v3563_v40 }
0x156c   : > { %3219 = vmatpush3.bf16.msra.mxu0 %v3564_v41  ;;  %3241 = vmatpush3.bf16.msra.mxu1 %v3565_v42 }
0x1622   : > { %v2498_v60 = vpop.f32.mrb[52].mxu0  ;;  %v2539_v61 = vpop.f32.mrb[52].mxu1 }
0x1623   : > { %v2499_v62 = vadd.f32 %v2498_v60, %v2287_v48  ;;  %v2540_v0 = vadd.f32 %v2539_v61, %v2295_v1  ;;  %v2500_v45 = vpop.f32.mrb[53].mxu0  ;;  %v2541_v2 = vpop.f32.mrb[53].mxu1 }
0x1624   : > { %v2501_v63 = vadd.f32 %v2500_v45, %v2291_v58  ;;  %v2542_v4 = vadd.f32 %v2541_v2, %v2299_v59  ;;  %v2502_v49 = vpop.f32.mrb[54].mxu0  ;;  %v2543_v50 = vpop.f32.mrb[54].mxu1 }
0x1625   : > { %v2546_v51 = vmax.f32 %v2499_v62, 0.0  ;;  %v2548_v5 = vmax.f32 %v2540_v0, 0.0  ;;  %v2503_v55 = vpop.f32.mrb[55].mxu0  ;;  %v2544_v56 = vpop.f32.mrb[55].mxu1 }
0x1626   : > { %v2547_v47 = vmax.f32 %v2501_v63, 0.0  ;;  %v2549_v57 = vmax.f32 %v2542_v4, 0.0 }
0x1627   : > { %v2550_v37 = vpack.c.bf16 %v2546_v51, %v2546_v51  ;;  %v2552_v7 = vpack.c.bf16 %v2548_v5, %v2548_v5 }
0x1628   : > { %v2551_v6 = vpack.c.bf16 %v2547_v47, %v2547_v47  ;;  %v2553_v30 = vpack.c.bf16 %v2549_v57, %v2549_v57 }
0x162a   : > { %2849 = vmatprep.mubr.bf16.mxu0 %v2551_v6  ;;  %2889 = vmatprep.mubr.bf16.mxu1 %v2553_v30 }
0x162b   : > { %2850 = vmatmul.mubr.bf16.vlgmr.msra.gmra.mrb[56].mxu0 %v2550_v37  ;;  %2890 = vmatmul.mubr.bf16.vlgmr.msra.gmra.mrb[56].mxu1 %v2552_v7 }
0x16fe   : > { %v3220_v8 = vpop.f32.mrb[56].mxu0  ;;  %v3242_v9 = vpop.f32.mrb[56].mxu1 }
0x16ff   : > { %v3221_v13 = vpop.f32.mrb[57].mxu0  ;;  %v3243_v14 = vpop.f32.mrb[57].mxu1 }
0x1700   : > { %v3222_v16 = vadd.f32 %v3221_v13, %v3220_v8  ;;  %v3244_v17 = vadd.f32 %v3243_v14, %v3242_v9  ;;  %v3223_v18 = vpop.f32.mrb[58].mxu0  ;;  %v3245_v3 = vpop.f32.mrb[58].mxu1 }
0x1701   : > { %v3224_v19 = vpop.f32.mrb[59].mxu0  ;;  %v3246_v20 = vpop.f32.mrb[59].mxu1 }
0x1702   : > { %v2852_v21 = vadd.f32 %v3222_v16, %v3110_v12 }
0x1704   : > { %v2892_v22 = vadd.f32 %v3244_v17, %v2852_v21 }
0x1706   : > { %v2897_v23 = vadd.f32 %v2892_v22, %v4202_v15  ;;  %v3144_v15 = vld [vmem:[%s4346_s17] ss:$0 sm:$0xff] }
0x1708   : > { %2900 = vadd.xlane.f32.xlu1 %v2897_v23 }
0x1795   : > { %v2901_v24 = vpop.xlane.xlu1 %2900 }
0x1796   : > { %v2902_v25 = vmul.f32 0.0078125, %v2901_v24 }
0x1798   : > { %v2903_v26 = vsub.f32 %v2897_v23, %v2902_v25 }
0x179a   : > { %v2904_v27 = vmul.f32 %v2903_v26, %v2903_v26 }
0x179c   : > { %2905 = vadd.xlane.f32.xlu0 %v2904_v27 }
0x1829   : > { %v2906_v28 = vpop.xlane.xlu0 %2905 }
0x182a   : > { %v2907_v29 = vmul.f32 0.0078125, %v2906_v28 }
0x182c   : > { %v2908_v31 = vadd.f32 1e-05, %v2907_v29 }
0x182e   : > { %3602 = vrsqrt.f32 %v2908_v31 }
0x1838   : > { %v3603_v32 = vpop.eup %3602 }
0x1839   : > { %v2910_v52 = vmul.f32 %v3603_v32, %v2903_v26 }
0x183b   : > { %v2917_v10 = vmul.f32 %v3143_v35, %v2910_v52 }
0x183d   : > { %v2924_v11 = vadd.f32 %v3144_v15, %v2917_v10 }
0x183f   : > { %2925 = vst [vmem:[%s604_s24] sm:$0xff] %v2924_v11 }
0x1840 PF: > { %s28_s29 = sadd.s32 1, %s3627_s29   ;;  %s4358_s27 = sld [smem:[#allocation2_spill]] }
0x1841   : > { %p25_p5 = scmp.ge.s32.totalorder %s28_s29, 4   ;;  %s4359_s28 = sld [smem:[#allocation3_spill]] }
0x1843   :  { %27 = sbr.rel (!%p25_p5) target bundleno = 4 (0x4), region = 126 }

// kernel: forward.6
= control target key start
LH: loop header
LB: loop body
LE: loop exit
PB: predicated region body
PF: predicated region fallthrough
CT: control target
= control target key end

     0   :  { %s5449_s0 = inlined_call_operand.vmem [shape: f32[8,5], index: 0, kind: input, shape index: {}]   ;;  %s5450_s1 = inlined_call_operand.vmem [shape: f32[5,128], index: 1, kind: input, shape index: {}]   ;;  %s5451_s2 = inlined_call_operand.vmem [shape: f32[1,128], index: 2, kind: input, shape index: {}]   ;;  %s5452_s3 = inlined_call_operand.vmem [shape: f32[128,128], index: 3, kind: input, shape index: {}]   ;;  %s5453_s4 = inlined_call_operand.vmem [shape: f32[1,128], index: 4, kind: input, shape index: {}]   ;;  %s5454_s5 = inlined_call_operand.hbm [shape: f32[3,128,128], index: 5, kind: input, shape index: {}]   ;;  %s5455_s6 = inlined_call_operand.vmem [shape: f32[3,1,128], index: 6, kind: input, shape index: {}]   ;;  %s5456_s7 = inlined_call_operand.hbm [shape: f32[3,128,128], index: 7, kind: input, shape index: {}]   ;;  %s5457_s8 = inlined_call_operand.vmem [shape: f32[3,1,128], index: 8, kind: input, shape index: {}]   ;;  %s5458_s9 = inlined_call_operand.hbm [shape: f32[3,128,512], index: 9, kind: input, shape index: {}]   ;;  %s5459_s10 = inlined_call_operand.vmem [shape: f32[3,1,512], index: 10, kind: input, shape index: {}]   ;;  %s5460_s11 = inlined_call_operand.hbm [shape: f32[3,512,128], index: 11, kind: input, shape index: {}]   ;;  %s5461_s12 = inlined_call_operand.vmem [shape: f32[3,1,128], index: 12, kind: input, shape index: {}]   ;;  %s5462_s13 = inlined_call_operand.vmem [shape: f32[3,1,128], index: 13, kind: input, shape index: {}]   ;;  %s5463_s14 = inlined_call_operand.vmem [shape: f32[3,1,128], index: 14, kind: input, shape index: {}]   ;;  %s5464_s15 = inlined_call_operand.vmem [shape: f32[3,1,128], index: 15, kind: input, shape index: {}]   ;;  %s5465_s16 = inlined_call_operand.vmem [shape: f32[3,1,128], index: 16, kind: input, shape index: {}]   ;;  %s5466_s17 = inlined_call_operand.vmem [shape: f32[1,128], index: 17, kind: input, shape index: {}]   ;;  %s5467_s18 = inlined_call_operand.vmem [shape: f32[1,128], index: 18, kind: input, shape index: {}]   ;;  %s5468_s19 = inlined_call_operand.hbm [shape: f32[3,128,128], index: 19, kind: input, shape index: {}]   ;;  %s5469_s20 = inlined_call_operand.vmem [shape: f32[3,1,128], index: 20, kind: input, shape index: {}]   ;;  %s5470_s21 = inlined_call_operand.hbm [shape: f32[3,128,128], index: 21, kind: input, shape index: {}]   ;;  %s5471_s22 = inlined_call_operand.vmem [shape: f32[3,1,128], index: 22, kind: input, shape index: {}]   ;;  %s5472_s23 = inlined_call_operand.vmem [shape: f32[3,8,128], index: 23, kind: output, shape index: {}]  }
   0x1   :  { %5479 = sst [smem:[#allocation16_spill]] %s5449_s0 }
   0x2   :  { %5480 = sst [smem:[#allocation17_spill]] %s5450_s1 }
   0x3   :  { %5481 = sst [smem:[#allocation18_spill]] %s5451_s2 }
   0x4   :  { %5482 = sst [smem:[#allocation19_spill]] %s5452_s3 }
   0x5   :  { %5483 = sst [smem:[#allocation20_spill]] %s5453_s4 }
   0x6   :  { %5484 = sst [smem:[#allocation21_spill]] %s5454_s5 }
   0x7   :  { %5485 = sst [smem:[#allocation22_spill]] %s5455_s6 }
   0x8   :  { %5486 = sst [smem:[#allocation23_spill]] %s5456_s7 }
   0x9   :  { %5487 = sst [smem:[#allocation24_spill]] %s5471_s22 }
   0xa   :  { %5488 = sst [smem:[#allocation25_spill]] %s5472_s23 }
   0xb   :  { %28 = vsyncpa [#allocation3], 0 }
   0xc   :  { %29 = vsyncpa [#allocation5], 0 }
   0xd   :  { %30 = vsyncpa [#allocation8], 0 }
   0xe   :  { %31 = vsyncpa [#allocation11], 0  ;;  %s4834_s4 = smov [#allocation4]   ;;  %s4835_s24 = smov [#allocation7]  }
   0xf   :  { %s61_s30 = sshll.u32 %s4834_s4, 4  ;;  %s89_s25 = sshll.u32 %s4835_s24, 4  ;;  %s62_s30 = int_to_ptr.vmem [resolvable:$true] %s61_s30  ;;  %s4967_s25 = int_to_ptr.vmem [resolvable:$true] %s89_s25 }
  0x10   :  { %s5489_s26 = sld [smem:[#allocation23_spill]] }
  0x16   :  { %s4694_s2 = scalar_lea.hbm %s5489_s26, 6144 }
  0x17   :  { %p4695_p0 = scmp.ne.s32.totalorder %s5489_s26, %s4694_s2  ;;  %p4698_p1 = scmp.lt.u32.totalorder %s4694_s2, %s5489_s26 }
  0x19   :  { %p4700_p2 = pnand %p4698_p1, %p4695_p0 }
  0x1b   :  { %4703 = shalt.err (!%p4700_p2)
}
  0x1c   :  { %s4704_s29 = scalar_lea.vmem %s62_s30, 6144  ;;  %p4709_p4 = scmp.lt.s32.totalorder %s62_s30, %s62_s30 }
  0x1d   :  { %p4705_p3 = scmp.ne.s32.totalorder %s62_s30, %s4704_s29  ;;  %p4710_p5 = scmp.lt.s32.totalorder %s4704_s29, %s4704_s29 }
  0x1f   :  { %p4711_p6 = por %p4710_p5, %p4709_p4 }
  0x21   :  { %p4712_p7 = pnand %p4711_p6, %p4705_p3 }
  0x23   :  { %4715 = shalt.err (!%p4712_p7)
}
  0x24   :  { %s4836_s3 = smov 128   ;;  %s4837_s0 = smov 8  }
  0x25   :  { %67 = dma.hbm_to_vmem [thread:$0]  %s5489_s26, 6144, %s62_s30, [#allocation5], %s4836_s3, %s4836_s3, %s4837_s0  }
  0x26   :  { %s4716_s2 = scalar_lea.hbm %s5460_s11, 24576 }
  0x27   :  { %p4717_p8 = scmp.ne.s32.totalorder %s5460_s11, %s4716_s2  ;;  %p4720_p9 = scmp.lt.u32.totalorder %s4716_s2, %s5460_s11 }
  0x29   :  { %p4722_p10 = pnand %p4720_p9, %p4717_p8 }
  0x2b   :  { %4725 = shalt.err (!%p4722_p10)
}
  0x2c   :  { %s4726_s29 = scalar_lea.vmem %s4967_s25, 24576  ;;  %p4731_p12 = scmp.lt.s32.totalorder %s4967_s25, %s4967_s25 }
  0x2d   :  { %p4727_p11 = scmp.ne.s32.totalorder %s4967_s25, %s4726_s29  ;;  %p4732_p13 = scmp.lt.s32.totalorder %s4726_s29, %s4726_s29 }
  0x2f   :  { %p4733_p0 = por %p4732_p13, %p4731_p12 }
  0x31   :  { %p4734_p1 = pnand %p4733_p0, %p4727_p11 }
  0x33   :  { %4737 = shalt.err (!%p4734_p1)
}
  0x34   :  { %95 = dma.hbm_to_vmem [thread:$0]  %s5460_s11, 24576, %s4967_s25, [#allocation8], %s4836_s3, %s4836_s3, %s4837_s0  }
  0x35   :  { %s4838_s4 = smov [#allocation2]   ;;  %s4839_s5 = smov [#allocation6]  }
  0x36   :  { %s47_s24 = sshll.u32 %s4838_s4, 4  ;;  %s75_s1 = sshll.u32 %s4839_s5, 4  ;;  %s48_s24 = int_to_ptr.vmem [resolvable:$true] %s47_s24  ;;  %s5004_s1 = int_to_ptr.vmem [resolvable:$true] %s75_s1 }
  0x37   :  { %s5490_s27 = sld [smem:[#allocation21_spill]] }
  0x3d   :  { %s4738_s7 = scalar_lea.hbm %s5490_s27, 6144 }
  0x3e   :  { %p4739_p2 = scmp.ne.s32.totalorder %s5490_s27, %s4738_s7  ;;  %p4742_p3 = scmp.lt.u32.totalorder %s4738_s7, %s5490_s27 }
  0x40   :  { %p4744_p4 = pnand %p4742_p3, %p4739_p2 }
  0x42   :  { %4747 = shalt.err (!%p4744_p4)
}
  0x43   :  { %s4748_s11 = scalar_lea.vmem %s48_s24, 6144  ;;  %p4753_p6 = scmp.lt.s32.totalorder %s48_s24, %s48_s24 }
  0x44   :  { %p4749_p5 = scmp.ne.s32.totalorder %s48_s24, %s4748_s11  ;;  %p4754_p7 = scmp.lt.s32.totalorder %s4748_s11, %s4748_s11 }
  0x46   :  { %p4755_p8 = por %p4754_p7, %p4753_p6 }
  0x48   :  { %p4756_p9 = pnand %p4755_p8, %p4749_p5 }
  0x4a   :  { %4759 = shalt.err (!%p4756_p9)
}
  0x4b   :  { %53 = dma.hbm_to_vmem [thread:$0]  %s5490_s27, 6144, %s48_s24, [#allocation3], %s4836_s3, %s4836_s3, %s4837_s0  }
  0x4c   :  { %s4760_s22 = scalar_lea.hbm %s5458_s9, 24576 }
  0x4d   :  { %p4761_p10 = scmp.ne.s32.totalorder %s5458_s9, %s4760_s22  ;;  %p4764_p11 = scmp.lt.u32.totalorder %s4760_s22, %s5458_s9 }
  0x4f   :  { %p4766_p12 = pnand %p4764_p11, %p4761_p10 }
  0x51   :  { %4769 = shalt.err (!%p4766_p12)
}
  0x52   :  { %s4770_s7 = scalar_lea.vmem %s5004_s1, 24576  ;;  %p4775_p0 = scmp.lt.s32.totalorder %s5004_s1, %s5004_s1 }
  0x53   :  { %p4771_p13 = scmp.ne.s32.totalorder %s5004_s1, %s4770_s7  ;;  %p4776_p1 = scmp.lt.s32.totalorder %s4770_s7, %s4770_s7 }
  0x55   :  { %p4777_p2 = por %p4776_p1, %p4775_p0 }
  0x57   :  { %p4778_p3 = pnand %p4777_p2, %p4771_p13 }
  0x59   :  { %4781 = shalt.err (!%p4778_p3)
}
  0x5a   :  { %s4840_s24 = smov 512   ;;  %s4841_s27 = smov 32  }
  0x5b   :  { %81 = dma.hbm_to_vmem [thread:$0]  %s5458_s9, 24576, %s5004_s1, [#allocation5], %s4840_s24, %s4840_s24, %s4841_s27  }
  0x5c   :  { %s4842_s11 = smov [#allocation9]   ;;  %s4843_s30 = smov [#allocation10]  }
  0x5d   :  { %s115_s25 = sshll.u32 %s4842_s11, 4  ;;  %s129_s26 = sshll.u32 %s4843_s30, 4  ;;  %s116_s25 = int_to_ptr.vmem [resolvable:$true] %s115_s25  ;;  %s5038_s26 = int_to_ptr.vmem [resolvable:$true] %s129_s26 }
  0x5e   :  { %s4782_s23 = scalar_lea.hbm %s5468_s19, 6144 }
  0x5f   :  { %p4783_p4 = scmp.ne.s32.totalorder %s5468_s19, %s4782_s23  ;;  %p4786_p5 = scmp.lt.u32.totalorder %s4782_s23, %s5468_s19 }
  0x61   :  { %p4788_p6 = pnand %p4786_p5, %p4783_p4 }
  0x63   :  { %4791 = shalt.err (!%p4788_p6)
}
  0x64   :  { %s4792_s9 = scalar_lea.vmem %s116_s25, 6144  ;;  %p4797_p8 = scmp.lt.s32.totalorder %s116_s25, %s116_s25 }
  0x65   :  { %p4793_p7 = scmp.ne.s32.totalorder %s116_s25, %s4792_s9  ;;  %p4798_p9 = scmp.lt.s32.totalorder %s4792_s9, %s4792_s9 }
  0x67   :  { %p4799_p10 = por %p4798_p9, %p4797_p8 }
  0x69   :  { %p4800_p11 = pnand %p4799_p10, %p4793_p7 }
  0x6b   :  { %4803 = shalt.err (!%p4800_p11)
}
  0x6c   :  { %121 = dma.hbm_to_vmem [thread:$0]  %s5468_s19, 6144, %s116_s25, [#allocation8], %s4836_s3, %s4836_s3, %s4837_s0  }
  0x6d   :  { %s4804_s29 = scalar_lea.hbm %s5470_s21, 6144 }
  0x6e   :  { %p4805_p12 = scmp.ne.s32.totalorder %s5470_s21, %s4804_s29  ;;  %p4808_p13 = scmp.lt.u32.totalorder %s4804_s29, %s5470_s21 }
  0x70   :  { %p4810_p0 = pnand %p4808_p13, %p4805_p12 }
  0x72   :  { %4813 = shalt.err (!%p4810_p0)
}
  0x73   :  { %s4814_s23 = scalar_lea.vmem %s5038_s26, 6144  ;;  %p4819_p2 = scmp.lt.s32.totalorder %s5038_s26, %s5038_s26 }
  0x74   :  { %p4815_p1 = scmp.ne.s32.totalorder %s5038_s26, %s4814_s23  ;;  %p4820_p3 = scmp.lt.s32.totalorder %s4814_s23, %s4814_s23 }
  0x76   :  { %p4821_p4 = por %p4820_p3, %p4819_p2 }
  0x78   :  { %p4822_p5 = pnand %p4821_p4, %p4815_p1 }
  0x7a   :  { %4825 = shalt.err (!%p4822_p5)
}
  0x7b   :  { %135 = dma.hbm_to_vmem [thread:$0]  %s5470_s21, 6144, %s5038_s26, [#allocation11], %s4836_s3, %s4836_s3, %s4837_s0  }
  0x7c   :  { %4826 = dma.done.wait [#allocation3], 6144  }
  0x7d   :  { %4827 = vsyncadd [#allocation3], 4294961152 }
  0x7e   :  { %4828 = dma.done.wait [#allocation5], 30720  }
  0x7f   :  { %4829 = vsyncadd [#allocation5], 4294936576 }
  0x80   :  { %4830 = dma.done.wait [#allocation8], 30720  }
  0x81   :  { %4831 = vsyncadd [#allocation8], 4294936576 }
  0x82   :  { %4832 = dma.done.wait [#allocation11], 6144  }
  0x83   :  { %4833 = vsyncadd [#allocation11], 4294961152  ;;  %v4844_v0 = vmov 0.0   ;;  %vm4845_vm0 = vmmov 0   ;;  %v4846_v1 = vmov 0.0|0.0   ;;  %vm169_vm1 = vcmask 1044480  }
  0x84   :  { %3511 = vmatprep.subr.mxu0 %v4844_v0  ;;  %3513 = vmatprep.mubr.msk.f32.mxu0 %vm4845_vm0, %v4844_v0  ;;  %vm165_vm2 = vcmask 39936   ;;  %s5491_s0 = sld [smem:[#allocation17_spill]]  ;;  %s5492_s2 = sld [smem:[#allocation16_spill]]  ;;  %v337_v28 = vld [vmem:[#allocation2] sm:$0xff]  ;;  %v338_v29 = vld [vmem:[#allocation2 + $0x8] sm:$0xff]  ;;  %v339_v30 = vld [vmem:[#allocation2 + $0x10] sm:$0xff] }
  0x85   :  { %3971 = vmatprep.subr.bf16.mxu1 %v4846_v1  ;;  %3548 = vmatprep.mubr.msk.f32.mxu1 %vm4845_vm0, %v4844_v0  ;;  %s5493_s9 = sld [smem:[#allocation19_spill]]  ;;  %v3996_v31 = vpack.c.bf16 %v338_v29, %v337_v28  ;;  %v340_v32 = vld [vmem:[#allocation2 + $0x18] sm:$0xff]  ;;  %v341_v34 = vld [vmem:[#allocation2 + $0x20] sm:$0xff]  ;;  %v342_v35 = vld [vmem:[#allocation2 + $0x28] sm:$0xff]  ;;  %s5494_s25 = sld [smem:[#allocation18_spill]] }
  0x86   :  { %v3999_v33 = vpack.c.bf16 %v340_v32, %v339_v30  ;;  %v4002_v36 = vpack.c.bf16 %v342_v35, %v341_v34  ;;  %v343_v37 = vld [vmem:[#allocation2 + $0x30] sm:$0xff]  ;;  %v344_v38 = vld [vmem:[#allocation2 + $0x38] sm:$0xff]  ;;  %v345_v40 = vld [vmem:[#allocation2 + $0x40] sm:$0xff]  ;;  %s5497_s30 = sld [smem:[#allocation24_spill]]  ;;  %s5498_s23 = sld [smem:[#allocation25_spill]] }
  0x87   :  { %v4005_v39 = vpack.c.bf16 %v344_v38, %v343_v37  ;;  %v346_v41 = vld [vmem:[#allocation2 + $0x48] sm:$0xff]  ;;  %v347_v43 = vld [vmem:[#allocation2 + $0x50] sm:$0xff]  ;;  %v348_v44 = vld [vmem:[#allocation2 + $0x58] sm:$0xff] }
  0x88   :  { %v4008_v42 = vpack.c.bf16 %v346_v41, %v345_v40  ;;  %v4011_v45 = vpack.c.bf16 %v348_v44, %v347_v43  ;;  %v349_v46 = vld [vmem:[#allocation2 + $0x60] sm:$0xff]  ;;  %v350_v47 = vld [vmem:[#allocation2 + $0x68] sm:$0xff]  ;;  %v351_v54 = vld [vmem:[#allocation2 + $0x70] sm:$0xff] }
  0x89   :  { %v4014_v48 = vpack.c.bf16 %v350_v47, %v349_v46  ;;  %v352_v55 = vld [vmem:[#allocation2 + $0x78] sm:$0xff]  ;;  %v430_v57 = vld [vmem:[#allocation4] sm:$0xff]  ;;  %v431_v58 = vld [vmem:[#allocation4 + $0x8] sm:$0xff] }
  0x8a   :  { %v157_v2 = vld [vmem:[%s5491_s0] sm:$0x1f]  ;;  %v4017_v56 = vpack.c.bf16 %v352_v55, %v351_v54  ;;  %v432_v59 = vld [vmem:[#allocation4 + $0x10] sm:$0xff]  ;;  %v4020_v60 = vpack.c.bf16 %v431_v58, %v430_v57  ;;  %v433_v61 = vld [vmem:[#allocation4 + $0x18] sm:$0xff]  ;;  %s5495_s0 = sld [smem:[#allocation20_spill]] }
  0x8b   :  { %v156_v3 = vld [vmem:[%s5492_s2] sm:$0xff]  ;;  %3512 = vmatpush3.msk.msra.mxu0 %vm169_vm1, %v157_v2  ;;  %v245_v5 = vld [vmem:[%s5493_s9 + $0x8] sm:$0xff]  ;;  %v246_v6 = vld [vmem:[%s5493_s9 + $0x10] sm:$0xff]  ;;  %v4023_v62 = vpack.c.bf16 %v433_v61, %v432_v59  ;;  %s5496_s2 = sld [smem:[#allocation22_spill]] }
  0x8c   :  { %v244_v4 = vld [vmem:[%s5493_s9] sm:$0xff]  ;;  %v247_v7 = vld [vmem:[%s5493_s9 + $0x18] sm:$0xff]  ;;  %3514 = vmatmul.mubr.msk.f32.vlgmr.msra.gmra.mrb[0].mxu0 %vm165_vm2, %v156_v3  ;;  %3995 = vmatprep.subr.bf16.mxu0 %v4846_v1  ;;  %v249_v11 = vld [vmem:[%s5493_s9 + $0x28] sm:$0xff] }
  0x8d   :  { %v3972_v8 = vpack.c.bf16 %v245_v5, %v244_v4  ;;  %3583 = vmatprep.mubr.msk.f32.mxu0 %vm4845_vm0, %v4844_v0  ;;  %v3975_v9 = vpack.c.bf16 %v247_v7, %v246_v6  ;;  %v248_v10 = vld [vmem:[%s5493_s9 + $0x20] sm:$0xff]  ;;  %v250_v13 = vld [vmem:[%s5493_s9 + $0x30] sm:$0xff]  ;;  %v251_v14 = vld [vmem:[%s5493_s9 + $0x38] sm:$0xff]  ;;  %3997 = vmatpush3.bf16.msra.mxu0 %v3996_v31 }
  0x8e   :  { %v3978_v12 = vpack.c.bf16 %v249_v11, %v248_v10  ;;  %v3981_v15 = vpack.c.bf16 %v251_v14, %v250_v13  ;;  %v252_v16 = vld [vmem:[%s5493_s9 + $0x40] sm:$0xff]  ;;  %v253_v17 = vld [vmem:[%s5493_s9 + $0x48] sm:$0xff]  ;;  %v254_v19 = vld [vmem:[%s5493_s9 + $0x50] sm:$0xff]  ;;  %3998 = vmatprep.subr.bf16.mxu0 %v4846_v1 }
  0x8f   :  { %3973 = vmatpush3.bf16.msra.mxu1 %v3972_v8  ;;  %v3984_v18 = vpack.c.bf16 %v253_v17, %v252_v16  ;;  %v255_v20 = vld [vmem:[%s5493_s9 + $0x58] sm:$0xff]  ;;  %v256_v22 = vld [vmem:[%s5493_s9 + $0x60] sm:$0xff]  ;;  %v257_v23 = vld [vmem:[%s5493_s9 + $0x68] sm:$0xff] }
  0x90   :  { %3974 = vmatprep.subr.bf16.mxu1 %v4846_v1  ;;  %v3987_v21 = vpack.c.bf16 %v255_v20, %v254_v19  ;;  %v3990_v24 = vpack.c.bf16 %v257_v23, %v256_v22  ;;  %v258_v25 = vld [vmem:[%s5493_s9 + $0x70] sm:$0xff]  ;;  %v259_v26 = vld [vmem:[%s5493_s9 + $0x78] sm:$0xff]  ;;  %v3023_v49 = vld [vmem:[%s5494_s25] ss:$0 sm:$0xff] }
  0x91   :  { %v3993_v27 = vpack.c.bf16 %v259_v26, %v258_v25  ;;  %4000 = vmatpush3.bf16.msra.mxu0 %v3999_v33  ;;  %v434_v63 = vld [vmem:[#allocation4 + $0x20] sm:$0xff]  ;;  %v435_v2 = vld [vmem:[#allocation4 + $0x28] sm:$0xff]  ;;  %v436_v4 = vld [vmem:[#allocation4 + $0x30] sm:$0xff] }
  0x92   :  { %4001 = vmatprep.subr.bf16.mxu0 %v4846_v1  ;;  %v4026_v3 = vpack.c.bf16 %v435_v2, %v434_v63  ;;  %v437_v5 = vld [vmem:[#allocation4 + $0x38] sm:$0xff]  ;;  %v438_v7 = vld [vmem:[#allocation4 + $0x40] sm:$0xff]  ;;  %v439_v8 = vld [vmem:[#allocation4 + $0x48] sm:$0xff] }
  0x93   :  { %3976 = vmatpush3.bf16.msra.mxu1 %v3975_v9  ;;  %v4029_v6 = vpack.c.bf16 %v437_v5, %v436_v4  ;;  %v4032_v9 = vpack.c.bf16 %v439_v8, %v438_v7  ;;  %v440_v10 = vld [vmem:[#allocation4 + $0x50] sm:$0xff]  ;;  %v441_v11 = vld [vmem:[#allocation4 + $0x58] sm:$0xff]  ;;  %v442_v13 = vld [vmem:[#allocation4 + $0x60] sm:$0xff] }
  0x94   :  { %3977 = vmatprep.subr.bf16.mxu1 %v4846_v1  ;;  %v443_v14 = vld [vmem:[#allocation4 + $0x68] sm:$0xff]  ;;  %v3026_v16 = vld [vmem:[%s5495_s0] ss:$0 sm:$0xff]  ;;  %v444_v20 = vld [vmem:[#allocation4 + $0x70] sm:$0xff] }
  0x95   :  { %4003 = vmatpush3.bf16.msra.mxu0 %v4002_v36  ;;  %v3027_v23 = vld [vmem:[%s5496_s2] ss:$0 sm:$0xff]  ;;  %v553_v32 = vld [vmem:[#allocation6 + $0x8] sm:$0xff]  ;;  %v555_v34 = vld [vmem:[#allocation6 + $0x18] sm:$0xff] }
  0x96   :  { %4004 = vmatprep.subr.bf16.mxu0 %v4846_v1  ;;  %v557_v33 = vld [vmem:[#allocation6 + $0x28] sm:$0xff]  ;;  %v559_v36 = vld [vmem:[#allocation6 + $0x38] sm:$0xff]  ;;  %v552_v37 = vld [vmem:[#allocation6] sm:$0xff] }
  0x97   :  { %3979 = vmatpush3.bf16.msra.mxu1 %v3978_v12  ;;  %v4035_v12 = vpack.c.bf16 %v441_v11, %v440_v10  ;;  %v4043_v35 = vpack.c.bf16 %v557_v33, %v553_v32  ;;  %v556_v38 = vld [vmem:[#allocation6 + $0x20] sm:$0xff]  ;;  %v554_v41 = vld [vmem:[#allocation6 + $0x10] sm:$0xff]  ;;  %v561_v43 = vld [vmem:[#allocation6 + $0x48] sm:$0xff] }
  0x98   :  { %3980 = vmatprep.subr.bf16.mxu1 %v4846_v1  ;;  %v4045_v40 = vpack.c.bf16 %v556_v38, %v552_v37  ;;  %v563_v46 = vld [vmem:[#allocation6 + $0x58] sm:$0xff]  ;;  %v566_v54 = vld [vmem:[#allocation6 + $0x70] sm:$0xff]  ;;  %v569_v55 = vld [vmem:[#allocation6 + $0x88] sm:$0xff] }
  0x99   :  { %4006 = vmatpush3.bf16.msra.mxu0 %v4005_v39  ;;  %v4075_v39 = vpack.c.bf16 %v559_v36, %v555_v34  ;;  %v567_v47 = vld [vmem:[#allocation6 + $0x78] sm:$0xff]  ;;  %v568_v61 = vld [vmem:[#allocation6 + $0x80] sm:$0xff]  ;;  %v570_v2 = vld [vmem:[#allocation6 + $0x90] sm:$0xff] }
  0x9a   :  { %4007 = vmatprep.subr.bf16.mxu0 %v4846_v1  ;;  %v571_v59 = vld [vmem:[#allocation6 + $0x98] sm:$0xff]  ;;  %v572_v63 = vld [vmem:[#allocation6 + $0xa0] sm:$0xff]  ;;  %v577_v10 = vld [vmem:[#allocation6 + $0xc8] sm:$0xff] }
  0x9b   :  { %3982 = vmatpush3.bf16.msra.mxu1 %v3981_v15  ;;  %v4038_v15 = vpack.c.bf16 %v443_v14, %v442_v13  ;;  %v4053_v4 = vpack.c.bf16 %v572_v63, %v568_v61  ;;  %v581_v11 = vld [vmem:[#allocation6 + $0xe8] sm:$0xff]  ;;  %v583_v14 = vld [vmem:[#allocation6 + $0xf8] sm:$0xff]  ;;  %v590_v32 = vld [vmem:[#allocation6 + $0x130] sm:$0xff] }
  0x9c   :  { %3983 = vmatprep.subr.bf16.mxu1 %v4846_v1  ;;  %v4055_v13 = vpack.c.bf16 %v581_v11, %v577_v10  ;;  %v593_v33 = vld [vmem:[#allocation6 + $0x148] sm:$0xff]  ;;  %v595_v36 = vld [vmem:[#allocation6 + $0x158] sm:$0xff]  ;;  %v608_v63 = vld [vmem:[#allocation6 + $0x1c0] sm:$0xff] }
  0x9d   :  { %4009 = vmatpush3.bf16.msra.mxu0 %v4008_v42  ;;  %v558_v42 = vld [vmem:[#allocation6 + $0x30] sm:$0xff]  ;;  %v599_v37 = vld [vmem:[#allocation6 + $0x178] sm:$0xff]  ;;  %v801_v10 = vld [vmem:[#allocation7 + $0x88] sm:$0xff] }
  0x9e   :  { %4010 = vmatprep.subr.bf16.mxu0 %v4846_v1  ;;  %v4077_v44 = vpack.c.bf16 %v558_v42, %v554_v41  ;;  %v596_v41 = vld [vmem:[#allocation6 + $0x160] sm:$0xff]  ;;  %v594_v42 = vld [vmem:[#allocation6 + $0x150] sm:$0xff] }
  0x9f   :  { %3985 = vmatpush3.bf16.msra.mxu1 %v3984_v18  ;;  %v832_v11 = vld [vmem:[#allocation7 + $0x180] sm:$0xff] }
  0xa0   :  { %3986 = vmatprep.subr.bf16.mxu1 %v4846_v1 }
  0xa1   :  { %4012 = vmatpush3.bf16.msra.mxu0 %v4011_v45  ;;  %v565_v45 = vld [vmem:[#allocation6 + $0x68] sm:$0xff] }
  0xa2   :  { %4013 = vmatprep.subr.bf16.mxu0 %v4846_v1 }
  0xa3   :  { %3988 = vmatpush3.bf16.msra.mxu1 %v3987_v21  ;;  %v445_v21 = vld [vmem:[#allocation4 + $0x78] sm:$0xff] }
  0xa4   :  { %3989 = vmatprep.subr.bf16.mxu1 %v4846_v1  ;;  %v4041_v22 = vpack.c.bf16 %v445_v21, %v444_v20  ;;  %v582_v20 = vld [vmem:[#allocation6 + $0xf0] sm:$0xff] }
  0xa5   :  { %4015 = vmatpush3.bf16.msra.mxu0 %v4014_v48  ;;  %v4047_v48 = vpack.c.bf16 %v565_v45, %v561_v43  ;;  %v601_v45 = vld [vmem:[#allocation6 + $0x188] sm:$0xff] }
  0xa6   :  { %4016 = vmatprep.subr.bf16.mxu0 %v4846_v1 }
  0xa7   :  { %3991 = vmatpush3.bf16.msra.mxu1 %v3990_v24 }
  0xa8   :  { %3992 = vmatprep.subr.bf16.mxu1 %v4846_v1 }
  0xa9   :  { %4018 = vmatpush3.bf16.msra.mxu0 %v4017_v56  ;;  %v573_v56 = vld [vmem:[#allocation6 + $0xa8] sm:$0xff] }
  0xaa   :  { %4044 = vmatprep.subr.bf16.mxu0 %v4043_v35  ;;  %v4051_v58 = vpack.c.bf16 %v573_v56, %v569_v55  ;;  %v597_v35 = vld [vmem:[#allocation6 + $0x168] sm:$0xff]  ;;  %v606_v55 = vld [vmem:[#allocation6 + $0x1b0] sm:$0xff] }
  0xab   :  { %3994 = vmatpush3.bf16.msra.mxu1 %v3993_v27  ;;  %v3028_v27 = vld [vmem:[%s5457_s8] ss:$0 sm:$0xff]  ;;  %v4063_v38 = vpack.c.bf16 %v597_v35, %v593_v33  ;;  %v786_v33 = vld [vmem:[#allocation7 + $0x10] sm:$0xff] }
  0xac   :  { %4019 = vmatprep.subr.bf16.mxu1 %v4846_v1 }
 0x15f   :  { %v239_v50 = vpop.f32.mrb[0].mxu0 }
 0x160   :  { %v240_v51 = vadd.f32 %v3023_v49, %v239_v50  ;;  %v3515_v52 = vpop.f32.mrb[1].mxu0  ;;  %v4079_v49 = vpack.c.bf16 %v567_v47, %v563_v46  ;;  %v560_v50 = vld [vmem:[#allocation6 + $0x40] sm:$0xff]  ;;  %v605_v46 = vld [vmem:[#allocation6 + $0x1a8] sm:$0xff] }
 0x161   :  { %v562_v52 = vld [vmem:[#allocation6 + $0x50] sm:$0xff] }
 0x162   :  { %v243_v53 = vmax.f32 %v240_v51, 0.0  ;;  %v564_v51 = vld [vmem:[#allocation6 + $0x60] sm:$0xff]  ;;  %v4081_v57 = vpack.c.bf16 %v566_v54, %v562_v52  ;;  %v602_v54 = vld [vmem:[#allocation6 + $0x190] sm:$0xff] }
 0x164   :  { %3549 = vmatmul.mubr.f32.vlgmr.msra.gmra.mrb[0].mxu1 %v243_v53  ;;  %v4049_v53 = vpack.c.bf16 %v564_v51, %v560_v50  ;;  %v607_v50 = vld [vmem:[#allocation6 + $0x1b8] sm:$0xff]  ;;  %v600_v51 = vld [vmem:[#allocation6 + $0x180] sm:$0xff] }
 0x165   :  { %3618 = vmatprep.mubr.msk.f32.mxu1 %vm4845_vm0, %v4844_v0  ;;  %4021 = vmatpush3.bf16.msra.mxu1 %v4020_v60  ;;  %v575_v60 = vld [vmem:[#allocation6 + $0xb8] sm:$0xff] }
 0x166   :  { %4022 = vmatprep.subr.bf16.mxu1 %v4846_v1 }
 0x169   :  { %4024 = vmatpush3.bf16.msra.mxu1 %v4023_v62  ;;  %v4083_v62 = vpack.c.bf16 %v575_v60, %v571_v59  ;;  %v611_v59 = vld [vmem:[#allocation6 + $0x1d8] sm:$0xff]  ;;  %v4101_v60 = vpack.c.bf16 %v606_v55, %v602_v54 }
 0x16a   :  { %4025 = vmatprep.subr.bf16.mxu1 %v4846_v1  ;;  %v839_v54 = vld [vmem:[#allocation7 + $0x1b8] sm:$0xff] }
 0x16d   :  { %4027 = vmatpush3.bf16.msra.mxu1 %v4026_v3  ;;  %v574_v3 = vld [vmem:[#allocation6 + $0xb0] sm:$0xff] }
 0x16e   :  { %4028 = vmatprep.subr.bf16.mxu1 %v4846_v1  ;;  %v4085_v5 = vpack.c.bf16 %v574_v3, %v570_v2  ;;  %v612_v2 = vld [vmem:[#allocation6 + $0x1e0] sm:$0xff] }
 0x171   :  { %4030 = vmatpush3.bf16.msra.mxu1 %v4029_v6 }
 0x172   :  { %4031 = vmatprep.subr.bf16.mxu1 %v4846_v1 }
 0x175   :  { %4033 = vmatpush3.bf16.msra.mxu1 %v4032_v9 }
 0x176   :  { %4034 = vmatprep.subr.bf16.mxu1 %v4846_v1 }
 0x179   :  { %4036 = vmatpush3.bf16.msra.mxu1 %v4035_v12  ;;  %v579_v12 = vld [vmem:[#allocation6 + $0xd8] sm:$0xff] }
 0x17a   :  { %4037 = vmatprep.subr.bf16.mxu1 %v4846_v1 }
 0x17d   :  { %4039 = vmatpush3.bf16.msra.mxu1 %v4038_v15  ;;  %v576_v15 = vld [vmem:[#allocation6 + $0xc0] sm:$0xff] }
 0x17e   :  { %4040 = vmatprep.subr.bf16.mxu1 %v4846_v1 }
 0x181   :  { %4042 = vmatpush3.bf16.msra.mxu1 %v4041_v22  ;;  %v585_v22 = vld [vmem:[#allocation6 + $0x108] sm:$0xff] }
 0x182   :  { %4076 = vmatprep.subr.bf16.mxu1 %v4075_v39  ;;  %v4095_v39 = vpack.c.bf16 %v599_v37, %v595_v36 }
 0x237   :  { %v333_v17 = vpop.f32.mrb[0].mxu1 }
 0x238   :  { %v334_v18 = vadd.f32 %v3026_v16, %v333_v17  ;;  %v3550_v19 = vpop.f32.mrb[1].mxu1  ;;  %v580_v16 = vld [vmem:[#allocation6 + $0xe0] sm:$0xff]  ;;  %v4087_v17 = vpack.c.bf16 %v583_v14, %v579_v12 }
 0x239   :  { %v578_v19 = vld [vmem:[#allocation6 + $0xd0] sm:$0xff] }
 0x23a   :  { %3584 = vmatmul.mubr.f32.vlgmr.msra.gmra.mrb[2].mxu0 %v334_v18  ;;  %v4089_v21 = vpack.c.bf16 %v582_v20, %v578_v19  ;;  %v3030_v20 = vld [vmem:[%s5463_s14] ss:$0 sm:$0xff] }
 0x23b   :  { %702 = vmatprep.mubr.f32.mxu0 %v4844_v0  ;;  %4046 = vmatpush1.bf16.msra.mxu0 %v4045_v40  ;;  %v592_v40 = vld [vmem:[#allocation6 + $0x140] sm:$0xff] }
 0x23c   :  { %4048 = vmatprep.subr.bf16.mxu0 %v4047_v48  ;;  %v4065_v43 = vpack.c.bf16 %v596_v41, %v592_v40  ;;  %v4067_v48 = vpack.c.bf16 %v605_v46, %v601_v45  ;;  %v804_v40 = vld [vmem:[#allocation7 + $0xa0] sm:$0xff]  ;;  %v805_v41 = vld [vmem:[#allocation7 + $0xa8] sm:$0xff] }
 0x23d   :  { %v788_v45 = vld [vmem:[#allocation7 + $0x20] sm:$0xff]  ;;  %v789_v46 = vld [vmem:[#allocation7 + $0x28] sm:$0xff] }
 0x23e   :  { %v4117_v55 = vpack.c.bf16 %v789_v46, %v788_v45  ;;  %v798_v45 = vld [vmem:[#allocation7 + $0x70] sm:$0xff]  ;;  %v799_v46 = vld [vmem:[#allocation7 + $0x78] sm:$0xff] }
 0x23f   :  { %4050 = vmatpush1.bf16.msra.mxu0 %v4049_v53  ;;  %v604_v53 = vld [vmem:[#allocation6 + $0x1a0] sm:$0xff] }
 0x240   :  { %4052 = vmatprep.subr.bf16.mxu0 %v4051_v58  ;;  %v4069_v56 = vpack.c.bf16 %v604_v53, %v600_v51  ;;  %v613_v58 = vld [vmem:[#allocation6 + $0x1e8] sm:$0xff]  ;;  %v806_v51 = vld [vmem:[#allocation7 + $0xb0] sm:$0xff] }
 0x241   :  { %v838_v53 = vld [vmem:[#allocation7 + $0x1b0] sm:$0xff] }
 0x243   :  { %4054 = vmatpush1.bf16.msra.mxu0 %v4053_v4  ;;  %v610_v4 = vld [vmem:[#allocation6 + $0x1d0] sm:$0xff] }
 0x244   :  { %4056 = vmatprep.subr.bf16.mxu0 %v4055_v13  ;;  %v833_v13 = vld [vmem:[#allocation7 + $0x188] sm:$0xff] }
 0x245   :  { %v4139_v14 = vpack.c.bf16 %v833_v13, %v832_v11  ;;  %v825_v13 = vld [vmem:[#allocation7 + $0x148] sm:$0xff] }
 0x30d   :  { %v426_v24 = vpop.f32.mrb[2].mxu0 }
 0x30e   :  { %v427_v25 = vadd.f32 %v3027_v23, %v426_v24  ;;  %v3585_v26 = vpop.f32.mrb[3].mxu0  ;;  %v589_v23 = vld [vmem:[#allocation6 + $0x128] sm:$0xff]  ;;  %v587_v24 = vld [vmem:[#allocation6 + $0x118] sm:$0xff] }
 0x30f   :  { %v591_v26 = vld [vmem:[#allocation6 + $0x138] sm:$0xff] }
 0x310   :  { %3619 = vmatmul.mubr.f32.vlgmr.msra.gmra.mrb[2].mxu1 %v427_v25  ;;  %v4059_v25 = vpack.c.bf16 %v589_v23, %v585_v22  ;;  %v785_v22 = vld [vmem:[#allocation7 + $0x8] sm:$0xff] }
 0x311   :  { %773 = vmatprep.mubr.f32.mxu1 %v4844_v0  ;;  %4078 = vmatpush1.bf16.msra.mxu1 %v4077_v44  ;;  %v598_v44 = vld [vmem:[#allocation6 + $0x170] sm:$0xff] }
 0x312   :  { %4080 = vmatprep.subr.bf16.mxu1 %v4079_v49  ;;  %v4097_v47 = vpack.c.bf16 %v598_v44, %v594_v42  ;;  %v603_v49 = vld [vmem:[#allocation6 + $0x198] sm:$0xff]  ;;  %v837_v42 = vld [vmem:[#allocation7 + $0x1a8] sm:$0xff] }
 0x313   :  { %v4099_v52 = vpack.c.bf16 %v607_v50, %v603_v49  ;;  %v820_v49 = vld [vmem:[#allocation7 + $0x120] sm:$0xff]  ;;  %v821_v50 = vld [vmem:[#allocation7 + $0x128] sm:$0xff] }
 0x315   :  { %4082 = vmatpush1.bf16.msra.mxu1 %v4081_v57  ;;  %v609_v57 = vld [vmem:[#allocation6 + $0x1c8] sm:$0xff] }
 0x316   :  { %4084 = vmatprep.subr.bf16.mxu1 %v4083_v62  ;;  %v4071_v61 = vpack.c.bf16 %v613_v58, %v609_v57  ;;  %v615_v62 = vld [vmem:[#allocation6 + $0x1f8] sm:$0xff]  ;;  %v790_v57 = vld [vmem:[#allocation7 + $0x30] sm:$0xff] }
 0x317   :  { %v4103_v3 = vpack.c.bf16 %v615_v62, %v611_v59  ;;  %v791_v58 = vld [vmem:[#allocation7 + $0x38] sm:$0xff] }
 0x318   :  { %v823_v62 = vld [vmem:[#allocation7 + $0x138] sm:$0xff] }
 0x319   :  { %4086 = vmatpush1.bf16.msra.mxu1 %v4085_v5  ;;  %v614_v5 = vld [vmem:[#allocation6 + $0x1f0] sm:$0xff] }
 0x31a   :  { %4088 = vmatprep.subr.bf16.mxu1 %v4087_v17 }
 0x31d   :  { %4090 = vmatpush1.bf16.msra.mxu1 %v4089_v21  ;;  %v784_v21 = vld [vmem:[#allocation7] sm:$0xff] }
 0x3e3   :  { %v519_v28 = vpop.f32.mrb[2].mxu1 }
 0x3e4   :  { %v520_v29 = vadd.f32 %v3028_v27, %v519_v28  ;;  %v3620_v30 = vpop.f32.mrb[3].mxu1  ;;  %v584_v27 = vld [vmem:[#allocation6 + $0x100] sm:$0xff] }
 0x3e5   :  { %v588_v28 = vld [vmem:[#allocation6 + $0x120] sm:$0xff] }
 0x3e6   :  { %v523_v31 = vadd.f32 %v520_v29, %v334_v18  ;;  %v4057_v18 = vpack.c.bf16 %v580_v16, %v576_v15  ;;  %v4091_v29 = vpack.c.bf16 %v591_v26, %v587_v24  ;;  %v4061_v30 = vpack.c.bf16 %v588_v28, %v584_v27  ;;  %v816_v24 = vld [vmem:[#allocation7 + $0x100] sm:$0xff]  ;;  %v802_v26 = vld [vmem:[#allocation7 + $0x90] sm:$0xff]  ;;  %v803_v27 = vld [vmem:[#allocation7 + $0x98] sm:$0xff] }
 0x3e7   :  { %v834_v28 = vld [vmem:[#allocation7 + $0x190] sm:$0xff]  ;;  %v4111_v36 = vpack.c.bf16 %v803_v27, %v802_v26  ;;  %v812_v26 = vld [vmem:[#allocation7 + $0xe0] sm:$0xff]  ;;  %v813_v27 = vld [vmem:[#allocation7 + $0xe8] sm:$0xff] }
 0x3e8   :  { %526 = vadd.xlane.f32.xlu0 %v523_v31  ;;  %4058 = vmatpush1.bf16.msra.mxu0 %v4057_v18  ;;  %v3029_v18 = vld [vmem:[%s5462_s13] ss:$0 sm:$0xff] }
 0x3e9   :  { %4060 = vmatprep.subr.bf16.mxu0 %v4059_v25  ;;  %4092 = vmatprep.subr.bf16.mxu1 %v4091_v29  ;;  %v817_v25 = vld [vmem:[#allocation7 + $0x108] sm:$0xff]  ;;  %v835_v29 = vld [vmem:[#allocation7 + $0x198] sm:$0xff] }
 0x3ea   :  { %v4143_v37 = vpack.c.bf16 %v835_v29, %v834_v28  ;;  %v844_v28 = vld [vmem:[#allocation7 + $0x1e0] sm:$0xff]  ;;  %v845_v29 = vld [vmem:[#allocation7 + $0x1e8] sm:$0xff] }
 0x3ec   :  { %4062 = vmatpush1.bf16.msra.mxu0 %v4061_v30 }
 0x3ed   :  { %4064 = vmatprep.subr.bf16.mxu0 %v4063_v38  ;;  %v818_v38 = vld [vmem:[#allocation7 + $0x110] sm:$0xff] }
 0x3f0   :  { %4066 = vmatpush1.bf16.msra.mxu0 %v4065_v43 }
 0x3f1   :  { %4068 = vmatprep.subr.bf16.mxu0 %v4067_v48 }
 0x3f4   :  { %4070 = vmatpush1.bf16.msra.mxu0 %v4069_v56  ;;  %v4149_v56 = vpack.c.bf16 %v821_v50, %v820_v49  ;;  %v830_v49 = vld [vmem:[#allocation7 + $0x170] sm:$0xff]  ;;  %v831_v50 = vld [vmem:[#allocation7 + $0x178] sm:$0xff] }
 0x3f5   :  { %4072 = vmatprep.subr.bf16.mxu0 %v4071_v61  ;;  %v822_v61 = vld [vmem:[#allocation7 + $0x130] sm:$0xff] }
 0x475   :  { %v527_v6 = vpop.xlane.xlu0 %526 }
 0x476   :  { %v529_v7 = vmul.f32 0.0078125, %v527_v6  ;;  %v4073_v6 = vpack.c.bf16 %v612_v2, %v608_v63  ;;  %v808_v63 = vld [vmem:[#allocation7 + $0xc0] sm:$0xff]  ;;  %v809_v2 = vld [vmem:[#allocation7 + $0xc8] sm:$0xff] }
 0x478   :  { %v5176_v8 = vsub.f32 %v523_v31, %v529_v7  ;;  %v586_v31 = vld [vmem:[#allocation6 + $0x110] sm:$0xff]  ;;  %v4105_v7 = vpack.c.bf16 %v614_v5, %v610_v4  ;;  %4074 = vmatpush1.bf16.msra.mxu0 %v4073_v6  ;;  %v841_v4 = vld [vmem:[#allocation7 + $0x1c8] sm:$0xff]  ;;  %v4121_v5 = vpack.c.bf16 %v791_v58, %v790_v57  ;;  %v4153_v6 = vpack.c.bf16 %v823_v62, %v822_v61 }
 0x479   :  { %v4093_v34 = vpack.c.bf16 %v590_v32, %v586_v31  ;;  %v4109_v31 = vpack.c.bf16 %v785_v22, %v784_v21  ;;  %v4141_v32 = vpack.c.bf16 %v817_v25, %v816_v24  ;;  %v795_v21 = vld [vmem:[#allocation7 + $0x58] sm:$0xff]  ;;  %v826_v24 = vld [vmem:[#allocation7 + $0x150] sm:$0xff] }
 0x47a   :  { %v531_v9 = vmul.f32 %v5176_v8, %v5176_v8  ;;  %v827_v25 = vld [vmem:[#allocation7 + $0x158] sm:$0xff] }
 0x47b   :  { %4094 = vmatpush1.bf16.msra.mxu1 %v4093_v34  ;;  %v787_v34 = vld [vmem:[#allocation7 + $0x18] sm:$0xff] }
 0x47c   :  { %532 = vadd.xlane.f32.xlu0 %v531_v9  ;;  %4096 = vmatprep.subr.bf16.mxu1 %v4095_v39  ;;  %v800_v9 = vld [vmem:[#allocation7 + $0x80] sm:$0xff]  ;;  %v819_v39 = vld [vmem:[#allocation7 + $0x118] sm:$0xff]  ;;  %v4113_v43 = vpack.c.bf16 %v787_v34, %v786_v33  ;;  %v4163_v33 = vpack.c.bf16 %v845_v29, %v844_v28 }
 0x47d   :  { %v4107_v12 = vpack.c.bf16 %v801_v10, %v800_v9  ;;  %v4145_v44 = vpack.c.bf16 %v819_v39, %v818_v38  ;;  %v793_v9 = vld [vmem:[#allocation7 + $0x48] sm:$0xff]  ;;  %v4123_v10 = vpack.c.bf16 %v809_v2, %v808_v63  ;;  %v796_v34 = vld [vmem:[#allocation7 + $0x60] sm:$0xff]  ;;  %v1027_v28 = vld [vmem:[#allocation2 + $0x98] sm:$0xff] }
 0x47e   :  { %v829_v39 = vld [vmem:[#allocation7 + $0x168] sm:$0xff] }
 0x47f   :  { %4098 = vmatpush1.bf16.msra.mxu1 %v4097_v47  ;;  %4108 = vmatprep.subr.bf16.mxu0 %v4107_v12  ;;  %v4115_v47 = vpack.c.bf16 %v805_v41, %v804_v40  ;;  %v824_v12 = vld [vmem:[#allocation7 + $0x140] sm:$0xff]  ;;  %v814_v41 = vld [vmem:[#allocation7 + $0xf0] sm:$0xff] }
 0x480   :  { %4100 = vmatprep.subr.bf16.mxu1 %v4099_v52  ;;  %v807_v52 = vld [vmem:[#allocation7 + $0xb8] sm:$0xff] }
 0x481   :  { %v4119_v59 = vpack.c.bf16 %v807_v52, %v806_v51  ;;  %v4169_v51 = vpack.c.bf16 %v831_v50, %v830_v49  ;;  %v618_v52 = vlaneseq  ;;  %v1039_v49 = vld [vmem:[#allocation2 + $0xf8] sm:$0xff] }
 0x483   :  { %4102 = vmatpush1.bf16.msra.mxu1 %v4101_v60  ;;  %v4151_v60 = vpack.c.bf16 %v839_v54, %v838_v53  ;;  %v619_v53 = vshrl.u32 %v618_v52, 7  ;;  %v1120_v52 = vld [vmem:[#allocation4 + $0x88] sm:$0xff] }
 0x484   :  { %4104 = vmatprep.subr.bf16.mxu1 %v4103_v3  ;;  %v840_v3 = vld [vmem:[#allocation7 + $0x1c0] sm:$0xff] }
 0x485   :  { %v4155_v11 = vpack.c.bf16 %v841_v4, %v840_v3  ;;  %v5193_v54 = vsub.s32 0, %v619_v53  ;;  %v5200_v57 = vsub.s32 1, %v619_v53  ;;  %v5202_v58 = vsub.s32 3, %v619_v53 }
 0x487   :  { %4106 = vmatpush1.bf16.msra.mxu1 %v4105_v7  ;;  %v792_v7 = vld [vmem:[#allocation7 + $0x40] sm:$0xff] }
 0x488   :  { %4140 = vmatprep.subr.bf16.mxu1 %v4139_v14  ;;  %v810_v14 = vld [vmem:[#allocation7 + $0xd0] sm:$0xff] }
 0x509   :  { %v533_v15 = vpop.xlane.xlu0 %532 }
 0x50a   :  { %v534_v16 = vmul.f32 0.0078125, %v533_v15  ;;  %v811_v15 = vld [vmem:[#allocation7 + $0xd8] sm:$0xff] }
 0x50b   :  { %v4127_v22 = vpack.c.bf16 %v811_v15, %v810_v14 }
 0x50c   :  { %v535_v17 = vadd.f32 1e-05, %v534_v16  ;;  %v842_v16 = vld [vmem:[#allocation7 + $0x1d0] sm:$0xff] }
 0x50e   :  { %4680 = vrsqrt.f32 %v535_v17  ;;  %v843_v17 = vld [vmem:[#allocation7 + $0x1d8] sm:$0xff] }
 0x518   :  { %v4681_v19 = vpop.eup %4680 }
 0x519   :  { %v537_v23 = vmul.f32 %v4681_v19, %v5176_v8  ;;  %v836_v8 = vld [vmem:[#allocation7 + $0x1a0] sm:$0xff]  ;;  %v4157_v19 = vpack.c.bf16 %v825_v13, %v824_v12 }
 0x51a   :  { %v4147_v48 = vpack.c.bf16 %v837_v42, %v836_v8  ;;  %v815_v8 = vld [vmem:[#allocation7 + $0xf8] sm:$0xff]  ;;  %v846_v42 = vld [vmem:[#allocation7 + $0x1f0] sm:$0xff] }
 0x51b   :  { %v544_v30 = vmul.f32 %v3029_v18, %v537_v23  ;;  %v4125_v18 = vpack.c.bf16 %v793_v9, %v792_v7  ;;  %v4159_v23 = vpack.c.bf16 %v843_v17, %v842_v16  ;;  %v3031_v16 = vld [vmem:[%s5461_s12] ss:$0 sm:$0xff] }
 0x51d   :  { %v5187_v35 = vadd.f32 %v3030_v20, %v544_v30  ;;  %v794_v20 = vld [vmem:[#allocation7 + $0x50] sm:$0xff] }
 0x51e   :  { %v4129_v30 = vpack.c.bf16 %v795_v21, %v794_v20 }
 0x51f   :  { %703 = vmatmul.mubr.f32.vlgmr.msra.gmra.mrb[4].mxu0 %v5187_v35  ;;  %774 = vmatmul.mubr.f32.vlgmr.msra.gmra.mrb[4].mxu1 %v5187_v35 }
 0x520   :  { %4110 = vmatpush3.bf16.msra.mxu0 %v4109_v31  ;;  %4142 = vmatpush3.bf16.msra.mxu1 %v4141_v32  ;;  %v4161_v31 = vpack.c.bf16 %v827_v25, %v826_v24  ;;  %v4131_v32 = vpack.c.bf16 %v813_v27, %v812_v26  ;;  %v1024_v24 = vld [vmem:[#allocation2 + $0x80] sm:$0xff]  ;;  %v1025_v25 = vld [vmem:[#allocation2 + $0x88] sm:$0xff]  ;;  %v1026_v26 = vld [vmem:[#allocation2 + $0x90] sm:$0xff] }
 0x521   :  { %4112 = vmatprep.subr.bf16.mxu0 %v4111_v36  ;;  %4144 = vmatprep.subr.bf16.mxu1 %v4143_v37  ;;  %v797_v36 = vld [vmem:[#allocation7 + $0x68] sm:$0xff]  ;;  %v828_v37 = vld [vmem:[#allocation7 + $0x160] sm:$0xff]  ;;  %v4172_v27 = vpack.c.bf16 %v1025_v25, %v1024_v24  ;;  %v4175_v29 = vpack.c.bf16 %v1027_v28, %v1026_v26  ;;  %v1133_v24 = vld [vmem:[#allocation4 + $0xf0] sm:$0xff] }
 0x522   :  { %v4133_v38 = vpack.c.bf16 %v797_v36, %v796_v34  ;;  %v4165_v40 = vpack.c.bf16 %v829_v39, %v828_v37  ;;  %v1030_v37 = vld [vmem:[#allocation2 + $0xb0] sm:$0xff]  ;;  %v1134_v25 = vld [vmem:[#allocation4 + $0xf8] sm:$0xff] }
 0x523   :  { %v4217_v26 = vpack.c.bf16 %v1134_v25, %v1133_v24  ;;  %v1272_v24 = vld [vmem:[#allocation6 + $0x2e0] sm:$0xff] }
 0x524   :  { %4114 = vmatpush3.bf16.msra.mxu0 %v4113_v43  ;;  %4146 = vmatpush3.bf16.msra.mxu1 %v4145_v44  ;;  %v4135_v43 = vpack.c.bf16 %v815_v8, %v814_v41  ;;  %v847_v44 = vld [vmem:[#allocation7 + $0x1f8] sm:$0xff]  ;;  %v1033_v41 = vld [vmem:[#allocation2 + $0xc8] sm:$0xff] }
 0x525   :  { %4116 = vmatprep.subr.bf16.mxu0 %v4115_v47  ;;  %4148 = vmatprep.subr.bf16.mxu1 %v4147_v48  ;;  %v4167_v47 = vpack.c.bf16 %v847_v44, %v846_v42  ;;  %v4137_v48 = vpack.c.bf16 %v799_v46, %v798_v45  ;;  %v1034_v42 = vld [vmem:[#allocation2 + $0xd0] sm:$0xff]  ;;  %v1036_v45 = vld [vmem:[#allocation2 + $0xe0] sm:$0xff]  ;;  %v1037_v46 = vld [vmem:[#allocation2 + $0xe8] sm:$0xff] }
 0x528   :  { %4118 = vmatpush3.bf16.msra.mxu0 %v4117_v55  ;;  %4150 = vmatpush3.bf16.msra.mxu1 %v4149_v56  ;;  %v5195_v55 = vsub.s32 2, %v619_v53  ;;  %v616_v56 = vld [vmem:[%s5459_s10] sm:$0xf]  ;;  %v1121_v53 = vld [vmem:[#allocation4 + $0x90] sm:$0xff] }
 0x529   :  { %4120 = vmatprep.subr.bf16.mxu0 %v4119_v59  ;;  %4152 = vmatprep.subr.bf16.mxu1 %v4151_v60  ;;  %v621_v59 = vrot.slane %v616_v56, %v5193_v54  ;;  %v625_v61 = vrot.slane %v616_v56, %v5200_v57  ;;  %v633_v62 = vrot.slane %v616_v56, %v5202_v58 }
 0x52a   :  { %v629_v60 = vrot.slane %v616_v56, %v5195_v55 }
 0x52c   :  { %4122 = vmatpush3.bf16.msra.mxu0 %v4121_v5  ;;  %4154 = vmatpush3.bf16.msra.mxu1 %v4153_v6 }
 0x52d   :  { %4124 = vmatprep.subr.bf16.mxu0 %v4123_v10  ;;  %4156 = vmatprep.subr.bf16.mxu1 %v4155_v11 }
 0x530   :  { %4126 = vmatpush3.bf16.msra.mxu0 %v4125_v18  ;;  %4158 = vmatpush3.bf16.msra.mxu1 %v4157_v19 }
 0x531   :  { %4128 = vmatprep.subr.bf16.mxu0 %v4127_v22  ;;  %4160 = vmatprep.subr.bf16.mxu1 %v4159_v23 }
 0x534   :  { %4130 = vmatpush3.bf16.msra.mxu0 %v4129_v30  ;;  %4162 = vmatpush3.bf16.msra.mxu1 %v4161_v31  ;;  %v1028_v30 = vld [vmem:[#allocation2 + $0xa0] sm:$0xff]  ;;  %v1029_v31 = vld [vmem:[#allocation2 + $0xa8] sm:$0xff] }
 0x535   :  { %4132 = vmatprep.subr.bf16.mxu0 %v4131_v32  ;;  %4164 = vmatprep.subr.bf16.mxu1 %v4163_v33  ;;  %v4178_v32 = vpack.c.bf16 %v1029_v31, %v1028_v30  ;;  %v3037_v31 = vld [vmem:[%s5457_s8 + $0x1] ss:$0 sm:$0xff] }
 0x538   :  { %4134 = vmatpush3.bf16.msra.mxu0 %v4133_v38  ;;  %4166 = vmatpush3.bf16.msra.mxu1 %v4165_v40  ;;  %v1031_v38 = vld [vmem:[#allocation2 + $0xb8] sm:$0xff]  ;;  %v1032_v40 = vld [vmem:[#allocation2 + $0xc0] sm:$0xff] }
 0x539   :  { %4136 = vmatprep.subr.bf16.mxu0 %v4135_v43  ;;  %4168 = vmatprep.subr.bf16.mxu1 %v4167_v47  ;;  %v4181_v39 = vpack.c.bf16 %v1031_v38, %v1030_v37  ;;  %v4184_v8 = vpack.c.bf16 %v1033_v41, %v1032_v40  ;;  %v1035_v43 = vld [vmem:[#allocation2 + $0xd8] sm:$0xff]  ;;  %v4190_v47 = vpack.c.bf16 %v1037_v46, %v1036_v45  ;;  %v1249_v37 = vld [vmem:[#allocation6 + $0x228] sm:$0xff]  ;;  %v1244_v41 = vld [vmem:[#allocation6 + $0x200] sm:$0xff] }
 0x53a   :  { %v4187_v44 = vpack.c.bf16 %v1035_v43, %v1034_v42  ;;  %v1247_v38 = vld [vmem:[#allocation6 + $0x218] sm:$0xff]  ;;  %v1250_v45 = vld [vmem:[#allocation6 + $0x230] sm:$0xff]  ;;  %v1253_v46 = vld [vmem:[#allocation6 + $0x248] sm:$0xff] }
 0x53b   :  { %v1251_v40 = vld [vmem:[#allocation6 + $0x238] sm:$0xff] }
 0x53c   :  { %4138 = vmatpush3.bf16.msra.mxu0 %v4137_v48  ;;  %4170 = vmatpush3.bf16.msra.mxu1 %v4169_v51  ;;  %v1038_v48 = vld [vmem:[#allocation2 + $0xf0] sm:$0xff]  ;;  %v1119_v51 = vld [vmem:[#allocation4 + $0x80] sm:$0xff]  ;;  %v4251_v42 = vpack.c.bf16 %v1251_v40, %v1247_v38 }
 0x53d   :  { %4171 = vmatprep.subr.bf16.mxu0 %v4846_v1  ;;  %4195 = vmatprep.subr.bf16.mxu1 %v4846_v1  ;;  %v4193_v50 = vpack.c.bf16 %v1039_v49, %v1038_v48  ;;  %v4196_v56 = vpack.c.bf16 %v1120_v52, %v1119_v51  ;;  %v1257_v48 = vld [vmem:[#allocation6 + $0x268] sm:$0xff]  ;;  %v1255_v49 = vld [vmem:[#allocation6 + $0x258] sm:$0xff]  ;;  %v1282_v40 = vld [vmem:[#allocation6 + $0x330] sm:$0xff] }
 0x53e   :  { %v4223_v51 = vpack.c.bf16 %v1257_v48, %v1253_v46  ;;  %v1288_v48 = vld [vmem:[#allocation6 + $0x360] sm:$0xff] }
 0x5f2   :  { %v704_v63 = vpop.f32.mrb[4].mxu0  ;;  %v775_v2 = vpop.f32.mrb[4].mxu1 }
 0x5f3   :  { %v705_v3 = vadd.f32 %v704_v63, %v621_v59  ;;  %v776_v4 = vadd.f32 %v775_v2, %v629_v60  ;;  %v706_v5 = vpop.f32.mrb[5].mxu0  ;;  %v777_v6 = vpop.f32.mrb[5].mxu1  ;;  %v1122_v59 = vld [vmem:[#allocation4 + $0x98] sm:$0xff]  ;;  %v1125_v2 = vld [vmem:[#allocation4 + $0xb0] sm:$0xff] }
 0x5f4   :  { %v707_v7 = vadd.f32 %v706_v5, %v625_v61  ;;  %v778_v9 = vadd.f32 %v777_v6, %v633_v62  ;;  %v4199_v60 = vpack.c.bf16 %v1122_v59, %v1121_v53  ;;  %v1123_v61 = vld [vmem:[#allocation4 + $0xa0] sm:$0xff]  ;;  %v1124_v62 = vld [vmem:[#allocation4 + $0xa8] sm:$0xff]  ;;  %v1254_v59 = vld [vmem:[#allocation6 + $0x250] sm:$0xff] }
 0x5f5   :  { %v780_v12 = vmax.f32 %v705_v3, 0.0  ;;  %v782_v13 = vmax.f32 %v776_v4, 0.0  ;;  %v4202_v63 = vpack.c.bf16 %v1124_v62, %v1123_v61  ;;  %v1126_v3 = vld [vmem:[#allocation4 + $0xb8] sm:$0xff]  ;;  %v1127_v5 = vld [vmem:[#allocation4 + $0xc0] sm:$0xff]  ;;  %v1128_v6 = vld [vmem:[#allocation4 + $0xc8] sm:$0xff] }
 0x5f6   :  { %v781_v10 = vmax.f32 %v707_v7, 0.0  ;;  %v783_v11 = vmax.f32 %v778_v9, 0.0  ;;  %v4205_v4 = vpack.c.bf16 %v1126_v3, %v1125_v2  ;;  %v4208_v7 = vpack.c.bf16 %v1128_v6, %v1127_v5  ;;  %v1129_v9 = vld [vmem:[#allocation4 + $0xd0] sm:$0xff]  ;;  %v1252_v53 = vld [vmem:[#allocation6 + $0x240] sm:$0xff]  ;;  %v1261_v62 = vld [vmem:[#allocation6 + $0x288] sm:$0xff] }
 0x5f7   :  { %v1258_v61 = vld [vmem:[#allocation6 + $0x270] sm:$0xff]  ;;  %v1267_v5 = vld [vmem:[#allocation6 + $0x2b8] sm:$0xff]  ;;  %v1260_v6 = vld [vmem:[#allocation6 + $0x280] sm:$0xff] }
 0x5f8   :  { %919 = vmatprep.mubr.f32.mxu0 %v781_v10  ;;  %989 = vmatprep.mubr.f32.mxu1 %v783_v11  ;;  %v1130_v10 = vld [vmem:[#allocation4 + $0xd8] sm:$0xff]  ;;  %v4257_v2 = vpack.c.bf16 %v1258_v61, %v1254_v59 }
 0x5f9   :  { %920 = vmatmul.mubr.f32.vlgmr.msra.gmra.mrb[6].mxu0 %v780_v12  ;;  %990 = vmatmul.mubr.f32.vlgmr.msra.gmra.mrb[6].mxu1 %v782_v13  ;;  %v4211_v11 = vpack.c.bf16 %v1130_v10, %v1129_v9  ;;  %v1131_v12 = vld [vmem:[#allocation4 + $0xe0] sm:$0xff]  ;;  %v1132_v13 = vld [vmem:[#allocation4 + $0xe8] sm:$0xff]  ;;  %v1262_v10 = vld [vmem:[#allocation6 + $0x290] sm:$0xff] }
 0x5fa   :  { %3653 = vmatprep.mubr.msk.f32.mxu0 %vm4845_vm0, %v4844_v0  ;;  %3688 = vmatprep.mubr.msk.f32.mxu1 %vm4845_vm0, %v4844_v0  ;;  %v1264_v9 = vld [vmem:[#allocation6 + $0x2a0] sm:$0xff]  ;;  %v1299_v61 = vld [vmem:[#allocation6 + $0x3b8] sm:$0xff] }
 0x5fb   :  { %4173 = vmatpush3.bf16.msra.mxu0 %v4172_v27  ;;  %4197 = vmatpush3.bf16.msra.mxu1 %v4196_v56  ;;  %v3035_v27 = vld [vmem:[%s5496_s2 + $0x1] ss:$0 sm:$0xff] }
 0x5fc   :  { %4174 = vmatprep.subr.bf16.mxu0 %v4846_v1  ;;  %4198 = vmatprep.subr.bf16.mxu1 %v4846_v1  ;;  %v1256_v56 = vld [vmem:[#allocation6 + $0x260] sm:$0xff] }
 0x5ff   :  { %4176 = vmatpush3.bf16.msra.mxu0 %v4175_v29  ;;  %4200 = vmatpush3.bf16.msra.mxu1 %v4199_v60  ;;  %v4225_v60 = vpack.c.bf16 %v1256_v56, %v1252_v53  ;;  %v1297_v53 = vld [vmem:[#allocation6 + $0x3a8] sm:$0xff] }
 0x600   :  { %4177 = vmatprep.subr.bf16.mxu0 %v4846_v1  ;;  %4201 = vmatprep.subr.bf16.mxu1 %v4846_v1 }
 0x603   :  { %4179 = vmatpush3.bf16.msra.mxu0 %v4178_v32  ;;  %4203 = vmatpush3.bf16.msra.mxu1 %v4202_v63  ;;  %v1265_v63 = vld [vmem:[#allocation6 + $0x2a8] sm:$0xff] }
 0x604   :  { %4180 = vmatprep.subr.bf16.mxu0 %v4846_v1  ;;  %4204 = vmatprep.subr.bf16.mxu1 %v4846_v1  ;;  %v4227_v3 = vpack.c.bf16 %v1265_v63, %v1261_v62  ;;  %v1292_v62 = vld [vmem:[#allocation6 + $0x380] sm:$0xff] }
 0x607   :  { %4182 = vmatpush3.bf16.msra.mxu0 %v4181_v39  ;;  %4206 = vmatpush3.bf16.msra.mxu1 %v4205_v4  ;;  %v1263_v4 = vld [vmem:[#allocation6 + $0x298] sm:$0xff] }
 0x608   :  { %4183 = vmatprep.subr.bf16.mxu0 %v4846_v1  ;;  %4207 = vmatprep.subr.bf16.mxu1 %v4846_v1 }
 0x60b   :  { %4185 = vmatpush3.bf16.msra.mxu0 %v4184_v8  ;;  %4209 = vmatpush3.bf16.msra.mxu1 %v4208_v7  ;;  %v1248_v8 = vld [vmem:[#allocation6 + $0x220] sm:$0xff]  ;;  %v4259_v7 = vpack.c.bf16 %v1267_v5, %v1263_v4  ;;  %v1298_v4 = vld [vmem:[#allocation6 + $0x3b0] sm:$0xff] }
 0x60c   :  { %4186 = vmatprep.subr.bf16.mxu0 %v4846_v1  ;;  %4210 = vmatprep.subr.bf16.mxu1 %v4846_v1  ;;  %v4221_v43 = vpack.c.bf16 %v1248_v8, %v1244_v41  ;;  %v1285_v41 = vld [vmem:[#allocation6 + $0x348] sm:$0xff] }
 0x60f   :  { %4188 = vmatpush3.bf16.msra.mxu0 %v4187_v44  ;;  %4212 = vmatpush3.bf16.msra.mxu1 %v4211_v11  ;;  %v1246_v44 = vld [vmem:[#allocation6 + $0x210] sm:$0xff] }
 0x610   :  { %4189 = vmatprep.subr.bf16.mxu0 %v4846_v1  ;;  %4213 = vmatprep.subr.bf16.mxu1 %v4846_v1  ;;  %v1266_v11 = vld [vmem:[#allocation6 + $0x2b0] sm:$0xff] }
 0x613   :  { %4191 = vmatpush3.bf16.msra.mxu0 %v4190_v47  ;;  %v4253_v47 = vpack.c.bf16 %v1250_v45, %v1246_v44  ;;  %v1291_v44 = vld [vmem:[#allocation6 + $0x378] sm:$0xff] }
 0x614   :  { %4192 = vmatprep.subr.bf16.mxu0 %v4846_v1 }
 0x617   :  { %4194 = vmatpush3.bf16.msra.mxu0 %v4193_v50  ;;  %v1259_v50 = vld [vmem:[#allocation6 + $0x278] sm:$0xff] }
 0x618   :  { %v4255_v52 = vpack.c.bf16 %v1259_v50, %v1255_v49  ;;  %v1286_v49 = vld [vmem:[#allocation6 + $0x350] sm:$0xff] }
 0x6cc   :  { %v3163_v14 = vpop.f32.mrb[6].mxu0  ;;  %v3198_v15 = vpop.f32.mrb[6].mxu1 }
 0x6cd   :  { %v3164_v17 = vpop.f32.mrb[7].mxu0  ;;  %v3199_v18 = vpop.f32.mrb[7].mxu1 }
 0x6ce   :  { %v3165_v19 = vadd.f32 %v3164_v17, %v3163_v14  ;;  %v3200_v20 = vadd.f32 %v3199_v18, %v3198_v15  ;;  %v4214_v14 = vpack.c.bf16 %v1132_v13, %v1131_v12  ;;  %v4229_v12 = vpack.c.bf16 %v1264_v9, %v1260_v6  ;;  %v1301_v6 = vld [vmem:[#allocation6 + $0x3c8] sm:$0xff]  ;;  %v1303_v9 = vld [vmem:[#allocation6 + $0x3d8] sm:$0xff] }
 0x6cf   :  { %v4261_v13 = vpack.c.bf16 %v1266_v11, %v1262_v10 }
 0x6d0   :  { %v922_v21 = vadd.f32 %v3165_v19, %v3031_v16  ;;  %4215 = vmatpush3.bf16.msra.mxu1 %v4214_v14  ;;  %v3032_v19 = vld [vmem:[%s5464_s15] ss:$0 sm:$0xff] }
 0x6d1   :  { %4216 = vmatprep.subr.bf16.mxu1 %v4846_v1 }
 0x6d2   :  { %v992_v22 = vadd.f32 %v3200_v20, %v922_v21  ;;  %v3033_v21 = vld [vmem:[%s5465_s16] ss:$0 sm:$0xff] }
 0x6d4   :  { %v995_v23 = vadd.f32 %v992_v22, %v5187_v35  ;;  %4218 = vmatpush3.bf16.msra.mxu1 %v4217_v26 }
 0x6d5   :  { %4252 = vmatprep.subr.bf16.mxu1 %v4251_v42  ;;  %v1289_v42 = vld [vmem:[#allocation6 + $0x368] sm:$0xff] }
 0x6d6   :  { %998 = vadd.xlane.f32.xlu1 %v995_v23  ;;  %v4239_v45 = vpack.c.bf16 %v1289_v42, %v1285_v41  ;;  %v1529_v41 = vld [vmem:[#allocation7 + $0x398] sm:$0xff] }
 0x763   :  { %v999_v35 = vpop.xlane.xlu1 %998 }
 0x764   :  { %v1000_v33 = vmul.f32 0.0078125, %v999_v35 }
 0x766   :  { %v5219_v34 = vsub.f32 %v995_v23, %v1000_v33 }
 0x768   :  { %v1002_v36 = vmul.f32 %v5219_v34, %v5219_v34 }
 0x76a   :  { %1003 = vadd.xlane.f32.xlu1 %v1002_v36  ;;  %v1245_v36 = vld [vmem:[#allocation6 + $0x208] sm:$0xff] }
 0x76b   :  { %v4219_v39 = vpack.c.bf16 %v1249_v37, %v1245_v36  ;;  %v1280_v36 = vld [vmem:[#allocation6 + $0x320] sm:$0xff] }
 0x76d   :  { %4220 = vmatprep.subr.bf16.mxu0 %v4219_v39  ;;  %v1278_v39 = vld [vmem:[#allocation6 + $0x310] sm:$0xff] }
 0x76e   :  { %v4269_v8 = vpack.c.bf16 %v1282_v40, %v1278_v39  ;;  %v1497_v39 = vld [vmem:[#allocation7 + $0x298] sm:$0xff]  ;;  %v1528_v40 = vld [vmem:[#allocation7 + $0x390] sm:$0xff] }
 0x7f7   :  { %v1004_v15 = vpop.xlane.xlu1 %1003 }
 0x7f8   :  { %v1005_v16 = vmul.f32 0.0078125, %v1004_v15 }
 0x7fa   :  { %v1006_v17 = vadd.f32 1e-05, %v1005_v16 }
 0x7fc   :  { %4682 = vrsqrt.f32 %v1006_v17 }
 0x806   :  { %v4683_v18 = vpop.eup %4682 }
 0x807   :  { %v1008_v20 = vmul.f32 %v4683_v18, %v5219_v34  ;;  %v1269_v18 = vld [vmem:[#allocation6 + $0x2c8] sm:$0xff] }
 0x809   :  { %v1015_v22 = vmul.f32 %v3032_v19, %v1008_v20  ;;  %v1273_v19 = vld [vmem:[#allocation6 + $0x2e8] sm:$0xff]  ;;  %v1271_v20 = vld [vmem:[#allocation6 + $0x2d8] sm:$0xff] }
 0x80b   :  { %v1022_v23 = vadd.f32 %v3033_v21, %v1015_v22  ;;  %v4231_v21 = vpack.c.bf16 %v1273_v19, %v1269_v18  ;;  %v1275_v22 = vld [vmem:[#allocation6 + $0x2f8] sm:$0xff]  ;;  %v1306_v18 = vld [vmem:[#allocation6 + $0x3f0] sm:$0xff] }
 0x80c   :  { %v4263_v25 = vpack.c.bf16 %v1275_v22, %v1271_v20  ;;  %v1495_v22 = vld [vmem:[#allocation7 + $0x288] sm:$0xff] }
 0x80d   :  { %3654 = vmatmul.mubr.f32.vlgmr.msra.gmra.mrb[8].mxu0 %v1022_v23 }
 0x80e   :  { %1395 = vmatprep.mubr.f32.mxu0 %v4844_v0  ;;  %4222 = vmatpush1.bf16.msra.mxu0 %v4221_v43  ;;  %v1287_v43 = vld [vmem:[#allocation6 + $0x358] sm:$0xff] }
 0x80f   :  { %4224 = vmatprep.subr.bf16.mxu0 %v4223_v51  ;;  %v4271_v46 = vpack.c.bf16 %v1291_v44, %v1287_v43  ;;  %v1290_v51 = vld [vmem:[#allocation6 + $0x370] sm:$0xff] }
 0x810   :  { %v4273_v56 = vpack.c.bf16 %v1290_v51, %v1286_v49  ;;  %v1480_v44 = vld [vmem:[#allocation7 + $0x210] sm:$0xff]  ;;  %v1498_v51 = vld [vmem:[#allocation7 + $0x2a0] sm:$0xff] }
 0x811   :  { %v1512_v49 = vld [vmem:[#allocation7 + $0x310] sm:$0xff] }
 0x812   :  { %4226 = vmatpush1.bf16.msra.mxu0 %v4225_v60  ;;  %v1295_v60 = vld [vmem:[#allocation6 + $0x398] sm:$0xff] }
 0x813   :  { %4228 = vmatprep.subr.bf16.mxu0 %v4227_v3  ;;  %v4275_v63 = vpack.c.bf16 %v1299_v61, %v1295_v60  ;;  %v1294_v3 = vld [vmem:[#allocation6 + $0x390] sm:$0xff]  ;;  %v1482_v60 = vld [vmem:[#allocation7 + $0x220] sm:$0xff]  ;;  %v1483_v61 = vld [vmem:[#allocation7 + $0x228] sm:$0xff] }
 0x814   :  { %v4277_v10 = vpack.c.bf16 %v1298_v4, %v1294_v3  ;;  %v1515_v3 = vld [vmem:[#allocation7 + $0x328] sm:$0xff]  ;;  %v1500_v4 = vld [vmem:[#allocation7 + $0x2b0] sm:$0xff] }
 0x816   :  { %4230 = vmatpush1.bf16.msra.mxu0 %v4229_v12  ;;  %v1307_v12 = vld [vmem:[#allocation6 + $0x3f8] sm:$0xff] }
 0x817   :  { %4232 = vmatprep.subr.bf16.mxu0 %v4231_v21  ;;  %v1494_v21 = vld [vmem:[#allocation7 + $0x280] sm:$0xff] }
 0x8e0   :  { %v1114_v28 = vpop.f32.mrb[8].mxu0 }
 0x8e1   :  { %v1115_v29 = vadd.f32 %v3035_v27, %v1114_v28  ;;  %v3655_v30 = vpop.f32.mrb[9].mxu0  ;;  %v1270_v27 = vld [vmem:[#allocation6 + $0x2d0] sm:$0xff] }
 0x8e2   :  { %v1274_v28 = vld [vmem:[#allocation6 + $0x2f0] sm:$0xff]  ;;  %v1277_v30 = vld [vmem:[#allocation6 + $0x308] sm:$0xff] }
 0x8e3   :  { %3689 = vmatmul.mubr.f32.vlgmr.msra.gmra.mrb[8].mxu1 %v1115_v29  ;;  %v4265_v29 = vpack.c.bf16 %v1274_v28, %v1270_v27 }
 0x8e4   :  { %1466 = vmatprep.mubr.f32.mxu1 %v4844_v0  ;;  %4254 = vmatpush1.bf16.msra.mxu1 %v4253_v47  ;;  %v1284_v47 = vld [vmem:[#allocation6 + $0x340] sm:$0xff] }
 0x8e5   :  { %4256 = vmatprep.subr.bf16.mxu1 %v4255_v52  ;;  %v4241_v50 = vpack.c.bf16 %v1288_v48, %v1284_v47  ;;  %v1293_v52 = vld [vmem:[#allocation6 + $0x388] sm:$0xff]  ;;  %v4319_v48 = vpack.c.bf16 %v1529_v41, %v1528_v40  ;;  %v1520_v40 = vld [vmem:[#allocation7 + $0x350] sm:$0xff]  ;;  %v1521_v41 = vld [vmem:[#allocation7 + $0x358] sm:$0xff] }
 0x8e6   :  { %v4243_v59 = vpack.c.bf16 %v1297_v53, %v1293_v52  ;;  %v1499_v52 = vld [vmem:[#allocation7 + $0x2a8] sm:$0xff] }
 0x8e7   :  { %v1531_v53 = vld [vmem:[#allocation7 + $0x3a8] sm:$0xff] }
 0x8e8   :  { %4258 = vmatpush1.bf16.msra.mxu1 %v4257_v2  ;;  %v1296_v2 = vld [vmem:[#allocation6 + $0x3a0] sm:$0xff] }
 0x8e9   :  { %4260 = vmatprep.subr.bf16.mxu1 %v4259_v7  ;;  %v4245_v5 = vpack.c.bf16 %v1296_v2, %v1292_v62  ;;  %v1305_v7 = vld [vmem:[#allocation6 + $0x3e8] sm:$0xff]  ;;  %v4291_v62 = vpack.c.bf16 %v1499_v52, %v1498_v51  ;;  %v1514_v2 = vld [vmem:[#allocation7 + $0x320] sm:$0xff] }
 0x8ea   :  { %v4247_v11 = vpack.c.bf16 %v1305_v7, %v1301_v6  ;;  %v1532_v6 = vld [vmem:[#allocation7 + $0x3b0] sm:$0xff]  ;;  %v1533_v7 = vld [vmem:[#allocation7 + $0x3b8] sm:$0xff]  ;;  %v1491_v51 = vld [vmem:[#allocation7 + $0x268] sm:$0xff] }
 0x8eb   :  { %v1522_v52 = vld [vmem:[#allocation7 + $0x360] sm:$0xff] }
 0x8ec   :  { %4262 = vmatpush1.bf16.msra.mxu1 %v4261_v13  ;;  %v1300_v13 = vld [vmem:[#allocation6 + $0x3c0] sm:$0xff] }
 0x8ed   :  { %4264 = vmatprep.subr.bf16.mxu1 %v4263_v25  ;;  %v1527_v25 = vld [vmem:[#allocation7 + $0x388] sm:$0xff] }
 0x8f0   :  { %4266 = vmatpush1.bf16.msra.mxu1 %v4265_v29 }
 0x9b6   :  { %v1209_v32 = vpop.f32.mrb[8].mxu1 }
 0x9b7   :  { %v1210_v35 = vadd.f32 %v3037_v31, %v1209_v32  ;;  %v3690_v33 = vpop.f32.mrb[9].mxu1  ;;  %v1281_v31 = vld [vmem:[#allocation6 + $0x328] sm:$0xff]  ;;  %v1279_v32 = vld [vmem:[#allocation6 + $0x318] sm:$0xff] }
 0x9b8   :  { %v1283_v33 = vld [vmem:[#allocation6 + $0x338] sm:$0xff] }
 0x9b9   :  { %v1213_v34 = vadd.f32 %v1210_v35, %v1022_v23  ;;  %v1268_v23 = vld [vmem:[#allocation6 + $0x2c0] sm:$0xff]  ;;  %v4235_v35 = vpack.c.bf16 %v1281_v31, %v1277_v30  ;;  %v4267_v37 = vpack.c.bf16 %v1283_v33, %v1279_v32  ;;  %v1479_v33 = vld [vmem:[#allocation7 + $0x208] sm:$0xff] }
 0x9ba   :  { %v4233_v26 = vpack.c.bf16 %v1272_v24, %v1268_v23  ;;  %v1526_v23 = vld [vmem:[#allocation7 + $0x380] sm:$0xff]  ;;  %v4283_v24 = vpack.c.bf16 %v1495_v22, %v1494_v21  ;;  %v1535_v21 = vld [vmem:[#allocation7 + $0x3c8] sm:$0xff] }
 0x9bb   :  { %1218 = vadd.xlane.f32.xlu0 %v1213_v34  ;;  %4268 = vmatprep.subr.bf16.mxu1 %v4267_v37  ;;  %v3040_v30 = vld [vmem:[%s5462_s13 + $0x1] ss:$0 sm:$0xff]  ;;  %v1511_v37 = vld [vmem:[#allocation7 + $0x308] sm:$0xff] }
 0x9bc   :  { %4234 = vmatpush1.bf16.msra.mxu0 %v4233_v26  ;;  %4270 = vmatpush1.bf16.msra.mxu1 %v4269_v8  ;;  %v4315_v26 = vpack.c.bf16 %v1527_v25, %v1526_v23  ;;  %v3041_v32 = vld [vmem:[%s5463_s14 + $0x1] ss:$0 sm:$0xff]  ;;  %v1487_v25 = vld [vmem:[#allocation7 + $0x248] sm:$0xff] }
 0x9bd   :  { %4236 = vmatprep.subr.bf16.mxu0 %v4235_v35  ;;  %4272 = vmatprep.subr.bf16.mxu1 %v4271_v46  ;;  %v1478_v35 = vld [vmem:[#allocation7 + $0x200] sm:$0xff] }
 0x9be   :  { %v4285_v42 = vpack.c.bf16 %v1479_v33, %v1478_v35  ;;  %v1537_v35 = vld [vmem:[#allocation7 + $0x3d8] sm:$0xff] }
 0x9c0   :  { %4274 = vmatpush1.bf16.msra.mxu1 %v4273_v56 }
 0x9c1   :  { %4276 = vmatprep.subr.bf16.mxu1 %v4275_v63 }
 0x9c4   :  { %4278 = vmatpush1.bf16.msra.mxu1 %v4277_v10  ;;  %v4325_v10 = vpack.c.bf16 %v1515_v3, %v1514_v2  ;;  %v1492_v2 = vld [vmem:[#allocation7 + $0x270] sm:$0xff]  ;;  %v1493_v3 = vld [vmem:[#allocation7 + $0x278] sm:$0xff] }
 0xa48   :  { %v1219_v14 = vpop.xlane.xlu0 %1218 }
 0xa49   :  { %v1220_v15 = vmul.f32 0.0078125, %v1219_v14  ;;  %v1304_v14 = vld [vmem:[#allocation6 + $0x3e0] sm:$0xff] }
 0xa4a   :  { %v4249_v19 = vpack.c.bf16 %v1304_v14, %v1300_v13  ;;  %v4327_v14 = vpack.c.bf16 %v1533_v7, %v1532_v6  ;;  %v1524_v6 = vld [vmem:[#allocation7 + $0x370] sm:$0xff]  ;;  %v1525_v7 = vld [vmem:[#allocation7 + $0x378] sm:$0xff] }
 0xa4b   :  { %v5249_v16 = vsub.f32 %v1213_v34, %v1220_v15  ;;  %v1276_v34 = vld [vmem:[#allocation6 + $0x300] sm:$0xff]  ;;  %v4279_v15 = vpack.c.bf16 %v1307_v12, %v1303_v9  ;;  %v4293_v9 = vpack.c.bf16 %v1483_v61, %v1482_v60  ;;  %v1485_v12 = vld [vmem:[#allocation7 + $0x238] sm:$0xff]  ;;  %v1540_v61 = vld [vmem:[#allocation7 + $0x3f0] sm:$0xff] }
 0xa4c   :  { %v4237_v38 = vpack.c.bf16 %v1280_v36, %v1276_v34  ;;  %v1510_v36 = vld [vmem:[#allocation7 + $0x300] sm:$0xff]  ;;  %v1509_v60 = vld [vmem:[#allocation7 + $0x2f8] sm:$0xff] }
 0xa4d   :  { %v1222_v17 = vmul.f32 %v5249_v16, %v5249_v16  ;;  %4280 = vmatprep.subr.bf16.mxu1 %v4279_v15  ;;  %v4317_v43 = vpack.c.bf16 %v1511_v37, %v1510_v36  ;;  %v1516_v15 = vld [vmem:[#allocation7 + $0x330] sm:$0xff]  ;;  %v1489_v37 = vld [vmem:[#allocation7 + $0x258] sm:$0xff] }
 0xa4e   :  { %4238 = vmatpush1.bf16.msra.mxu0 %v4237_v38  ;;  %v1496_v38 = vld [vmem:[#allocation7 + $0x290] sm:$0xff] }
 0xa4f   :  { %1223 = vadd.xlane.f32.xlu1 %v1222_v17  ;;  %4240 = vmatprep.subr.bf16.mxu0 %v4239_v45  ;;  %v1302_v17 = vld [vmem:[#allocation6 + $0x3d0] sm:$0xff]  ;;  %v1481_v45 = vld [vmem:[#allocation7 + $0x218] sm:$0xff]  ;;  %v4287_v47 = vpack.c.bf16 %v1497_v39, %v1496_v38 }
 0xa50   :  { %v4281_v20 = vpack.c.bf16 %v1306_v18, %v1302_v17  ;;  %v4289_v56 = vpack.c.bf16 %v1481_v45, %v1480_v44  ;;  %v1517_v17 = vld [vmem:[#allocation7 + $0x338] sm:$0xff]  ;;  %v1502_v18 = vld [vmem:[#allocation7 + $0x2c0] sm:$0xff]  ;;  %v1488_v36 = vld [vmem:[#allocation7 + $0x250] sm:$0xff] }
 0xa51   :  { %v4329_v23 = vpack.c.bf16 %v1517_v17, %v1516_v15  ;;  %v1539_v44 = vld [vmem:[#allocation7 + $0x3e8] sm:$0xff]  ;;  %v4305_v45 = vpack.c.bf16 %v1489_v37, %v1488_v36 }
 0xa52   :  { %4242 = vmatpush1.bf16.msra.mxu0 %v4241_v50  ;;  %4282 = vmatpush1.bf16.msra.mxu1 %v4281_v20  ;;  %v1513_v50 = vld [vmem:[#allocation7 + $0x318] sm:$0xff]  ;;  %v1534_v20 = vld [vmem:[#allocation7 + $0x3c0] sm:$0xff] }
 0xa53   :  { %4244 = vmatprep.subr.bf16.mxu0 %v4243_v59  ;;  %4316 = vmatprep.subr.bf16.mxu1 %v4315_v26  ;;  %v4321_v59 = vpack.c.bf16 %v1513_v50, %v1512_v49  ;;  %v1490_v50 = vld [vmem:[#allocation7 + $0x260] sm:$0xff] }
 0xa56   :  { %4246 = vmatpush1.bf16.msra.mxu0 %v4245_v5  ;;  %v1501_v5 = vld [vmem:[#allocation7 + $0x2b8] sm:$0xff] }
 0xa57   :  { %4248 = vmatprep.subr.bf16.mxu0 %v4247_v11  ;;  %v1484_v11 = vld [vmem:[#allocation7 + $0x230] sm:$0xff]  ;;  %v4295_v13 = vpack.c.bf16 %v1501_v5, %v1500_v4  ;;  %v4313_v5 = vpack.c.bf16 %v1493_v3, %v1492_v2 }
 0xa58   :  { %v4297_v22 = vpack.c.bf16 %v1485_v12, %v1484_v11  ;;  %v1735_v3 = vld [vmem:[#allocation2 + $0x170] sm:$0xff] }
 0xa5a   :  { %4250 = vmatpush1.bf16.msra.mxu0 %v4249_v19  ;;  %v1503_v19 = vld [vmem:[#allocation7 + $0x2c8] sm:$0xff] }
 0xa5b   :  { %4284 = vmatprep.subr.bf16.mxu0 %v4283_v24  ;;  %v1486_v24 = vld [vmem:[#allocation7 + $0x240] sm:$0xff]  ;;  %v4299_v26 = vpack.c.bf16 %v1503_v19, %v1502_v18 }
 0xa5c   :  { %v4301_v33 = vpack.c.bf16 %v1487_v25, %v1486_v24 }
 0xadc   :  { %v1224_v27 = vpop.xlane.xlu1 %1223 }
 0xadd   :  { %v1225_v28 = vmul.f32 0.0078125, %v1224_v27  ;;  %v4331_v27 = vpack.c.bf16 %v1535_v21, %v1534_v20 }
 0xadf   :  { %v1226_v29 = vadd.f32 1e-05, %v1225_v28  ;;  %v1518_v28 = vld [vmem:[#allocation7 + $0x340] sm:$0xff] }
 0xae1   :  { %4684 = vrsqrt.f32 %v1226_v29  ;;  %v1519_v29 = vld [vmem:[#allocation7 + $0x348] sm:$0xff] }
 0xaeb   :  { %v4685_v31 = vpop.eup %4684 }
 0xaec   :  { %v1228_v34 = vmul.f32 %v4685_v31, %v5249_v16  ;;  %v1530_v16 = vld [vmem:[#allocation7 + $0x3a0] sm:$0xff]  ;;  %v1505_v31 = vld [vmem:[#allocation7 + $0x2d8] sm:$0xff] }
 0xaed   :  { %v4323_v63 = vpack.c.bf16 %v1531_v53, %v1530_v16  ;;  %v4309_v16 = vpack.c.bf16 %v1491_v51, %v1490_v50  ;;  %v1523_v53 = vld [vmem:[#allocation7 + $0x368] sm:$0xff]  ;;  %v1727_v50 = vld [vmem:[#allocation2 + $0x130] sm:$0xff]  ;;  %v1728_v51 = vld [vmem:[#allocation2 + $0x138] sm:$0xff] }
 0xaee   :  { %v1235_v8 = vmul.f32 %v3040_v30, %v1228_v34  ;;  %v1504_v30 = vld [vmem:[#allocation7 + $0x2d0] sm:$0xff]  ;;  %v4333_v34 = vpack.c.bf16 %v1519_v29, %v1518_v28 }
 0xaef   :  { %v4303_v38 = vpack.c.bf16 %v1505_v31, %v1504_v30  ;;  %v3044_v30 = vld [vmem:[%s5461_s12 + $0x1] ss:$0 sm:$0xff] }
 0xaf0   :  { %v5260_v46 = vadd.f32 %v3041_v32, %v1235_v8  ;;  %v1536_v32 = vld [vmem:[#allocation7 + $0x3d0] sm:$0xff]  ;;  %v1506_v8 = vld [vmem:[#allocation7 + $0x2e0] sm:$0xff] }
 0xaf1   :  { %v4335_v39 = vpack.c.bf16 %v1537_v35, %v1536_v32 }
 0xaf2   :  { %1396 = vmatmul.mubr.f32.vlgmr.msra.gmra.mrb[10].mxu0 %v5260_v46  ;;  %1467 = vmatmul.mubr.f32.vlgmr.msra.gmra.mrb[10].mxu1 %v5260_v46 }
 0xaf3   :  { %4286 = vmatpush3.bf16.msra.mxu0 %v4285_v42  ;;  %4318 = vmatpush3.bf16.msra.mxu1 %v4317_v43  ;;  %v1507_v42 = vld [vmem:[#allocation7 + $0x2e8] sm:$0xff]  ;;  %v1538_v43 = vld [vmem:[#allocation7 + $0x3e0] sm:$0xff] }
 0xaf4   :  { %4288 = vmatprep.subr.bf16.mxu0 %v4287_v47  ;;  %4320 = vmatprep.subr.bf16.mxu1 %v4319_v48  ;;  %v4337_v47 = vpack.c.bf16 %v1521_v41, %v1520_v40  ;;  %v4307_v48 = vpack.c.bf16 %v1507_v42, %v1506_v8  ;;  %v4339_v49 = vpack.c.bf16 %v1539_v44, %v1538_v43  ;;  %v1723_v40 = vld [vmem:[#allocation2 + $0x110] sm:$0xff]  ;;  %v1724_v8 = vld [vmem:[#allocation2 + $0x118] sm:$0xff]  ;;  %v1725_v43 = vld [vmem:[#allocation2 + $0x120] sm:$0xff] }
 0xaf5   :  { %v4351_v42 = vpack.c.bf16 %v1724_v8, %v1723_v40  ;;  %v1726_v44 = vld [vmem:[#allocation2 + $0x128] sm:$0xff] }
 0xaf7   :  { %4290 = vmatpush3.bf16.msra.mxu0 %v4289_v56  ;;  %4322 = vmatpush3.bf16.msra.mxu1 %v4321_v59  ;;  %v4341_v56 = vpack.c.bf16 %v1523_v53, %v1522_v52  ;;  %v1508_v59 = vld [vmem:[#allocation7 + $0x2f0] sm:$0xff]  ;;  %v4357_v52 = vpack.c.bf16 %v1728_v51, %v1727_v50  ;;  %v1730_v53 = vld [vmem:[#allocation2 + $0x148] sm:$0xff]  ;;  %v1944_v51 = vld [vmem:[#allocation6 + $0x418] sm:$0xff] }
 0xaf8   :  { %4292 = vmatprep.subr.bf16.mxu0 %v4291_v62  ;;  %4324 = vmatprep.subr.bf16.mxu1 %v4323_v63  ;;  %v4311_v62 = vpack.c.bf16 %v1509_v60, %v1508_v59  ;;  %v1541_v63 = vld [vmem:[#allocation7 + $0x3f8] sm:$0xff]  ;;  %v1731_v59 = vld [vmem:[#allocation2 + $0x150] sm:$0xff]  ;;  %v1946_v50 = vld [vmem:[#allocation6 + $0x428] sm:$0xff] }
 0xaf9   :  { %v4343_v4 = vpack.c.bf16 %v1541_v63, %v1540_v61  ;;  %v1732_v60 = vld [vmem:[#allocation2 + $0x158] sm:$0xff]  ;;  %v1734_v63 = vld [vmem:[#allocation2 + $0x168] sm:$0xff] }
 0xafa   :  { %v4363_v61 = vpack.c.bf16 %v1732_v60, %v1731_v59 }
 0xafb   :  { %4294 = vmatpush3.bf16.msra.mxu0 %v4293_v9  ;;  %4326 = vmatpush3.bf16.msra.mxu1 %v4325_v10  ;;  %v4345_v9 = vpack.c.bf16 %v1525_v7, %v1524_v6  ;;  %v3042_v10 = vld [vmem:[%s5459_s10 + $0x4] sm:$0xf]  ;;  %v1817_v7 = vld [vmem:[#allocation4 + $0x108] sm:$0xff] }
 0xafc   :  { %4296 = vmatprep.subr.bf16.mxu0 %v4295_v13  ;;  %4328 = vmatprep.subr.bf16.mxu1 %v4327_v14  ;;  %v1314_v11 = vrot.slane %v3042_v10, %v5193_v54  ;;  %v1322_v12 = vrot.slane %v3042_v10, %v5195_v55  ;;  %v1318_v13 = vrot.slane %v3042_v10, %v5200_v57  ;;  %v1816_v6 = vld [vmem:[#allocation4 + $0x100] sm:$0xff] }
 0xafd   :  { %v1326_v14 = vrot.slane %v3042_v10, %v5202_v58  ;;  %v4372_v10 = vpack.c.bf16 %v1817_v7, %v1816_v6 }
 0xaff   :  { %4298 = vmatpush3.bf16.msra.mxu0 %v4297_v22  ;;  %4330 = vmatpush3.bf16.msra.mxu1 %v4329_v23 }
 0xb00   :  { %4300 = vmatprep.subr.bf16.mxu0 %v4299_v26  ;;  %4332 = vmatprep.subr.bf16.mxu1 %v4331_v27 }
 0xb03   :  { %4302 = vmatpush3.bf16.msra.mxu0 %v4301_v33  ;;  %4334 = vmatpush3.bf16.msra.mxu1 %v4333_v34 }
 0xb04   :  { %4304 = vmatprep.subr.bf16.mxu0 %v4303_v38  ;;  %4336 = vmatprep.subr.bf16.mxu1 %v4335_v39  ;;  %v1721_v38 = vld [vmem:[#allocation2 + $0x100] sm:$0xff]  ;;  %v1722_v39 = vld [vmem:[#allocation2 + $0x108] sm:$0xff] }
 0xb05   :  { %v4348_v41 = vpack.c.bf16 %v1722_v39, %v1721_v38  ;;  %v1830_v38 = vld [vmem:[#allocation4 + $0x170] sm:$0xff]  ;;  %v1831_v39 = vld [vmem:[#allocation4 + $0x178] sm:$0xff] }
 0xb06   :  { %v4393_v40 = vpack.c.bf16 %v1831_v39, %v1830_v38  ;;  %v1969_v38 = vld [vmem:[#allocation6 + $0x4e0] sm:$0xff] }
 0xb07   :  { %4306 = vmatpush3.bf16.msra.mxu0 %v4305_v45  ;;  %4338 = vmatpush3.bf16.msra.mxu1 %v4337_v47  ;;  %v4354_v45 = vpack.c.bf16 %v1726_v44, %v1725_v43  ;;  %v3052_v44 = vld [vmem:[%s5457_s8 + $0x2] ss:$0 sm:$0xff] }
 0xb08   :  { %4308 = vmatprep.subr.bf16.mxu0 %v4307_v48  ;;  %4340 = vmatprep.subr.bf16.mxu1 %v4339_v49 }
 0xb0b   :  { %4310 = vmatpush3.bf16.msra.mxu0 %v4309_v16  ;;  %4342 = vmatpush3.bf16.msra.mxu1 %v4341_v56  ;;  %v1729_v16 = vld [vmem:[#allocation2 + $0x140] sm:$0xff] }
 0xb0c   :  { %4312 = vmatprep.subr.bf16.mxu0 %v4311_v62  ;;  %4344 = vmatprep.subr.bf16.mxu1 %v4343_v4  ;;  %v4360_v56 = vpack.c.bf16 %v1730_v53, %v1729_v16  ;;  %v1733_v62 = vld [vmem:[#allocation2 + $0x160] sm:$0xff]  ;;  %v1736_v4 = vld [vmem:[#allocation2 + $0x178] sm:$0xff] }
 0xb0d   :  { %v4366_v2 = vpack.c.bf16 %v1734_v63, %v1733_v62  ;;  %v1948_v16 = vld [vmem:[#allocation6 + $0x438] sm:$0xff]  ;;  %v1941_v53 = vld [vmem:[#allocation6 + $0x400] sm:$0xff]  ;;  %v1947_v62 = vld [vmem:[#allocation6 + $0x430] sm:$0xff] }
 0xb0e   :  { %v4427_v59 = vpack.c.bf16 %v1948_v16, %v1944_v51  ;;  %v1950_v63 = vld [vmem:[#allocation6 + $0x448] sm:$0xff]  ;;  %v1979_v16 = vld [vmem:[#allocation6 + $0x530] sm:$0xff] }
 0xb0f   :  { %4314 = vmatpush3.bf16.msra.mxu0 %v4313_v5  ;;  %4346 = vmatpush3.bf16.msra.mxu1 %v4345_v9  ;;  %v4369_v5 = vpack.c.bf16 %v1736_v4, %v1735_v3  ;;  %v1818_v9 = vld [vmem:[#allocation4 + $0x110] sm:$0xff]  ;;  %v1954_v3 = vld [vmem:[#allocation6 + $0x468] sm:$0xff]  ;;  %v1952_v4 = vld [vmem:[#allocation6 + $0x458] sm:$0xff] }
 0xb10   :  { %4347 = vmatprep.subr.bf16.mxu0 %v4846_v1  ;;  %4371 = vmatprep.subr.bf16.mxu1 %v4846_v1  ;;  %v4399_v6 = vpack.c.bf16 %v1954_v3, %v1950_v63  ;;  %v1985_v3 = vld [vmem:[#allocation6 + $0x560] sm:$0xff] }
 0xbc5   :  { %v1397_v15 = vpop.f32.mrb[10].mxu0  ;;  %v1468_v17 = vpop.f32.mrb[10].mxu1 }
 0xbc6   :  { %v1398_v18 = vadd.f32 %v1397_v15, %v1314_v11  ;;  %v1469_v19 = vadd.f32 %v1468_v17, %v1322_v12  ;;  %v1399_v20 = vpop.f32.mrb[11].mxu0  ;;  %v1470_v21 = vpop.f32.mrb[11].mxu1  ;;  %v1819_v11 = vld [vmem:[#allocation4 + $0x118] sm:$0xff]  ;;  %v1822_v17 = vld [vmem:[#allocation4 + $0x130] sm:$0xff] }
 0xbc7   :  { %v1400_v22 = vadd.f32 %v1399_v20, %v1318_v13  ;;  %v1471_v23 = vadd.f32 %v1470_v21, %v1326_v14  ;;  %v4375_v12 = vpack.c.bf16 %v1819_v11, %v1818_v9  ;;  %v1820_v13 = vld [vmem:[#allocation4 + $0x120] sm:$0xff]  ;;  %v1821_v14 = vld [vmem:[#allocation4 + $0x128] sm:$0xff]  ;;  %v1951_v11 = vld [vmem:[#allocation6 + $0x450] sm:$0xff] }
 0xbc8   :  { %v1473_v26 = vmax.f32 %v1398_v18, 0.0  ;;  %v1475_v27 = vmax.f32 %v1469_v19, 0.0  ;;  %v4378_v15 = vpack.c.bf16 %v1821_v14, %v1820_v13  ;;  %v1823_v18 = vld [vmem:[#allocation4 + $0x138] sm:$0xff]  ;;  %v1824_v20 = vld [vmem:[#allocation4 + $0x140] sm:$0xff]  ;;  %v1825_v21 = vld [vmem:[#allocation4 + $0x148] sm:$0xff] }
 0xbc9   :  { %v1474_v24 = vmax.f32 %v1400_v22, 0.0  ;;  %v1476_v25 = vmax.f32 %v1471_v23, 0.0  ;;  %v4381_v19 = vpack.c.bf16 %v1823_v18, %v1822_v17  ;;  %v4384_v22 = vpack.c.bf16 %v1825_v21, %v1824_v20  ;;  %v1826_v23 = vld [vmem:[#allocation4 + $0x150] sm:$0xff]  ;;  %v1949_v9 = vld [vmem:[#allocation6 + $0x440] sm:$0xff]  ;;  %v1958_v14 = vld [vmem:[#allocation6 + $0x488] sm:$0xff] }
 0xbca   :  { %v1955_v13 = vld [vmem:[#allocation6 + $0x470] sm:$0xff]  ;;  %v1964_v20 = vld [vmem:[#allocation6 + $0x4b8] sm:$0xff]  ;;  %v1957_v21 = vld [vmem:[#allocation6 + $0x480] sm:$0xff] }
 0xbcb   :  { %1614 = vmatprep.mubr.f32.mxu0 %v1474_v24  ;;  %1684 = vmatprep.mubr.f32.mxu1 %v1476_v25  ;;  %v1827_v24 = vld [vmem:[#allocation4 + $0x158] sm:$0xff]  ;;  %v4433_v17 = vpack.c.bf16 %v1955_v13, %v1951_v11 }
 0xbcc   :  { %1615 = vmatmul.mubr.f32.vlgmr.msra.gmra.mrb[12].mxu0 %v1473_v26  ;;  %1685 = vmatmul.mubr.f32.vlgmr.msra.gmra.mrb[12].mxu1 %v1475_v27  ;;  %v4387_v25 = vpack.c.bf16 %v1827_v24, %v1826_v23  ;;  %v1828_v26 = vld [vmem:[#allocation4 + $0x160] sm:$0xff]  ;;  %v1829_v27 = vld [vmem:[#allocation4 + $0x168] sm:$0xff]  ;;  %v1959_v24 = vld [vmem:[#allocation6 + $0x490] sm:$0xff] }
 0xbcd   :  { %3723 = vmatprep.mubr.msk.f32.mxu0 %vm4845_vm0, %v4844_v0  ;;  %3758 = vmatprep.mubr.msk.f32.mxu1 %vm4845_vm0, %v4844_v0  ;;  %v1961_v23 = vld [vmem:[#allocation6 + $0x4a0] sm:$0xff]  ;;  %v1996_v13 = vld [vmem:[#allocation6 + $0x5b8] sm:$0xff] }
 0xbce   :  { %4349 = vmatpush3.bf16.msra.mxu0 %v4348_v41  ;;  %4373 = vmatpush3.bf16.msra.mxu1 %v4372_v10  ;;  %v3050_v41 = vld [vmem:[%s5496_s2 + $0x2] ss:$0 sm:$0xff] }
 0xbcf   :  { %4350 = vmatprep.subr.bf16.mxu0 %v4846_v1  ;;  %4374 = vmatprep.subr.bf16.mxu1 %v4846_v1  ;;  %v1953_v10 = vld [vmem:[#allocation6 + $0x460] sm:$0xff] }
 0xbd2   :  { %4352 = vmatpush3.bf16.msra.mxu0 %v4351_v42  ;;  %4376 = vmatpush3.bf16.msra.mxu1 %v4375_v12  ;;  %v4401_v12 = vpack.c.bf16 %v1953_v10, %v1949_v9  ;;  %v1994_v9 = vld [vmem:[#allocation6 + $0x5a8] sm:$0xff] }
 0xbd3   :  { %4353 = vmatprep.subr.bf16.mxu0 %v4846_v1  ;;  %4377 = vmatprep.subr.bf16.mxu1 %v4846_v1 }
 0xbd6   :  { %4355 = vmatpush3.bf16.msra.mxu0 %v4354_v45  ;;  %4379 = vmatpush3.bf16.msra.mxu1 %v4378_v15  ;;  %v1962_v15 = vld [vmem:[#allocation6 + $0x4a8] sm:$0xff] }
 0xbd7   :  { %4356 = vmatprep.subr.bf16.mxu0 %v4846_v1  ;;  %4380 = vmatprep.subr.bf16.mxu1 %v4846_v1  ;;  %v4403_v18 = vpack.c.bf16 %v1962_v15, %v1958_v14  ;;  %v1989_v14 = vld [vmem:[#allocation6 + $0x580] sm:$0xff] }
 0xbda   :  { %4358 = vmatpush3.bf16.msra.mxu0 %v4357_v52  ;;  %4382 = vmatpush3.bf16.msra.mxu1 %v4381_v19  ;;  %v1960_v19 = vld [vmem:[#allocation6 + $0x498] sm:$0xff] }
 0xbdb   :  { %4359 = vmatprep.subr.bf16.mxu0 %v4846_v1  ;;  %4383 = vmatprep.subr.bf16.mxu1 %v4846_v1 }
 0xbde   :  { %4361 = vmatpush3.bf16.msra.mxu0 %v4360_v56  ;;  %4385 = vmatpush3.bf16.msra.mxu1 %v4384_v22  ;;  %v1945_v56 = vld [vmem:[#allocation6 + $0x420] sm:$0xff]  ;;  %v4435_v22 = vpack.c.bf16 %v1964_v20, %v1960_v19  ;;  %v1995_v19 = vld [vmem:[#allocation6 + $0x5b0] sm:$0xff] }
 0xbdf   :  { %4362 = vmatprep.subr.bf16.mxu0 %v4846_v1  ;;  %4386 = vmatprep.subr.bf16.mxu1 %v4846_v1  ;;  %v4397_v60 = vpack.c.bf16 %v1945_v56, %v1941_v53  ;;  %v1982_v53 = vld [vmem:[#allocation6 + $0x548] sm:$0xff] }
 0xbe2   :  { %4364 = vmatpush3.bf16.msra.mxu0 %v4363_v61  ;;  %4388 = vmatpush3.bf16.msra.mxu1 %v4387_v25  ;;  %v1943_v61 = vld [vmem:[#allocation6 + $0x410] sm:$0xff] }
 0xbe3   :  { %4365 = vmatprep.subr.bf16.mxu0 %v4846_v1  ;;  %4389 = vmatprep.subr.bf16.mxu1 %v4846_v1  ;;  %v1963_v25 = vld [vmem:[#allocation6 + $0x4b0] sm:$0xff] }
 0xbe6   :  { %4367 = vmatpush3.bf16.msra.mxu0 %v4366_v2  ;;  %v4429_v2 = vpack.c.bf16 %v1947_v62, %v1943_v61  ;;  %v1988_v61 = vld [vmem:[#allocation6 + $0x578] sm:$0xff] }
 0xbe7   :  { %4368 = vmatprep.subr.bf16.mxu0 %v4846_v1 }
 0xbea   :  { %4370 = vmatpush3.bf16.msra.mxu0 %v4369_v5  ;;  %v1956_v5 = vld [vmem:[#allocation6 + $0x478] sm:$0xff] }
 0xbeb   :  { %v4431_v7 = vpack.c.bf16 %v1956_v5, %v1952_v4  ;;  %v1983_v4 = vld [vmem:[#allocation6 + $0x550] sm:$0xff] }
 0xc9f   :  { %v3267_v28 = vpop.f32.mrb[12].mxu0  ;;  %v3302_v29 = vpop.f32.mrb[12].mxu1 }
 0xca0   :  { %v3268_v31 = vpop.f32.mrb[13].mxu0  ;;  %v3303_v32 = vpop.f32.mrb[13].mxu1 }
 0xca1   :  { %v3269_v35 = vadd.f32 %v3268_v31, %v3267_v28  ;;  %v3304_v33 = vadd.f32 %v3303_v32, %v3302_v29  ;;  %v4390_v28 = vpack.c.bf16 %v1829_v27, %v1828_v26  ;;  %v4405_v26 = vpack.c.bf16 %v1961_v23, %v1957_v21  ;;  %v1998_v21 = vld [vmem:[#allocation6 + $0x5c8] sm:$0xff]  ;;  %v2000_v23 = vld [vmem:[#allocation6 + $0x5d8] sm:$0xff] }
 0xca2   :  { %v4437_v27 = vpack.c.bf16 %v1963_v25, %v1959_v24 }
 0xca3   :  { %v1617_v34 = vadd.f32 %v3269_v35, %v3044_v30  ;;  %4391 = vmatpush3.bf16.msra.mxu1 %v4390_v28  ;;  %v3047_v35 = vld [vmem:[%s5464_s15 + $0x1] ss:$0 sm:$0xff] }
 0xca4   :  { %4392 = vmatprep.subr.bf16.mxu1 %v4846_v1 }
 0xca5   :  { %v1687_v36 = vadd.f32 %v3304_v33, %v1617_v34  ;;  %v3048_v34 = vld [vmem:[%s5465_s16 + $0x1] ss:$0 sm:$0xff] }
 0xca7   :  { %v1690_v37 = vadd.f32 %v1687_v36, %v5260_v46  ;;  %4394 = vmatpush3.bf16.msra.mxu1 %v4393_v40 }
 0xca8   :  { %4428 = vmatprep.subr.bf16.mxu1 %v4427_v59  ;;  %v1986_v59 = vld [vmem:[#allocation6 + $0x568] sm:$0xff] }
 0xca9   :  { %1695 = vadd.xlane.f32.xlu0 %v1690_v37  ;;  %v4415_v62 = vpack.c.bf16 %v1986_v59, %v1982_v53  ;;  %v2226_v53 = vld [vmem:[#allocation7 + $0x598] sm:$0xff] }
 0xd36   :  { %v1696_v46 = vpop.xlane.xlu0 %1695 }
 0xd37   :  { %v1697_v47 = vmul.f32 0.0078125, %v1696_v46 }
 0xd39   :  { %v5284_v48 = vsub.f32 %v1690_v37, %v1697_v47 }
 0xd3b   :  { %v1699_v49 = vmul.f32 %v5284_v48, %v5284_v48 }
 0xd3d   :  { %1700 = vadd.xlane.f32.xlu1 %v1699_v49  ;;  %v1942_v49 = vld [vmem:[#allocation6 + $0x408] sm:$0xff] }
 0xd3e   :  { %v4395_v52 = vpack.c.bf16 %v1946_v50, %v1942_v49  ;;  %v1977_v49 = vld [vmem:[#allocation6 + $0x520] sm:$0xff] }
 0xd40   :  { %4396 = vmatprep.subr.bf16.mxu0 %v4395_v52  ;;  %v1975_v52 = vld [vmem:[#allocation6 + $0x510] sm:$0xff] }
 0xd41   :  { %v4445_v56 = vpack.c.bf16 %v1979_v16, %v1975_v52  ;;  %v2194_v52 = vld [vmem:[#allocation7 + $0x498] sm:$0xff]  ;;  %v2225_v16 = vld [vmem:[#allocation7 + $0x590] sm:$0xff] }
 0xdca   :  { %v1701_v29 = vpop.xlane.xlu1 %1700 }
 0xdcb   :  { %v1702_v30 = vmul.f32 0.0078125, %v1701_v29 }
 0xdcd   :  { %v1703_v31 = vadd.f32 1e-05, %v1702_v30 }
 0xdcf   :  { %4686 = vrsqrt.f32 %v1703_v31 }
 0xdd9   :  { %v4687_v32 = vpop.eup %4686 }
 0xdda   :  { %v1705_v33 = vmul.f32 %v4687_v32, %v5284_v48  ;;  %v1966_v32 = vld [vmem:[#allocation6 + $0x4c8] sm:$0xff] }
 0xddc   :  { %v1712_v36 = vmul.f32 %v3047_v35, %v1705_v33  ;;  %v1970_v35 = vld [vmem:[#allocation6 + $0x4e8] sm:$0xff]  ;;  %v1968_v33 = vld [vmem:[#allocation6 + $0x4d8] sm:$0xff] }
 0xdde   :  { %v1719_v37 = vadd.f32 %v3048_v34, %v1712_v36  ;;  %v4407_v34 = vpack.c.bf16 %v1970_v35, %v1966_v32  ;;  %v1972_v36 = vld [vmem:[#allocation6 + $0x4f8] sm:$0xff]  ;;  %v2003_v32 = vld [vmem:[#allocation6 + $0x5f0] sm:$0xff] }
 0xddf   :  { %v4439_v39 = vpack.c.bf16 %v1972_v36, %v1968_v33  ;;  %v2192_v36 = vld [vmem:[#allocation7 + $0x488] sm:$0xff] }
 0xde0   :  { %3724 = vmatmul.mubr.f32.vlgmr.msra.gmra.mrb[14].mxu0 %v1719_v37 }
 0xde1   :  { %2092 = vmatprep.mubr.f32.mxu0 %v4844_v0  ;;  %4398 = vmatpush1.bf16.msra.mxu0 %v4397_v60  ;;  %v1984_v60 = vld [vmem:[#allocation6 + $0x558] sm:$0xff] }
 0xde2   :  { %4400 = vmatprep.subr.bf16.mxu0 %v4399_v6  ;;  %v4447_v63 = vpack.c.bf16 %v1988_v61, %v1984_v60  ;;  %v1987_v6 = vld [vmem:[#allocation6 + $0x570] sm:$0xff] }
 0xde3   :  { %v4449_v10 = vpack.c.bf16 %v1987_v6, %v1983_v4  ;;  %v2177_v61 = vld [vmem:[#allocation7 + $0x410] sm:$0xff]  ;;  %v2195_v6 = vld [vmem:[#allocation7 + $0x4a0] sm:$0xff] }
 0xde4   :  { %v2209_v4 = vld [vmem:[#allocation7 + $0x510] sm:$0xff] }
 0xde5   :  { %4402 = vmatpush1.bf16.msra.mxu0 %v4401_v12  ;;  %v1992_v12 = vld [vmem:[#allocation6 + $0x598] sm:$0xff] }
 0xde6   :  { %4404 = vmatprep.subr.bf16.mxu0 %v4403_v18  ;;  %v4451_v15 = vpack.c.bf16 %v1996_v13, %v1992_v12  ;;  %v1991_v18 = vld [vmem:[#allocation6 + $0x590] sm:$0xff]  ;;  %v2179_v12 = vld [vmem:[#allocation7 + $0x420] sm:$0xff]  ;;  %v2180_v13 = vld [vmem:[#allocation7 + $0x428] sm:$0xff] }
 0xde7   :  { %v4453_v24 = vpack.c.bf16 %v1995_v19, %v1991_v18  ;;  %v2212_v18 = vld [vmem:[#allocation7 + $0x528] sm:$0xff]  ;;  %v2197_v19 = vld [vmem:[#allocation7 + $0x4b0] sm:$0xff] }
 0xde9   :  { %4406 = vmatpush1.bf16.msra.mxu0 %v4405_v26  ;;  %v2004_v26 = vld [vmem:[#allocation6 + $0x5f8] sm:$0xff] }
 0xdea   :  { %4408 = vmatprep.subr.bf16.mxu0 %v4407_v34  ;;  %v2191_v34 = vld [vmem:[#allocation7 + $0x480] sm:$0xff] }
 0xeb3   :  { %v1811_v8 = vpop.f32.mrb[14].mxu0 }
 0xeb4   :  { %v1812_v42 = vadd.f32 %v3050_v41, %v1811_v8  ;;  %v3725_v43 = vpop.f32.mrb[15].mxu0  ;;  %v1967_v41 = vld [vmem:[#allocation6 + $0x4d0] sm:$0xff] }
 0xeb5   :  { %v1971_v8 = vld [vmem:[#allocation6 + $0x4f0] sm:$0xff]  ;;  %v1974_v43 = vld [vmem:[#allocation6 + $0x508] sm:$0xff] }
 0xeb6   :  { %3759 = vmatmul.mubr.f32.vlgmr.msra.gmra.mrb[14].mxu1 %v1812_v42  ;;  %v4441_v42 = vpack.c.bf16 %v1971_v8, %v1967_v41 }
 0xeb7   :  { %2163 = vmatprep.mubr.f32.mxu1 %v4844_v0  ;;  %4430 = vmatpush1.bf16.msra.mxu1 %v4429_v2  ;;  %v1981_v2 = vld [vmem:[#allocation6 + $0x540] sm:$0xff] }
 0xeb8   :  { %4432 = vmatprep.subr.bf16.mxu1 %v4431_v7  ;;  %v4417_v5 = vpack.c.bf16 %v1985_v3, %v1981_v2  ;;  %v1990_v7 = vld [vmem:[#allocation6 + $0x588] sm:$0xff]  ;;  %v4495_v3 = vpack.c.bf16 %v2226_v53, %v2225_v16  ;;  %v2217_v16 = vld [vmem:[#allocation7 + $0x550] sm:$0xff]  ;;  %v2218_v53 = vld [vmem:[#allocation7 + $0x558] sm:$0xff] }
 0xeb9   :  { %v4419_v11 = vpack.c.bf16 %v1994_v9, %v1990_v7  ;;  %v2196_v7 = vld [vmem:[#allocation7 + $0x4a8] sm:$0xff] }
 0xeba   :  { %v2228_v9 = vld [vmem:[#allocation7 + $0x5a8] sm:$0xff] }
 0xebb   :  { %4434 = vmatpush1.bf16.msra.mxu1 %v4433_v17  ;;  %v1993_v17 = vld [vmem:[#allocation6 + $0x5a0] sm:$0xff] }
 0xebc   :  { %4436 = vmatprep.subr.bf16.mxu1 %v4435_v22  ;;  %v4421_v20 = vpack.c.bf16 %v1993_v17, %v1989_v14  ;;  %v2002_v22 = vld [vmem:[#allocation6 + $0x5e8] sm:$0xff]  ;;  %v4467_v14 = vpack.c.bf16 %v2196_v7, %v2195_v6  ;;  %v2211_v17 = vld [vmem:[#allocation7 + $0x520] sm:$0xff] }
 0xebd   :  { %v4423_v25 = vpack.c.bf16 %v2002_v22, %v1998_v21  ;;  %v2229_v21 = vld [vmem:[#allocation7 + $0x5b0] sm:$0xff]  ;;  %v2230_v22 = vld [vmem:[#allocation7 + $0x5b8] sm:$0xff]  ;;  %v2188_v6 = vld [vmem:[#allocation7 + $0x468] sm:$0xff] }
 0xebe   :  { %v2219_v7 = vld [vmem:[#allocation7 + $0x560] sm:$0xff] }
 0xebf   :  { %4438 = vmatpush1.bf16.msra.mxu1 %v4437_v27  ;;  %v1997_v27 = vld [vmem:[#allocation6 + $0x5c0] sm:$0xff] }
 0xec0   :  { %4440 = vmatprep.subr.bf16.mxu1 %v4439_v39  ;;  %v2224_v39 = vld [vmem:[#allocation7 + $0x588] sm:$0xff] }
 0xec3   :  { %4442 = vmatpush1.bf16.msra.mxu1 %v4441_v42 }
 0xf89   :  { %v1906_v45 = vpop.f32.mrb[14].mxu1 }
 0xf8a   :  { %v1907_v46 = vadd.f32 %v3052_v44, %v1906_v45  ;;  %v3760_v47 = vpop.f32.mrb[15].mxu1  ;;  %v1978_v44 = vld [vmem:[#allocation6 + $0x528] sm:$0xff]  ;;  %v1976_v45 = vld [vmem:[#allocation6 + $0x518] sm:$0xff] }
 0xf8b   :  { %v1980_v47 = vld [vmem:[#allocation6 + $0x538] sm:$0xff] }
 0xf8c   :  { %v1910_v48 = vadd.f32 %v1907_v46, %v1719_v37  ;;  %v1965_v37 = vld [vmem:[#allocation6 + $0x4c0] sm:$0xff]  ;;  %v4411_v46 = vpack.c.bf16 %v1978_v44, %v1974_v43  ;;  %v4443_v50 = vpack.c.bf16 %v1980_v47, %v1976_v45  ;;  %v2176_v47 = vld [vmem:[#allocation7 + $0x408] sm:$0xff] }
 0xf8d   :  { %v4409_v40 = vpack.c.bf16 %v1969_v38, %v1965_v37  ;;  %v2223_v37 = vld [vmem:[#allocation7 + $0x580] sm:$0xff]  ;;  %v4459_v38 = vpack.c.bf16 %v2192_v36, %v2191_v34  ;;  %v2232_v34 = vld [vmem:[#allocation7 + $0x5c8] sm:$0xff] }
 0xf8e   :  { %1915 = vadd.xlane.f32.xlu0 %v1910_v48  ;;  %4444 = vmatprep.subr.bf16.mxu1 %v4443_v50  ;;  %v3055_v43 = vld [vmem:[%s5462_s13 + $0x2] ss:$0 sm:$0xff]  ;;  %v2208_v50 = vld [vmem:[#allocation7 + $0x508] sm:$0xff] }
 0xf8f   :  { %4410 = vmatpush1.bf16.msra.mxu0 %v4409_v40  ;;  %4446 = vmatpush1.bf16.msra.mxu1 %v4445_v56  ;;  %v4491_v40 = vpack.c.bf16 %v2224_v39, %v2223_v37  ;;  %v3056_v45 = vld [vmem:[%s5463_s14 + $0x2] ss:$0 sm:$0xff]  ;;  %v2184_v39 = vld [vmem:[#allocation7 + $0x448] sm:$0xff] }
 0xf90   :  { %4412 = vmatprep.subr.bf16.mxu0 %v4411_v46  ;;  %4448 = vmatprep.subr.bf16.mxu1 %v4447_v63  ;;  %v2175_v46 = vld [vmem:[#allocation7 + $0x400] sm:$0xff] }
 0xf91   :  { %v4461_v59 = vpack.c.bf16 %v2176_v47, %v2175_v46  ;;  %v2234_v46 = vld [vmem:[#allocation7 + $0x5d8] sm:$0xff] }
 0xf93   :  { %4450 = vmatpush1.bf16.msra.mxu1 %v4449_v10 }
 0xf94   :  { %4452 = vmatprep.subr.bf16.mxu1 %v4451_v15 }
 0xf97   :  { %4454 = vmatpush1.bf16.msra.mxu1 %v4453_v24  ;;  %v4501_v24 = vpack.c.bf16 %v2212_v18, %v2211_v17  ;;  %v2189_v17 = vld [vmem:[#allocation7 + $0x470] sm:$0xff]  ;;  %v2190_v18 = vld [vmem:[#allocation7 + $0x478] sm:$0xff] }
0x101b   :  { %v1916_v28 = vpop.xlane.xlu0 %1915 }
0x101c   :  { %v1917_v29 = vmul.f32 0.0078125, %v1916_v28  ;;  %v2001_v28 = vld [vmem:[#allocation6 + $0x5e0] sm:$0xff] }
0x101d   :  { %v4425_v35 = vpack.c.bf16 %v2001_v28, %v1997_v27  ;;  %v4503_v28 = vpack.c.bf16 %v2230_v22, %v2229_v21  ;;  %v2221_v21 = vld [vmem:[#allocation7 + $0x570] sm:$0xff]  ;;  %v2222_v22 = vld [vmem:[#allocation7 + $0x578] sm:$0xff] }
0x101e   :  { %v5314_v30 = vsub.f32 %v1910_v48, %v1917_v29  ;;  %v1973_v48 = vld [vmem:[#allocation6 + $0x500] sm:$0xff]  ;;  %v4455_v29 = vpack.c.bf16 %v2004_v26, %v2000_v23  ;;  %v4469_v23 = vpack.c.bf16 %v2180_v13, %v2179_v12  ;;  %v2182_v26 = vld [vmem:[#allocation7 + $0x438] sm:$0xff]  ;;  %v2237_v13 = vld [vmem:[#allocation7 + $0x5f0] sm:$0xff] }
0x101f   :  { %v4413_v51 = vpack.c.bf16 %v1977_v49, %v1973_v48  ;;  %v2207_v49 = vld [vmem:[#allocation7 + $0x500] sm:$0xff]  ;;  %v2206_v12 = vld [vmem:[#allocation7 + $0x4f8] sm:$0xff] }
0x1020   :  { %v1919_v31 = vmul.f32 %v5314_v30, %v5314_v30  ;;  %4456 = vmatprep.subr.bf16.mxu1 %v4455_v29  ;;  %v4493_v60 = vpack.c.bf16 %v2208_v50, %v2207_v49  ;;  %v2213_v29 = vld [vmem:[#allocation7 + $0x530] sm:$0xff]  ;;  %v2186_v50 = vld [vmem:[#allocation7 + $0x458] sm:$0xff] }
0x1021   :  { %4414 = vmatpush1.bf16.msra.mxu0 %v4413_v51  ;;  %v2193_v51 = vld [vmem:[#allocation7 + $0x490] sm:$0xff] }
0x1022   :  { %1920 = vadd.xlane.f32.xlu1 %v1919_v31  ;;  %4416 = vmatprep.subr.bf16.mxu0 %v4415_v62  ;;  %v1999_v31 = vld [vmem:[#allocation6 + $0x5d0] sm:$0xff]  ;;  %v2178_v62 = vld [vmem:[#allocation7 + $0x418] sm:$0xff]  ;;  %v4463_v2 = vpack.c.bf16 %v2194_v52, %v2193_v51 }
0x1023   :  { %v4457_v33 = vpack.c.bf16 %v2003_v32, %v1999_v31  ;;  %v4465_v10 = vpack.c.bf16 %v2178_v62, %v2177_v61  ;;  %v2214_v31 = vld [vmem:[#allocation7 + $0x538] sm:$0xff]  ;;  %v2199_v32 = vld [vmem:[#allocation7 + $0x4c0] sm:$0xff]  ;;  %v2185_v49 = vld [vmem:[#allocation7 + $0x450] sm:$0xff] }
0x1024   :  { %v4505_v37 = vpack.c.bf16 %v2214_v31, %v2213_v29  ;;  %v2236_v61 = vld [vmem:[#allocation7 + $0x5e8] sm:$0xff]  ;;  %v4481_v62 = vpack.c.bf16 %v2186_v50, %v2185_v49 }
0x1025   :  { %4418 = vmatpush1.bf16.msra.mxu0 %v4417_v5  ;;  %4458 = vmatpush1.bf16.msra.mxu1 %v4457_v33  ;;  %v2210_v5 = vld [vmem:[#allocation7 + $0x518] sm:$0xff]  ;;  %v2231_v33 = vld [vmem:[#allocation7 + $0x5c0] sm:$0xff] }
0x1026   :  { %4420 = vmatprep.subr.bf16.mxu0 %v4419_v11  ;;  %4492 = vmatprep.subr.bf16.mxu1 %v4491_v40  ;;  %v4497_v11 = vpack.c.bf16 %v2210_v5, %v2209_v4  ;;  %v2187_v5 = vld [vmem:[#allocation7 + $0x460] sm:$0xff] }
0x1029   :  { %4422 = vmatpush1.bf16.msra.mxu0 %v4421_v20  ;;  %v2198_v20 = vld [vmem:[#allocation7 + $0x4b8] sm:$0xff] }
0x102a   :  { %4424 = vmatprep.subr.bf16.mxu0 %v4423_v25  ;;  %v2181_v25 = vld [vmem:[#allocation7 + $0x430] sm:$0xff]  ;;  %v4471_v27 = vpack.c.bf16 %v2198_v20, %v2197_v19  ;;  %v4489_v20 = vpack.c.bf16 %v2190_v18, %v2189_v17  ;;  %v2452_v18 = vld [vmem:[#allocation9 + $0x40] sm:$0xff] }
0x102b   :  { %v4473_v36 = vpack.c.bf16 %v2182_v26, %v2181_v25 }
0x102d   :  { %4426 = vmatpush1.bf16.msra.mxu0 %v4425_v35  ;;  %v2200_v35 = vld [vmem:[#allocation7 + $0x4c8] sm:$0xff] }
0x102e   :  { %4460 = vmatprep.subr.bf16.mxu0 %v4459_v38  ;;  %v2183_v38 = vld [vmem:[#allocation7 + $0x440] sm:$0xff]  ;;  %v4475_v40 = vpack.c.bf16 %v2200_v35, %v2199_v32 }
0x102f   :  { %v4477_v47 = vpack.c.bf16 %v2184_v39, %v2183_v38 }
0x10af   :  { %v1921_v41 = vpop.xlane.xlu1 %1920 }
0x10b0   :  { %v1922_v8 = vmul.f32 0.0078125, %v1921_v41  ;;  %v4507_v41 = vpack.c.bf16 %v2232_v34, %v2231_v33 }
0x10b2   :  { %v1923_v42 = vadd.f32 1e-05, %v1922_v8  ;;  %v2215_v8 = vld [vmem:[#allocation7 + $0x540] sm:$0xff] }
0x10b4   :  { %4688 = vrsqrt.f32 %v1923_v42  ;;  %v2216_v42 = vld [vmem:[#allocation7 + $0x548] sm:$0xff] }
0x10be   :  { %v4689_v44 = vpop.eup %4688 }
0x10bf   :  { %v1925_v48 = vmul.f32 %v4689_v44, %v5314_v30  ;;  %v2227_v30 = vld [vmem:[#allocation7 + $0x5a0] sm:$0xff]  ;;  %v2202_v44 = vld [vmem:[#allocation7 + $0x4d8] sm:$0xff] }
0x10c0   :  { %v4499_v15 = vpack.c.bf16 %v2228_v9, %v2227_v30  ;;  %v4485_v30 = vpack.c.bf16 %v2188_v6, %v2187_v5  ;;  %v2220_v9 = vld [vmem:[#allocation7 + $0x568] sm:$0xff]  ;;  %v2447_v5 = vld [vmem:[#allocation9 + $0x18] sm:$0xff] }
0x10c1   :  { %v1932_v56 = vmul.f32 %v3055_v43, %v1925_v48  ;;  %v2201_v43 = vld [vmem:[#allocation7 + $0x4d0] sm:$0xff]  ;;  %v4509_v48 = vpack.c.bf16 %v2216_v42, %v2215_v8 }
0x10c2   :  { %v4479_v51 = vpack.c.bf16 %v2202_v44, %v2201_v43 }
0x10c3   :  { %v5325_v63 = vadd.f32 %v3056_v45, %v1932_v56  ;;  %v2233_v45 = vld [vmem:[#allocation7 + $0x5d0] sm:$0xff]  ;;  %v2203_v56 = vld [vmem:[#allocation7 + $0x4e0] sm:$0xff] }
0x10c4   :  { %v4511_v52 = vpack.c.bf16 %v2234_v46, %v2233_v45 }
0x10c5   :  { %2093 = vmatmul.mubr.f32.vlgmr.msra.gmra.mrb[16].mxu0 %v5325_v63  ;;  %2164 = vmatmul.mubr.f32.vlgmr.msra.gmra.mrb[16].mxu1 %v5325_v63 }
0x10c6   :  { %4462 = vmatpush3.bf16.msra.mxu0 %v4461_v59  ;;  %4494 = vmatpush3.bf16.msra.mxu1 %v4493_v60  ;;  %v2204_v59 = vld [vmem:[#allocation7 + $0x4e8] sm:$0xff]  ;;  %v2235_v60 = vld [vmem:[#allocation7 + $0x5e0] sm:$0xff] }
0x10c7   :  { %4464 = vmatprep.subr.bf16.mxu0 %v4463_v2  ;;  %4496 = vmatprep.subr.bf16.mxu1 %v4495_v3  ;;  %v4513_v2 = vpack.c.bf16 %v2218_v53, %v2217_v16  ;;  %v4483_v3 = vpack.c.bf16 %v2204_v59, %v2203_v56  ;;  %v4515_v4 = vpack.c.bf16 %v2236_v61, %v2235_v60  ;;  %v3062_v56 = vld [vmem:[%s5464_s15 + $0x2] ss:$0 sm:$0xff] }
0x10ca   :  { %4466 = vmatpush3.bf16.msra.mxu0 %v4465_v10  ;;  %4498 = vmatpush3.bf16.msra.mxu1 %v4497_v11  ;;  %v4517_v10 = vpack.c.bf16 %v2220_v9, %v2219_v7  ;;  %v2205_v11 = vld [vmem:[#allocation7 + $0x4f0] sm:$0xff]  ;;  %v2448_v7 = vld [vmem:[#allocation9 + $0x20] sm:$0xff] }
0x10cb   :  { %4468 = vmatprep.subr.bf16.mxu0 %v4467_v14  ;;  %4500 = vmatprep.subr.bf16.mxu1 %v4499_v15  ;;  %v4487_v14 = vpack.c.bf16 %v2206_v12, %v2205_v11  ;;  %v2238_v15 = vld [vmem:[#allocation7 + $0x5f8] sm:$0xff] }
0x10cc   :  { %v4519_v19 = vpack.c.bf16 %v2238_v15, %v2237_v13  ;;  %v2451_v15 = vld [vmem:[#allocation9 + $0x38] sm:$0xff] }
0x10ce   :  { %4470 = vmatpush3.bf16.msra.mxu0 %v4469_v23  ;;  %4502 = vmatpush3.bf16.msra.mxu1 %v4501_v24  ;;  %v4521_v23 = vpack.c.bf16 %v2222_v22, %v2221_v21  ;;  %v3057_v24 = vld [vmem:[%s5459_s10 + $0x8] sm:$0xf]  ;;  %v2454_v21 = vld [vmem:[#allocation9 + $0x50] sm:$0xff]  ;;  %v2455_v22 = vld [vmem:[#allocation9 + $0x58] sm:$0xff] }
0x10cf   :  { %4472 = vmatprep.subr.bf16.mxu0 %v4471_v27  ;;  %4504 = vmatprep.subr.bf16.mxu1 %v4503_v28  ;;  %v2011_v25 = vrot.slane %v3057_v24, %v5193_v54  ;;  %v2019_v26 = vrot.slane %v3057_v24, %v5195_v55  ;;  %v2015_v27 = vrot.slane %v3057_v24, %v5200_v57  ;;  %v3059_v57 = vld [vmem:[%s5461_s12 + $0x2] ss:$0 sm:$0xff] }
0x10d0   :  { %v2023_v28 = vrot.slane %v3057_v24, %v5202_v58  ;;  %v2456_v24 = vld [vmem:[#allocation9 + $0x60] sm:$0xff] }
0x10d2   :  { %4474 = vmatpush3.bf16.msra.mxu0 %v4473_v36  ;;  %4506 = vmatpush3.bf16.msra.mxu1 %v4505_v37 }
0x10d3   :  { %4476 = vmatprep.subr.bf16.mxu0 %v4475_v40  ;;  %4508 = vmatprep.subr.bf16.mxu1 %v4507_v41 }
0x10d6   :  { %4478 = vmatpush3.bf16.msra.mxu0 %v4477_v47  ;;  %4510 = vmatpush3.bf16.msra.mxu1 %v4509_v48 }
0x10d7   :  { %4480 = vmatprep.subr.bf16.mxu0 %v4479_v51  ;;  %4512 = vmatprep.subr.bf16.mxu1 %v4511_v52 }
0x10da   :  { %4482 = vmatpush3.bf16.msra.mxu0 %v4481_v62  ;;  %4514 = vmatpush3.bf16.msra.mxu1 %v4513_v2  ;;  %v2444_v62 = vld [vmem:[#allocation9] sm:$0xff]  ;;  %v2445_v2 = vld [vmem:[#allocation9 + $0x8] sm:$0xff] }
0x10db   :  { %4484 = vmatprep.subr.bf16.mxu0 %v4483_v3  ;;  %4516 = vmatprep.subr.bf16.mxu1 %v4515_v4  ;;  %v2446_v3 = vld [vmem:[#allocation9 + $0x10] sm:$0xff]  ;;  %v4524_v4 = vpack.c.bf16 %v2445_v2, %v2444_v62 }
0x10dc   :  { %v4527_v6 = vpack.c.bf16 %v2447_v5, %v2446_v3  ;;  %v2634_v3 = vld [vmem:[#allocation9 + $0x90] sm:$0xff] }
0x10de   :  { %4486 = vmatpush3.bf16.msra.mxu0 %v4485_v30  ;;  %4518 = vmatpush3.bf16.msra.mxu1 %v4517_v10  ;;  %v2449_v30 = vld [vmem:[#allocation9 + $0x28] sm:$0xff] }
0x10df   :  { %4488 = vmatprep.subr.bf16.mxu0 %v4487_v14  ;;  %4520 = vmatprep.subr.bf16.mxu1 %v4519_v19  ;;  %v4530_v9 = vpack.c.bf16 %v2449_v30, %v2448_v7  ;;  %v2450_v14 = vld [vmem:[#allocation9 + $0x30] sm:$0xff]  ;;  %v2453_v19 = vld [vmem:[#allocation9 + $0x48] sm:$0xff] }
0x10e0   :  { %v4533_v17 = vpack.c.bf16 %v2451_v15, %v2450_v14  ;;  %v2637_v7 = vld [vmem:[#allocation9 + $0xa8] sm:$0xff]  ;;  %v2642_v15 = vld [vmem:[#allocation9 + $0xd0] sm:$0xff] }
0x10e2   :  { %4490 = vmatpush3.bf16.msra.mxu0 %v4489_v20  ;;  %4522 = vmatpush3.bf16.msra.mxu1 %v4521_v23  ;;  %v4536_v20 = vpack.c.bf16 %v2453_v19, %v2452_v18  ;;  %v4539_v23 = vpack.c.bf16 %v2455_v22, %v2454_v21  ;;  %v2644_v19 = vld [vmem:[#allocation9 + $0xe0] sm:$0xff]  ;;  %v2646_v22 = vld [vmem:[#allocation9 + $0xf0] sm:$0xff] }
0x10e3   :  { %4523 = vmatprep.subr.bf16.mxu0 %v4846_v1  ;;  %4547 = vmatprep.subr.bf16.mxu1 %v4846_v1 }
0x1198   :  { %v2094_v29 = vpop.f32.mrb[16].mxu0  ;;  %v2165_v31 = vpop.f32.mrb[16].mxu1 }
0x1199   :  { %v2095_v32 = vadd.f32 %v2094_v29, %v2011_v25  ;;  %v2166_v35 = vadd.f32 %v2165_v31, %v2019_v26  ;;  %v2096_v33 = vpop.f32.mrb[17].mxu0  ;;  %v2167_v34 = vpop.f32.mrb[17].mxu1  ;;  %v2457_v25 = vld [vmem:[#allocation9 + $0x68] sm:$0xff]  ;;  %v2537_v31 = vld [vmem:[#allocation10] sm:$0xff] }
0x119a   :  { %v2097_v36 = vadd.f32 %v2096_v33, %v2015_v27  ;;  %v2168_v37 = vadd.f32 %v2167_v34, %v2023_v28  ;;  %v4542_v26 = vpack.c.bf16 %v2457_v25, %v2456_v24  ;;  %v2458_v27 = vld [vmem:[#allocation9 + $0x70] sm:$0xff]  ;;  %v2459_v28 = vld [vmem:[#allocation9 + $0x78] sm:$0xff]  ;;  %v2824_v25 = vld [vmem:[#allocation9 + $0x100] sm:$0xff] }
0x119b   :  { %v2170_v40 = vmax.f32 %v2095_v32, 0.0  ;;  %v2172_v41 = vmax.f32 %v2166_v35, 0.0  ;;  %v4545_v29 = vpack.c.bf16 %v2459_v28, %v2458_v27  ;;  %v2538_v32 = vld [vmem:[#allocation10 + $0x8] sm:$0xff]  ;;  %v2539_v35 = vld [vmem:[#allocation10 + $0x10] sm:$0xff]  ;;  %v2540_v34 = vld [vmem:[#allocation10 + $0x18] sm:$0xff] }
0x119c   :  { %v2171_v38 = vmax.f32 %v2097_v36, 0.0  ;;  %v2173_v39 = vmax.f32 %v2168_v37, 0.0  ;;  %v4548_v33 = vpack.c.bf16 %v2538_v32, %v2537_v31  ;;  %v4551_v36 = vpack.c.bf16 %v2540_v34, %v2539_v35  ;;  %v2541_v37 = vld [vmem:[#allocation10 + $0x20] sm:$0xff]  ;;  %v2826_v28 = vld [vmem:[#allocation9 + $0x110] sm:$0xff]  ;;  %v2829_v35 = vld [vmem:[#allocation9 + $0x128] sm:$0xff] }
0x119d   :  { %v2828_v32 = vld [vmem:[#allocation9 + $0x120] sm:$0xff]  ;;  %v2830_v34 = vld [vmem:[#allocation9 + $0x130] sm:$0xff] }
0x119e   :  { %2311 = vmatprep.mubr.f32.mxu0 %v2171_v38  ;;  %2381 = vmatprep.mubr.f32.mxu1 %v2173_v39  ;;  %v2542_v38 = vld [vmem:[#allocation10 + $0x28] sm:$0xff] }
0x119f   :  { %2312 = vmatmul.mubr.f32.vlgmr.msra.gmra.mrb[18].mxu0 %v2170_v40  ;;  %2382 = vmatmul.mubr.f32.vlgmr.msra.gmra.mrb[18].mxu1 %v2172_v41  ;;  %v4554_v39 = vpack.c.bf16 %v2542_v38, %v2541_v37  ;;  %v2543_v40 = vld [vmem:[#allocation10 + $0x30] sm:$0xff]  ;;  %v2544_v41 = vld [vmem:[#allocation10 + $0x38] sm:$0xff]  ;;  %v2832_v38 = vld [vmem:[#allocation9 + $0x140] sm:$0xff] }
0x11a0   :  { %3793 = vmatprep.mubr.msk.f32.mxu0 %vm4845_vm0, %v4844_v0  ;;  %3828 = vmatprep.mubr.msk.f32.mxu1 %vm4845_vm0, %v4844_v0 }
0x11a1   :  { %4525 = vmatpush3.bf16.msra.mxu0 %v4524_v4  ;;  %4549 = vmatpush3.bf16.msra.mxu1 %v4548_v33  ;;  %v2635_v4 = vld [vmem:[#allocation9 + $0x98] sm:$0xff]  ;;  %v4626_v33 = vpack.c.bf16 %v2829_v35, %v2828_v32  ;;  %v2927_v32 = vld [vmem:[#allocation10 + $0x140] sm:$0xff]  ;;  %v2928_v35 = vld [vmem:[#allocation10 + $0x148] sm:$0xff] }
0x11a2   :  { %4526 = vmatprep.subr.bf16.mxu0 %v4846_v1  ;;  %4550 = vmatprep.subr.bf16.mxu1 %v4846_v1  ;;  %v4575_v5 = vpack.c.bf16 %v2635_v4, %v2634_v3  ;;  %v2736_v3 = vld [vmem:[#allocation10 + $0xc8] sm:$0xff] }
0x11a5   :  { %4528 = vmatpush3.bf16.msra.mxu0 %v4527_v6  ;;  %4552 = vmatpush3.bf16.msra.mxu1 %v4551_v36  ;;  %v2636_v6 = vld [vmem:[#allocation9 + $0xa0] sm:$0xff]  ;;  %v2831_v36 = vld [vmem:[#allocation9 + $0x138] sm:$0xff] }
0x11a6   :  { %4529 = vmatprep.subr.bf16.mxu0 %v4846_v1  ;;  %4553 = vmatprep.subr.bf16.mxu1 %v4846_v1  ;;  %v4578_v30 = vpack.c.bf16 %v2637_v7, %v2636_v6  ;;  %v4629_v37 = vpack.c.bf16 %v2831_v36, %v2830_v34  ;;  %v2738_v6 = vld [vmem:[#allocation10 + $0xd8] sm:$0xff] }
0x11a7   :  { %v2930_v34 = vld [vmem:[#allocation10 + $0x158] sm:$0xff] }
0x11a9   :  { %4531 = vmatpush3.bf16.msra.mxu0 %v4530_v9  ;;  %4555 = vmatpush3.bf16.msra.mxu1 %v4554_v39  ;;  %v2638_v9 = vld [vmem:[#allocation9 + $0xb0] sm:$0xff]  ;;  %v2833_v39 = vld [vmem:[#allocation9 + $0x148] sm:$0xff] }
0x11aa   :  { %4532 = vmatprep.subr.bf16.mxu0 %v4846_v1  ;;  %4556 = vmatprep.subr.bf16.mxu1 %v4846_v1 }
0x11ad   :  { %4534 = vmatpush3.bf16.msra.mxu0 %v4533_v17  ;;  %v2643_v17 = vld [vmem:[#allocation9 + $0xd8] sm:$0xff] }
0x11ae   :  { %4535 = vmatprep.subr.bf16.mxu0 %v4846_v1  ;;  %v4587_v18 = vpack.c.bf16 %v2643_v17, %v2642_v15  ;;  %v2920_v15 = vld [vmem:[#allocation10 + $0x108] sm:$0xff]  ;;  %v3069_v17 = vld [vmem:[%s5469_s20 + $0x1] ss:$0 sm:$0xff] }
0x11b1   :  { %4537 = vmatpush3.bf16.msra.mxu0 %v4536_v20  ;;  %v2645_v20 = vld [vmem:[#allocation9 + $0xe8] sm:$0xff] }
0x11b2   :  { %4538 = vmatprep.subr.bf16.mxu0 %v4846_v1  ;;  %v4590_v21 = vpack.c.bf16 %v2645_v20, %v2644_v19 }
0x11b5   :  { %4540 = vmatpush3.bf16.msra.mxu0 %v4539_v23  ;;  %v2647_v23 = vld [vmem:[#allocation9 + $0xf8] sm:$0xff] }
0x11b6   :  { %4541 = vmatprep.subr.bf16.mxu0 %v4846_v1  ;;  %v4593_v24 = vpack.c.bf16 %v2647_v23, %v2646_v22  ;;  %v2921_v22 = vld [vmem:[#allocation10 + $0x110] sm:$0xff]  ;;  %v2922_v23 = vld [vmem:[#allocation10 + $0x118] sm:$0xff] }
0x11b9   :  { %4543 = vmatpush3.bf16.msra.mxu0 %v4542_v26  ;;  %v2825_v26 = vld [vmem:[#allocation9 + $0x108] sm:$0xff] }
0x11ba   :  { %4544 = vmatprep.subr.bf16.mxu0 %v4846_v1  ;;  %v4620_v27 = vpack.c.bf16 %v2825_v26, %v2824_v25  ;;  %v2923_v25 = vld [vmem:[#allocation10 + $0x120] sm:$0xff]  ;;  %v2924_v26 = vld [vmem:[#allocation10 + $0x128] sm:$0xff] }
0x11bd   :  { %4546 = vmatpush3.bf16.msra.mxu0 %v4545_v29  ;;  %v2827_v29 = vld [vmem:[#allocation9 + $0x118] sm:$0xff] }
0x11be   :  { %4571 = vmatprep.subr.bf16.mxu0 %v4846_v1  ;;  %v4623_v31 = vpack.c.bf16 %v2827_v29, %v2826_v28  ;;  %v2925_v28 = vld [vmem:[#allocation10 + $0x130] sm:$0xff]  ;;  %v2926_v29 = vld [vmem:[#allocation10 + $0x138] sm:$0xff] }
0x1272   :  { %v3371_v54 = vpop.f32.mrb[18].mxu0  ;;  %v3406_v55 = vpop.f32.mrb[18].mxu1 }
0x1273   :  { %v3372_v58 = vpop.f32.mrb[19].mxu0  ;;  %v3407_v8 = vpop.f32.mrb[19].mxu1 }
0x1274   :  { %v3373_v42 = vadd.f32 %v3372_v58, %v3371_v54  ;;  %v3408_v43 = vadd.f32 %v3407_v8, %v3406_v55  ;;  %v4557_v54 = vpack.c.bf16 %v2544_v41, %v2543_v40  ;;  %v2545_v55 = vld [vmem:[#allocation10 + $0x40] sm:$0xff]  ;;  %v2547_v8 = vld [vmem:[#allocation10 + $0x50] sm:$0xff]  ;;  %v4632_v40 = vpack.c.bf16 %v2833_v39, %v2832_v38  ;;  %v2932_v38 = vld [vmem:[#allocation10 + $0x168] sm:$0xff] }
0x1275   :  { %v2834_v41 = vld [vmem:[#allocation9 + $0x150] sm:$0xff] }
0x1276   :  { %v2314_v44 = vadd.f32 %v3373_v42, %v3059_v57  ;;  %v2546_v57 = vld [vmem:[#allocation10 + $0x48] sm:$0xff]  ;;  %4558 = vmatpush3.bf16.msra.mxu1 %v4557_v54  ;;  %v2548_v42 = vld [vmem:[#allocation10 + $0x58] sm:$0xff] }
0x1277   :  { %v4560_v58 = vpack.c.bf16 %v2546_v57, %v2545_v55  ;;  %4559 = vmatprep.subr.bf16.mxu1 %v4846_v1  ;;  %v2835_v54 = vld [vmem:[#allocation9 + $0x158] sm:$0xff]  ;;  %v2836_v57 = vld [vmem:[#allocation9 + $0x160] sm:$0xff] }
0x1278   :  { %v2384_v45 = vadd.f32 %v3408_v43, %v2314_v44  ;;  %v4563_v43 = vpack.c.bf16 %v2548_v42, %v2547_v8  ;;  %v2549_v44 = vld [vmem:[#allocation10 + $0x60] sm:$0xff]  ;;  %v4635_v55 = vpack.c.bf16 %v2835_v54, %v2834_v41  ;;  %v2838_v42 = vld [vmem:[#allocation9 + $0x170] sm:$0xff]  ;;  %v2934_v41 = vld [vmem:[#allocation10 + $0x178] sm:$0xff] }
0x127a   :  { %v2387_v46 = vadd.f32 %v2384_v45, %v5325_v63  ;;  %v3063_v63 = vld [vmem:[%s5465_s16 + $0x2] ss:$0 sm:$0xff]  ;;  %4561 = vmatpush3.bf16.msra.mxu1 %v4560_v58  ;;  %v2550_v45 = vld [vmem:[#allocation10 + $0x68] sm:$0xff] }
0x127b   :  { %4562 = vmatprep.subr.bf16.mxu1 %v4846_v1  ;;  %v2837_v58 = vld [vmem:[#allocation9 + $0x168] sm:$0xff] }
0x127c   :  { %2392 = vadd.xlane.f32.xlu0 %v2387_v46  ;;  %v4638_v8 = vpack.c.bf16 %v2837_v58, %v2836_v57 }
0x127e   :  { %4564 = vmatpush3.bf16.msra.mxu1 %v4563_v43  ;;  %v2839_v43 = vld [vmem:[#allocation9 + $0x178] sm:$0xff] }
0x127f   :  { %4565 = vmatprep.subr.bf16.mxu1 %v4846_v1 }
0x1309   :  { %v2393_v47 = vpop.xlane.xlu0 %2392 }
0x130a   :  { %v2394_v48 = vmul.f32 0.0078125, %v2393_v47  ;;  %v2551_v47 = vld [vmem:[#allocation10 + $0x70] sm:$0xff] }
0x130c   :  { %v2395_v49 = vsub.f32 %v2387_v46, %v2394_v48  ;;  %v4566_v46 = vpack.c.bf16 %v2550_v45, %v2549_v44  ;;  %v2552_v48 = vld [vmem:[#allocation10 + $0x78] sm:$0xff]  ;;  %v4641_v44 = vpack.c.bf16 %v2839_v43, %v2838_v42  ;;  %v2727_v45 = vld [vmem:[#allocation10 + $0x80] sm:$0xff] }
0x130d   :  { %v3067_v42 = vld [vmem:[%s5497_s30] ss:$0 sm:$0xff] }
0x130e   :  { %v2396_v50 = vmul.f32 %v2395_v49, %v2395_v49  ;;  %4567 = vmatpush3.bf16.msra.mxu1 %v4566_v46  ;;  %v2728_v46 = vld [vmem:[#allocation10 + $0x88] sm:$0xff] }
0x130f   :  { %4568 = vmatprep.subr.bf16.mxu1 %v4846_v1 }
0x1310   :  { %2397 = vadd.xlane.f32.xlu1 %v2396_v50 }
0x139d   :  { %v2398_v51 = vpop.xlane.xlu1 %2397 }
0x139e   :  { %v2399_v52 = vmul.f32 0.0078125, %v2398_v51 }
0x13a0   :  { %v2400_v16 = vadd.f32 1e-05, %v2399_v52 }
0x13a2   :  { %4690 = vrsqrt.f32 %v2400_v16 }
0x13ac   :  { %v4691_v53 = vpop.eup %4690 }
0x13ad   :  { %v2402_v59 = vmul.f32 %v4691_v53, %v2395_v49  ;;  %v4569_v49 = vpack.c.bf16 %v2552_v48, %v2551_v47  ;;  %v3064_v53 = vld [vmem:[%s5466_s17] ss:$0 sm:$0xff] }
0x13ae   :  { %v3066_v47 = vld [vmem:[%s5469_s20] ss:$0 sm:$0xff] }
0x13af   :  { %v2409_v60 = vmul.f32 %v3062_v56, %v2402_v59  ;;  %4570 = vmatpush3.bf16.msra.mxu1 %v4569_v49  ;;  %v2632_v59 = vld [vmem:[#allocation9 + $0x80] sm:$0xff]  ;;  %v4596_v49 = vpack.c.bf16 %v2728_v46, %v2727_v45 }
0x13b0   :  { %4595 = vmatprep.subr.bf16.mxu1 %v4846_v1 }
0x13b1   :  { %v2416_v61 = vadd.f32 %v3063_v63, %v2409_v60  ;;  %v2633_v63 = vld [vmem:[#allocation9 + $0x88] sm:$0xff]  ;;  %v3065_v60 = vld [vmem:[%s5467_s18] ss:$0 sm:$0xff] }
0x13b2   :  { %v4572_v62 = vpack.c.bf16 %v2633_v63, %v2632_v59  ;;  %v2732_v59 = vld [vmem:[#allocation10 + $0xa8] sm:$0xff] }
0x13b3   :  { %2419 = vadd.xlane.f32.xlu0 %v2416_v61 }
0x1440   :  { %v2420_v10 = vpop.xlane.xlu0 %2419 }
0x1441   :  { %v2421_v11 = vmul.f32 0.0078125, %v2420_v10  ;;  %v2639_v10 = vld [vmem:[#allocation9 + $0xb8] sm:$0xff] }
0x1443   :  { %v5355_v12 = vsub.f32 %v2416_v61, %v2421_v11  ;;  %v4581_v11 = vpack.c.bf16 %v2639_v10, %v2638_v9  ;;  %v2740_v9 = vld [vmem:[#allocation10 + $0xe8] sm:$0xff] }
0x1445   :  { %v2423_v13 = vmul.f32 %v5355_v12, %v5355_v12 }
0x1447   :  { %2424 = vadd.xlane.f32.xlu1 %v2423_v13  ;;  %v2641_v13 = vld [vmem:[#allocation9 + $0xc8] sm:$0xff] }
0x14d4   :  { %v2425_v50 = vpop.xlane.xlu1 %2424 }
0x14d5   :  { %v2426_v51 = vmul.f32 0.0078125, %v2425_v50 }
0x14d7   :  { %v2427_v52 = vadd.f32 1e-05, %v2426_v51 }
0x14d9   :  { %4692 = vrsqrt.f32 %v2427_v52  ;;  %v2729_v52 = vld [vmem:[#allocation10 + $0x90] sm:$0xff] }
0x14e3   :  { %v4693_v16 = vpop.eup %4692 }
0x14e4   :  { %v2429_v56 = vmul.f32 %v4693_v16, %v5355_v12  ;;  %v2640_v12 = vld [vmem:[#allocation9 + $0xc0] sm:$0xff]  ;;  %v2730_v16 = vld [vmem:[#allocation10 + $0x98] sm:$0xff] }
0x14e5   :  { %v4584_v14 = vpack.c.bf16 %v2641_v13, %v2640_v12  ;;  %v2742_v12 = vld [vmem:[#allocation10 + $0xf8] sm:$0xff] }
0x14e6   :  { %v2436_v61 = vmul.f32 %v3064_v53, %v2429_v56  ;;  %v4599_v53 = vpack.c.bf16 %v2730_v16, %v2729_v52  ;;  %v2731_v56 = vld [vmem:[#allocation10 + $0xa0] sm:$0xff] }
0x14e7   :  { %v4602_v63 = vpack.c.bf16 %v2732_v59, %v2731_v56 }
0x14e8   :  { %v5379_v2 = vadd.f32 %v3065_v60, %v2436_v61  ;;  %v2733_v60 = vld [vmem:[#allocation10 + $0xb0] sm:$0xff]  ;;  %v2734_v61 = vld [vmem:[#allocation10 + $0xb8] sm:$0xff] }
0x14ea   :  { %3794 = vmatmul.mubr.f32.vlgmr.msra.gmra.mrb[20].mxu0 %v5379_v2 }
0x14eb   :  { %4573 = vmatpush3.bf16.msra.mxu0 %v4572_v62  ;;  %3863 = vmatprep.mubr.msk.f32.mxu0 %vm4845_vm0, %v4844_v0  ;;  %v4605_v62 = vpack.c.bf16 %v2734_v61, %v2733_v60 }
0x14ec   :  { %4574 = vmatprep.subr.bf16.mxu0 %v4846_v1 }
0x14ef   :  { %4576 = vmatpush3.bf16.msra.mxu0 %v4575_v5  ;;  %v2737_v5 = vld [vmem:[#allocation10 + $0xd0] sm:$0xff] }
0x14f0   :  { %4577 = vmatprep.subr.bf16.mxu0 %v4846_v1  ;;  %v4611_v7 = vpack.c.bf16 %v2738_v6, %v2737_v5 }
0x14f3   :  { %4579 = vmatpush3.bf16.msra.mxu0 %v4578_v30  ;;  %v2739_v30 = vld [vmem:[#allocation10 + $0xe0] sm:$0xff] }
0x14f4   :  { %4580 = vmatprep.subr.bf16.mxu0 %v4846_v1  ;;  %v4614_v10 = vpack.c.bf16 %v2740_v9, %v2739_v30 }
0x14f7   :  { %4582 = vmatpush3.bf16.msra.mxu0 %v4581_v11  ;;  %v2741_v11 = vld [vmem:[#allocation10 + $0xf0] sm:$0xff] }
0x14f8   :  { %4583 = vmatprep.subr.bf16.mxu0 %v4846_v1  ;;  %v4617_v13 = vpack.c.bf16 %v2742_v12, %v2741_v11 }
0x14fb   :  { %4585 = vmatpush3.bf16.msra.mxu0 %v4584_v14  ;;  %v2919_v14 = vld [vmem:[#allocation10 + $0x100] sm:$0xff] }
0x14fc   :  { %4586 = vmatprep.subr.bf16.mxu0 %v4846_v1  ;;  %v4644_v19 = vpack.c.bf16 %v2920_v15, %v2919_v14 }
0x14ff   :  { %4588 = vmatpush3.bf16.msra.mxu0 %v4587_v18 }
0x1500   :  { %4589 = vmatprep.subr.bf16.mxu0 %v4846_v1 }
0x1503   :  { %4591 = vmatpush3.bf16.msra.mxu0 %v4590_v21 }
0x1504   :  { %4592 = vmatprep.subr.bf16.mxu0 %v4846_v1 }
0x1507   :  { %4594 = vmatpush3.bf16.msra.mxu0 %v4593_v24  ;;  %v4647_v24 = vpack.c.bf16 %v2922_v23, %v2921_v22 }
0x1508   :  { %4619 = vmatprep.subr.bf16.mxu0 %v4846_v1 }
0x150a   :  { %3864 = vmatmul.mubr.f32.vlgmr.msra.gmra.mrb[22].mxu0 %v5379_v2 }
0x150b   :  { %4621 = vmatpush3.bf16.msra.mxu0 %v4620_v27  ;;  %3933 = vmatprep.mubr.msk.f32.mxu0 %vm4845_vm0, %v4844_v0  ;;  %v4650_v27 = vpack.c.bf16 %v2924_v26, %v2923_v25 }
0x150c   :  { %4622 = vmatprep.subr.bf16.mxu0 %v4846_v1 }
0x150f   :  { %4624 = vmatpush3.bf16.msra.mxu0 %v4623_v31  ;;  %v4653_v31 = vpack.c.bf16 %v2926_v29, %v2925_v28 }
0x1510   :  { %4625 = vmatprep.subr.bf16.mxu0 %v4846_v1 }
0x1513   :  { %4627 = vmatpush3.bf16.msra.mxu0 %v4626_v33  ;;  %v4656_v33 = vpack.c.bf16 %v2928_v35, %v2927_v32 }
0x1514   :  { %4628 = vmatprep.subr.bf16.mxu0 %v4846_v1 }
0x1517   :  { %4630 = vmatpush3.bf16.msra.mxu0 %v4629_v37  ;;  %v2931_v37 = vld [vmem:[#allocation10 + $0x160] sm:$0xff] }
0x1518   :  { %4631 = vmatprep.subr.bf16.mxu0 %v4846_v1  ;;  %v4662_v39 = vpack.c.bf16 %v2932_v38, %v2931_v37 }
0x151b   :  { %4633 = vmatpush3.bf16.msra.mxu0 %v4632_v40  ;;  %v2933_v40 = vld [vmem:[#allocation10 + $0x170] sm:$0xff] }
0x151c   :  { %4634 = vmatprep.subr.bf16.mxu0 %v4846_v1  ;;  %v4665_v54 = vpack.c.bf16 %v2934_v41, %v2933_v40 }
0x151f   :  { %4636 = vmatpush3.bf16.msra.mxu0 %v4635_v55  ;;  %v3074_v55 = vld [vmem:[%s5469_s20 + $0x2] ss:$0 sm:$0xff] }
0x1520   :  { %4637 = vmatprep.subr.bf16.mxu0 %v4846_v1 }
0x1523   :  { %4639 = vmatpush3.bf16.msra.mxu0 %v4638_v8 }
0x1524   :  { %4640 = vmatprep.subr.bf16.mxu0 %v4846_v1 }
0x1527   :  { %4642 = vmatpush3.bf16.msra.mxu0 %v4641_v44 }
0x152a   :  { %3934 = vmatmul.mubr.f32.vlgmr.msra.gmra.mrb[24].mxu0 %v5379_v2  ;;  %v2735_v2 = vld [vmem:[#allocation10 + $0xc0] sm:$0xff] }
0x152b   :  { %v4608_v4 = vpack.c.bf16 %v2736_v3, %v2735_v2 }
0x15bd   :  { %v2533_v48 = vpop.f32.mrb[20].mxu0 }
0x15be   :  { %v2534_v50 = vadd.f32 %v3066_v47, %v2533_v48  ;;  %v3795_v51 = vpop.f32.mrb[21].mxu0 }
0x15c0   :  { %3829 = vmatmul.mubr.f32.vlgmr.msra.gmra.mrb[20].mxu1 %v2534_v50 }
0x15c1   :  { %4597 = vmatpush3.bf16.msra.mxu1 %v4596_v49  ;;  %3898 = vmatprep.mubr.msk.f32.mxu1 %vm4845_vm0, %v4844_v0  ;;  %v3076_v49 = vld [vmem:[%s5497_s30 + $0x2] ss:$0 sm:$0xff] }
0x15c2   :  { %4598 = vmatprep.subr.bf16.mxu1 %v4846_v1 }
0x15c5   :  { %4600 = vmatpush3.bf16.msra.mxu1 %v4599_v53 }
0x15c6   :  { %4601 = vmatprep.subr.bf16.mxu1 %v4846_v1 }
0x15c9   :  { %4603 = vmatpush3.bf16.msra.mxu1 %v4602_v63 }
0x15ca   :  { %4604 = vmatprep.subr.bf16.mxu1 %v4846_v1 }
0x15cd   :  { %4606 = vmatpush3.bf16.msra.mxu1 %v4605_v62 }
0x15ce   :  { %4607 = vmatprep.subr.bf16.mxu1 %v4846_v1 }
0x15d1   :  { %4609 = vmatpush3.bf16.msra.mxu1 %v4608_v4 }
0x15d2   :  { %4610 = vmatprep.subr.bf16.mxu1 %v4846_v1 }
0x15d5   :  { %4612 = vmatpush3.bf16.msra.mxu1 %v4611_v7 }
0x15d6   :  { %4613 = vmatprep.subr.bf16.mxu1 %v4846_v1 }
0x15d9   :  { %4615 = vmatpush3.bf16.msra.mxu1 %v4614_v10 }
0x15da   :  { %4616 = vmatprep.subr.bf16.mxu1 %v4846_v1 }
0x15dd   :  { %v2722_v18 = vpop.f32.mrb[22].mxu0  ;;  %4618 = vmatpush3.bf16.msra.mxu1 %v4617_v13 }
0x15de   :  { %v2723_v20 = vadd.f32 %v3069_v17, %v2722_v18  ;;  %v3865_v21 = vpop.f32.mrb[23].mxu0  ;;  %4643 = vmatprep.subr.bf16.mxu1 %v4846_v1 }
0x15e0   :  { %3899 = vmatmul.mubr.f32.vlgmr.msra.gmra.mrb[22].mxu1 %v2723_v20 }
0x15e1   :  { %4645 = vmatpush3.bf16.msra.mxu1 %v4644_v19  ;;  %3968 = vmatprep.mubr.msk.f32.mxu1 %vm4845_vm0, %v4844_v0  ;;  %v2929_v0 = vld [vmem:[#allocation10 + $0x150] sm:$0xff] }
0x15e2   :  { %4646 = vmatprep.subr.bf16.mxu1 %v4846_v1  ;;  %v4659_v36 = vpack.c.bf16 %v2930_v34, %v2929_v0 }
0x15e5   :  { %4648 = vmatpush3.bf16.msra.mxu1 %v4647_v24 }
0x15e6   :  { %4649 = vmatprep.subr.bf16.mxu1 %v4846_v1 }
0x15e9   :  { %4651 = vmatpush3.bf16.msra.mxu1 %v4650_v27 }
0x15ea   :  { %4652 = vmatprep.subr.bf16.mxu1 %v4846_v1 }
0x15ed   :  { %4654 = vmatpush3.bf16.msra.mxu1 %v4653_v31 }
0x15ee   :  { %4655 = vmatprep.subr.bf16.mxu1 %v4846_v1 }
0x15f1   :  { %4657 = vmatpush3.bf16.msra.mxu1 %v4656_v33 }
0x15f2   :  { %4658 = vmatprep.subr.bf16.mxu1 %v4846_v1 }
0x15f5   :  { %4660 = vmatpush3.bf16.msra.mxu1 %v4659_v36 }
0x15f6   :  { %4661 = vmatprep.subr.bf16.mxu1 %v4846_v1 }
0x15f9   :  { %4663 = vmatpush3.bf16.msra.mxu1 %v4662_v39 }
0x15fa   :  { %4664 = vmatprep.subr.bf16.mxu1 %v4846_v1  ;;  %v3071_v1 = vld [vmem:[%s5497_s30 + $0x1] ss:$0 sm:$0xff] }
0x15fd   :  { %v2914_v57 = vpop.f32.mrb[24].mxu0  ;;  %4666 = vmatpush3.bf16.msra.mxu1 %v4665_v54 }
0x15fe   :  { %v2915_v58 = vadd.f32 %v3074_v55, %v2914_v57  ;;  %v3935_v8 = vpop.f32.mrb[25].mxu0 }
0x1600   :  { %3969 = vmatmul.mubr.f32.vlgmr.msra.gmra.mrb[24].mxu1 %v2915_v58 }
0x1693   :  { %v2626_v43 = vpop.f32.mrb[20].mxu1 }
0x1694   :  { %v2627_v44 = vadd.f32 %v3067_v42, %v2626_v43  ;;  %v3830_v45 = vpop.f32.mrb[21].mxu1 }
0x1696   :  { %2630 = vst [vmem:[%s5498_s23] sm:$0xff] %v2627_v44 }
0x16b3   :  { %v2817_v46 = vpop.f32.mrb[22].mxu1 }
0x16b4   :  { %v2818_v47 = vadd.f32 %v3071_v1, %v2817_v46  ;;  %v3900_v48 = vpop.f32.mrb[23].mxu1 }
0x16b6   :  { %3072 = vst [vmem:[%s5498_s23 + $0x8] sm:$0xff] %v2818_v47 }
0x16d3   :  { %v3009_v50 = vpop.f32.mrb[24].mxu1 }
0x16d4   :  { %v3010_v51 = vadd.f32 %v3076_v49, %v3009_v50  ;;  %v3970_v52 = vpop.f32.mrb[25].mxu1 }
0x16d6   :  { %3077 = vst [vmem:[%s5498_s23 + $0x10] sm:$0xff] %v3010_v51 }
0x16d7   :  { %3019 = vsyncpa [#allocation3], 1 }
0x16d8   :  { %3020 = vsyncpa [#allocation5], 1 }
0x16d9   :  { %3021 = vsyncpa [#allocation8], 1 }
0x16da   :  { %3022 = vsyncpa [#allocation11], 1 }

</bundles_post_ra>
